<compile_context>
chip_gen: v6e
topology: v6e:2x2x1
jax: 0.10.0
libtpu: 0.0.40
codegen_flags: <defaults>
</compile_context>

<pallas_src>
import functools

import numpy as np

import jax
import jax.numpy as jnp
from jax import lax
from jax.experimental import pallas as pl
from jax.experimental.pallas import tpu as pltpu

K = 7          # conv kernel size
PAD = 3        # conv padding
BAND = 1024    # lane band for the conv / epilogue (bounds vreg pressure)


def _sa_kernel(wv_ref, b_ref, mask_ref, x_ref, o_ref,
               ps_ref, pm_ref, e_ref, *, C, CT, CR, NB, HW, W, nct):
    # wv_ref  : (2, K*K) f32 VMEM, wv[c, dw*K + dh] = weight[0, c, dh, dw]
    # b_ref   : (1,)     f32 SMEM
    # mask_ref: (K, HW)  f32 VMEM, per-dw column-validity mask (0/1)
    # x_ref   : (NB, CT, HW) VMEM block (channel tile ci of batch block bi)
    # o_ref   : (NB, 1, HW)  VMEM output block
    # ps_ref  : (NB, CR, HW) f32 scratch - running channel-chunk sums
    # pm_ref  : (NB, CR, HW) f32 scratch - running channel-chunk maxima
    # e_ref   : (NB, 2, LE)  f32 scratch - row-zero-extended flat (avg,max) maps
    ci = pl.program_id(1)
    n_full = CT // CR
    tail = CT % CR                       # nonzero only when nct == 1
    B = PAD * W + PAD                    # start of the real data inside e_ref
    # LE = HW + 2 * B  (allocated by the wrapper)

    # ---- init running accumulators at the first channel tile ---------------
    @pl.when(ci == 0)
    def _init():
        ps_ref[...] = jnp.zeros_like(ps_ref)
        pm_ref[...] = jnp.full_like(pm_ref, -jnp.inf)

    # ---- accumulate this channel tile, CR channels per op (dense vregs) ----
    if n_full <= 16:
        for j in range(n_full):
            xc = x_ref[:, j * CR:(j + 1) * CR, :].astype(jnp.float32)
            ps_ref[...] += xc
            pm_ref[...] = jnp.maximum(pm_ref[...], xc)
    else:
        def chunk(j, carry):
            c0 = pl.multiple_of(j * CR, CR)
            xc = x_ref[:, pl.ds(c0, CR), :].astype(jnp.float32)
            ps_ref[...] += xc
            pm_ref[...] = jnp.maximum(pm_ref[...], xc)
            return carry
        lax.fori_loop(0, n_full, chunk, 0, unroll=4)

    # ---- last channel tile: finish reduction, 7x7 conv, SiLU, store --------
    @pl.when(ci == nct - 1)
    def _finalize():
        bias = b_ref[0]

        # (1) fold the CR sub-accumulators (+ tail channels) and lay the
        #     row-zero-extended flat avg/max maps into e_ref.
        e_ref[...] = jnp.zeros_like(e_ref)          # one wide zero for the halo
        for b0 in range(0, HW, BAND):
            bw = min(BAND, HW - b0)
            s = ps_ref[:, 0:1, b0:b0 + bw]
            m = pm_ref[:, 0:1, b0:b0 + bw]
            for j in range(1, CR):
                s = s + ps_ref[:, j:j + 1, b0:b0 + bw]
                m = jnp.maximum(m, pm_ref[:, j:j + 1, b0:b0 + bw])
            for t in range(tail):                    # only when nct == 1
                xt = x_ref[:, CT - tail + t:CT - tail + t + 1, b0:b0 + bw]
                xt = xt.astype(jnp.float32)
                s = s + xt
                m = jnp.maximum(m, xt)
            e_ref[:, 0:1, B + b0:B + b0 + bw] = s * (1.0 / C)
            e_ref[:, 1:2, B + b0:B + b0 + bw] = m

        # (2) 7x7 conv (both channels on the sublane axis) + sigmoid(y)*y.
        for b0 in range(0, HW, BAND):
            bw = min(BAND, HW - b0)
            acc = jnp.zeros((NB, 2, bw), jnp.float32)
            for dw in range(K):
                wcol = wv_ref[:, dw * K:(dw + 1) * K]         # (2, K) hoisted
                part = jnp.zeros((NB, 2, bw), jnp.float32)
                for dh in range(K):
                    off = dh * W + dw + b0
                    part = part + wcol[:, dh:dh + 1] * e_ref[:, :, off:off + bw]
                acc = acc + mask_ref[dw, b0:b0 + bw] * part
            conv = acc[:, 0:1, :] + acc[:, 1:2, :] + bias     # (NB, 1, bw)
            y = jax.nn.sigmoid(conv) * conv
            o_ref[:, :, b0:b0 + bw] = y.astype(o_ref.dtype)


def spatial_attention(x, weight, bias):
    """x: (N, C, H, W). weight: (1, 2, 7, 7). bias: (1,). Returns (N, 1, H, W)."""
    N, C, H, W = x.shape
    HW = H * W
    B = PAD * W + PAD
    LE = HW + 2 * B                                  # flat extended map length

    x_flat = x.reshape(N, C, HW)                     # free reshape (contiguous)
    # Conv weights laid out so a (2,1) per-tap column is a direct slice:
    #   wv[c, dw*K + dh] = weight[0, c, dh, dw]
    wv = jnp.transpose(weight[0], (0, 2, 1)).reshape(2, K * K).astype(jnp.float32)
    b = bias.astype(jnp.float32)
    # Per-dw column-validity masks for the flat-row conv formulation.
    wcol_idx = np.tile(np.arange(W), H)
    masks = np.stack([(wcol_idx >= PAD - dw) & (wcol_idx < W + PAD - dw)
                      for dw in range(K)]).astype(np.float32)      # (K, HW)
    masks = jnp.asarray(masks)

    # ---- per-generation VMEM budget -> block sizes --------------------------
    try:
        info = pltpu.get_tpu_info()
        vmem_cap = int(getattr(info, "vmem_capacity_bytes", 0)) or (64 << 20)
    except Exception:
        vmem_cap = 64 << 20
    vmem_limit = min((vmem_cap * 3) // 4, 100 << 20)   # ~96MiB v5e/v6e, 48MiB v7x
    x_budget = vmem_limit // 3                         # double-buffered x block
    itemsize = x.dtype.itemsize
    hw_pad = -(-HW // 128) * 128                       # lane-padded row length

    def fits(nb, ct):
        return 2 * nb * ct * hw_pad * itemsize <= x_budget

    # Batch block: largest divisor of N that still leaves >=2 grid steps.
    NB = 1
    for d in range(min(N, 8), 0, -1):
        if N % d == 0 and (N // d >= 2 or N == 1) and fits(d, min(C, 8)):
            NB = d
            break
    # Channel tile: whole C if it fits, else a multiple-of-8 divisor of C.
    if fits(NB, C):
        CT = C
    else:
        CT = None
        for d in range(C, 0, -1):
            if C % d == 0 and d % 8 == 0 and fits(NB, d):
                CT = d
                break
        if CT is None:
            NB = 1
            for d in range(C, 0, -1):
                if C % d == 0 and (d % 8 == 0 or d == C) and fits(1, d):
                    CT = d
                    break
        if CT is None:
            CT = C if C % 8 else 8                     # last-resort fallback
    nct = C // CT
    CR = min(8, CT)

    kernel = functools.partial(_sa_kernel, C=C, CT=CT, CR=CR, NB=NB,
                               HW=HW, W=W, nct=nct)

    out = pl.pallas_call(
        kernel,
        out_shape=jax.ShapeDtypeStruct((N, 1, HW), x.dtype),
        grid=(N // NB, nct),
        in_specs=[
            pl.BlockSpec((2, K * K), lambda bi, ci: (0, 0)),         # conv weight
            pl.BlockSpec(memory_space=pltpu.MemorySpace.SMEM),       # bias
            pl.BlockSpec((K, HW), lambda bi, ci: (0, 0)),            # dw masks
            pl.BlockSpec((NB, CT, HW), lambda bi, ci: (bi, ci, 0)),  # x
        ],
        out_specs=pl.BlockSpec((NB, 1, HW), lambda bi, ci: (bi, 0, 0)),
        scratch_shapes=[
            pltpu.VMEM((NB, CR, HW), jnp.float32),   # running channel sums
            pltpu.VMEM((NB, CR, HW), jnp.float32),   # running channel maxima
            pltpu.VMEM((NB, 2, LE), jnp.float32),    # extended flat avg/max maps
        ],
        compiler_params=pltpu.CompilerParams(
            dimension_semantics=("parallel", "arbitrary"),
            vmem_limit_bytes=int(vmem_limit)),
    )(wv, b, masks, x_flat)

    return out.reshape(N, 1, H, W)


def reference(x, weight, bias):
    avg = jnp.mean(x, axis=1, keepdims=True)
    mx = jnp.max(x, axis=1, keepdims=True)
    xc = jnp.concatenate([avg, mx], axis=1)
    y = jax.lax.conv_general_dilated(
        xc, weight, window_strides=(1, 1), padding=[(PAD, PAD), (PAD, PAD)],
        dimension_numbers=("NCHW", "OIHW", "NCHW")) + bias.reshape(1, 1, 1, 1)
    return jax.nn.sigmoid(y) * y


if __name__ == "__main__":
    key = jax.random.PRNGKey(0)
    kx, kw, kb = jax.random.split(key, 3)

    N, C, H, W = 2, 4, 16, 16
    x = jax.random.normal(kx, (N, C, H, W), dtype=jnp.float32)

    # Deterministic parameter init mimicking PyTorch Conv2d default:
    # uniform(-k, k) with k = 1 / sqrt(in_channels * 7 * 7).
    fan_in = 2 * K * K
    bound = 1.0 / (fan_in ** 0.5)
    weight = jax.random.uniform(kw, (1, 2, K, K), jnp.float32, -bound, bound)
    bias = jax.random.uniform(kb, (1,), jnp.float32, -bound, bound)

    out = spatial_attention(x, weight, bias)
    out = jax.block_until_ready(out)

    ref = reference(x, weight, bias)
    assert out.shape == (N, 1, H, W)
    assert jnp.allclose(out, ref, atol=1e-4, rtol=1e-4)

    print("KERNEL_OK")
</pallas_src>

<mosaic_0001>
module attributes {stable_mosaic.version = 11 : i64} {
  func.func @_sa_kernel(%arg0: i32, %arg1: i32, %arg2: memref<2x49xf32, #tpu.memory_space<vmem>>, %arg3: memref<1xf32, #tpu.memory_space<smem>>, %arg4: memref<7x256xf32, #tpu.memory_space<vmem>>, %arg5: memref<1x4x256xf32, #tpu.memory_space<vmem>>, %arg6: memref<1x1x256xf32, #tpu.memory_space<vmem>>, %arg7: memref<1x4x256xf32, #tpu.memory_space<vmem>>, %arg8: memref<1x4x256xf32, #tpu.memory_space<vmem>>, %arg9: memref<1x2x358xf32, #tpu.memory_space<vmem>>) attributes {dimension_semantics = [#tpu.dimension_semantics<parallel>, #tpu.dimension_semantics<arbitrary>], iteration_bounds = array<i64: 2, 1>, scalar_prefetch = 0 : i64, scratch_operands = 3 : i64, tpu.core_type = #tpu.core_type<tc>, window_params = [{pipeline_mode = #tpu.pipeline_mode<synchronous>, transform_indices = @transform_0, window_bounds = array<i64: 2, 49>}, {transform_indices = @transform_1, window_bounds = array<i64: 1>}, {pipeline_mode = #tpu.pipeline_mode<synchronous>, transform_indices = @transform_2, window_bounds = array<i64: 7, 256>}, {transform_indices = @transform_3, window_bounds = array<i64: 1, 4, 256>}, {transform_indices = @transform_4, window_bounds = array<i64: 1, 1, 256>}]} {
    %c0_i32 = arith.constant 0 : i32
    %0 = arith.cmpi eq, %arg1, %c0_i32 : i32
    %1 = arith.extui %0 : i1 to i32
    %c0_i32_0 = arith.constant 0 : i32
    %2 = arith.cmpi ne, %1, %c0_i32_0 : i32
    scf.if %2 {
      %cst = arith.constant 0.000000e+00 : f32
      %13 = vector.broadcast %cst : f32 to vector<1x4x256xf32>
      %c0_17 = arith.constant 0 : index
      %c0_18 = arith.constant 0 : index
      %c0_19 = arith.constant 0 : index
      %14 = vector.load %arg7[%c0_17, %c0_18, %c0_19] : memref<1x4x256xf32, #tpu.memory_space<vmem>>, vector<1x4x256xf32>
      tpu.vector_store %arg7[%c0_17, %c0_18, %c0_19], %13 {strides = array<i32>} : memref<1x4x256xf32, #tpu.memory_space<vmem>>, vector<1x4x256xf32>,
      %cst_20 = arith.constant 0xFF800000 : f32
      %15 = vector.broadcast %cst_20 : f32 to vector<1x4x256xf32>
      %c0_21 = arith.constant 0 : index
      %c0_22 = arith.constant 0 : index
      %c0_23 = arith.constant 0 : index
      %16 = vector.load %arg8[%c0_21, %c0_22, %c0_23] : memref<1x4x256xf32, #tpu.memory_space<vmem>>, vector<1x4x256xf32>
      tpu.vector_store %arg8[%c0_21, %c0_22, %c0_23], %15 {strides = array<i32>} : memref<1x4x256xf32, #tpu.memory_space<vmem>>, vector<1x4x256xf32>,
    } else {
    }
    %c0 = arith.constant 0 : index
    %c0_1 = arith.constant 0 : index
    %c0_2 = arith.constant 0 : index
    %3 = vector.load %arg5[%c0, %c0_1, %c0_2] : memref<1x4x256xf32, #tpu.memory_space<vmem>>, vector<1x4x256xf32>
    %c0_3 = arith.constant 0 : index
    %c0_4 = arith.constant 0 : index
    %c0_5 = arith.constant 0 : index
    %4 = vector.load %arg7[%c0_3, %c0_4, %c0_5] : memref<1x4x256xf32, #tpu.memory_space<vmem>>, vector<1x4x256xf32>
    %5 = arith.addf %4, %3 : vector<1x4x256xf32>
    %c0_6 = arith.constant 0 : index
    %c0_7 = arith.constant 0 : index
    %c0_8 = arith.constant 0 : index
    %6 = vector.load %arg7[%c0_6, %c0_7, %c0_8] : memref<1x4x256xf32, #tpu.memory_space<vmem>>, vector<1x4x256xf32>
    tpu.vector_store %arg7[%c0_6, %c0_7, %c0_8], %5 {strides = array<i32>} : memref<1x4x256xf32, #tpu.memory_space<vmem>>, vector<1x4x256xf32>,
    %c0_9 = arith.constant 0 : index
    %c0_10 = arith.constant 0 : index
    %c0_11 = arith.constant 0 : index
    %7 = vector.load %arg8[%c0_9, %c0_10, %c0_11] : memref<1x4x256xf32, #tpu.memory_space<vmem>>, vector<1x4x256xf32>
    %8 = arith.maximumf %7, %3 : vector<1x4x256xf32>
    %c0_12 = arith.constant 0 : index
    %c0_13 = arith.constant 0 : index
    %c0_14 = arith.constant 0 : index
    %9 = vector.load %arg8[%c0_12, %c0_13, %c0_14] : memref<1x4x256xf32, #tpu.memory_space<vmem>>, vector<1x4x256xf32>
    tpu.vector_store %arg8[%c0_12, %c0_13, %c0_14], %8 {strides = array<i32>} : memref<1x4x256xf32, #tpu.memory_space<vmem>>, vector<1x4x256xf32>,
    %c0_i32_15 = arith.constant 0 : i32
    %10 = arith.cmpi eq, %arg1, %c0_i32_15 : i32
    %11 = arith.extui %10 : i1 to i32
    %c0_i32_16 = arith.constant 0 : i32
    %12 = arith.cmpi ne, %11, %c0_i32_16 : i32
    scf.if %12 {
      %c0_17 = arith.constant 0 : index
      %13 = memref.load %arg3[%c0_17] : memref<1xf32, #tpu.memory_space<smem>>
      %cst = arith.constant 0.000000e+00 : f32
      %14 = vector.broadcast %cst : f32 to vector<1x2x358xf32>
      %c0_18 = arith.constant 0 : index
      %c0_19 = arith.constant 0 : index
      %c0_20 = arith.constant 0 : index
      %15 = vector.load %arg9[%c0_18, %c0_19, %c0_20] : memref<1x2x358xf32, #tpu.memory_space<vmem>>, vector<1x2x358xf32>
      tpu.vector_store %arg9[%c0_18, %c0_19, %c0_20], %14 {strides = array<i32>} : memref<1x2x358xf32, #tpu.memory_space<vmem>>, vector<1x2x358xf32>,
      %c0_21 = arith.constant 0 : index
      %c0_22 = arith.constant 0 : index
      %c0_23 = arith.constant 0 : index
      %16 = vector.load %arg7[%c0_21, %c0_22, %c0_23] : memref<1x4x256xf32, #tpu.memory_space<vmem>>, vector<1x1x256xf32>
      %c0_24 = arith.constant 0 : index
      %c0_25 = arith.constant 0 : index
      %c0_26 = arith.constant 0 : index
      %17 = vector.load %arg8[%c0_24, %c0_25, %c0_26] : memref<1x4x256xf32, #tpu.memory_space<vmem>>, vector<1x1x256xf32>
      %c0_27 = arith.constant 0 : index
      %c1 = arith.constant 1 : index
      %c0_28 = arith.constant 0 : index
      %18 = vector.load %arg7[%c0_27, %c1, %c0_28] : memref<1x4x256xf32, #tpu.memory_space<vmem>>, vector<1x1x256xf32>
      %19 = arith.addf %16, %18 : vector<1x1x256xf32>
      %c0_29 = arith.constant 0 : index
      %c1_30 = arith.constant 1 : index
      %c0_31 = arith.constant 0 : index
      %20 = vector.load %arg8[%c0_29, %c1_30, %c0_31] : memref<1x4x256xf32, #tpu.memory_space<vmem>>, vector<1x1x256xf32>
      %21 = arith.maximumf %17, %20 : vector<1x1x256xf32>
      %c0_32 = arith.constant 0 : index
      %c2 = arith.constant 2 : index
      %c0_33 = arith.constant 0 : index
      %22 = vector.load %arg7[%c0_32, %c2, %c0_33] : memref<1x4x256xf32, #tpu.memory_space<vmem>>, vector<1x1x256xf32>
      %23 = arith.addf %19, %22 : vector<1x1x256xf32>
      %c0_34 = arith.constant 0 : index
      %c2_35 = arith.constant 2 : index
      %c0_36 = arith.constant 0 : index
      %24 = vector.load %arg8[%c0_34, %c2_35, %c0_36] : memref<1x4x256xf32, #tpu.memory_space<vmem>>, vector<1x1x256xf32>
      %25 = arith.maximumf %21, %24 : vector<1x1x256xf32>
      %c0_37 = arith.constant 0 : index
      %c3 = arith.constant 3 : index
      %c0_38 = arith.constant 0 : index
      %26 = vector.load %arg7[%c0_37, %c3, %c0_38] : memref<1x4x256xf32, #tpu.memory_space<vmem>>, vector<1x1x256xf32>
      %27 = arith.addf %23, %26 : vector<1x1x256xf32>
      %c0_39 = arith.constant 0 : index
      %c3_40 = arith.constant 3 : index
      %c0_41 = arith.constant 0 : index
      %28 = vector.load %arg8[%c0_39, %c3_40, %c0_41] : memref<1x4x256xf32, #tpu.memory_space<vmem>>, vector<1x1x256xf32>
      %29 = arith.maximumf %25, %28 : vector<1x1x256xf32>
      %cst_42 = arith.constant 2.500000e-01 : f32
      %30 = vector.broadcast %cst_42 : f32 to vector<1x1x256xf32>
      %31 = arith.mulf %27, %30 : vector<1x1x256xf32>
      %c0_43 = arith.constant 0 : index
      %c0_44 = arith.constant 0 : index
      %c51 = arith.constant 51 : index
      %32 = vector.load %arg9[%c0_43, %c0_44, %c51] : memref<1x2x358xf32, #tpu.memory_space<vmem>>, vector<1x1x256xf32>
      tpu.vector_store %arg9[%c0_43, %c0_44, %c51], %31 {strides = array<i32>} : memref<1x2x358xf32, #tpu.memory_space<vmem>>, vector<1x1x256xf32>,
      %c0_45 = arith.constant 0 : index
      %c1_46 = arith.constant 1 : index
      %c51_47 = arith.constant 51 : index
      %33 = vector.load %arg9[%c0_45, %c1_46, %c51_47] : memref<1x2x358xf32, #tpu.memory_space<vmem>>, vector<1x1x256xf32>
      tpu.vector_store %arg9[%c0_45, %c1_46, %c51_47], %29 {strides = array<i32>} : memref<1x2x358xf32, #tpu.memory_space<vmem>>, vector<1x1x256xf32>,
      %cst_48 = arith.constant 0.000000e+00 : f32
      %34 = vector.broadcast %cst_48 : f32 to vector<1x2x256xf32>
      %c0_49 = arith.constant 0 : index
      %c0_50 = arith.constant 0 : index
      %35 = vector.load %arg2[%c0_49, %c0_50] : memref<2x49xf32, #tpu.memory_space<vmem>>, vector<2x7xf32>
      %cst_51 = arith.constant 0.000000e+00 : f32
      %36 = vector.broadcast %cst_51 : f32 to vector<1x2x256xf32>
      %37 = vector.extract_strided_slice %35 {offsets = [0, 0], sizes = [2, 1], strides = [1, 1]} : vector<2x7xf32> to vector<2x1xf32>
      %c0_52 = arith.constant 0 : index
      %c0_53 = arith.constant 0 : index
      %c0_54 = arith.constant 0 : index
      %38 = vector.load %arg9[%c0_52, %c0_53, %c0_54] : memref<1x2x358xf32, #tpu.memory_space<vmem>>, vector<1x2x256xf32>
      %39 = vector.shape_cast %37 : vector<2x1xf32> to vector<1x2x1xf32>
      %40 = vector.broadcast %39 : vector<1x2x1xf32> to vector<1x2x256xf32>
      %41 = arith.mulf %40, %38 : vector<1x2x256xf32>
      %42 = arith.addf %36, %41 : vector<1x2x256xf32>
      %43 = vector.extract_strided_slice %35 {offsets = [0, 1], sizes = [2, 1], strides = [1, 1]} : vector<2x7xf32> to vector<2x1xf32>
      %c0_55 = arith.constant 0 : index
      %c0_56 = arith.constant 0 : index
      %c16 = arith.constant 16 : index
      %44 = vector.load %arg9[%c0_55, %c0_56, %c16] : memref<1x2x358xf32, #tpu.memory_space<vmem>>, vector<1x2x256xf32>
      %45 = vector.shape_cast %43 : vector<2x1xf32> to vector<1x2x1xf32>
      %46 = vector.broadcast %45 : vector<1x2x1xf32> to vector<1x2x256xf32>
      %47 = arith.mulf %46, %44 : vector<1x2x256xf32>
      %48 = arith.addf %42, %47 : vector<1x2x256xf32>
      %49 = vector.extract_strided_slice %35 {offsets = [0, 2], sizes = [2, 1], strides = [1, 1]} : vector<2x7xf32> to vector<2x1xf32>
      %c0_57 = arith.constant 0 : index
      %c0_58 = arith.constant 0 : index
      %c32 = arith.constant 32 : index
      %50 = vector.load %arg9[%c0_57, %c0_58, %c32] : memref<1x2x358xf32, #tpu.memory_space<vmem>>, vector<1x2x256xf32>
      %51 = vector.shape_cast %49 : vector<2x1xf32> to vector<1x2x1xf32>
      %52 = vector.broadcast %51 : vector<1x2x1xf32> to vector<1x2x256xf32>
      %53 = arith.mulf %52, %50 : vector<1x2x256xf32>
      %54 = arith.addf %48, %53 : vector<1x2x256xf32>
      %55 = vector.extract_strided_slice %35 {offsets = [0, 3], sizes = [2, 1], strides = [1, 1]} : vector<2x7xf32> to vector<2x1xf32>
      %c0_59 = arith.constant 0 : index
      %c0_60 = arith.constant 0 : index
      %c48 = arith.constant 48 : index
      %56 = vector.load %arg9[%c0_59, %c0_60, %c48] : memref<1x2x358xf32, #tpu.memory_space<vmem>>, vector<1x2x256xf32>
      %57 = vector.shape_cast %55 : vector<2x1xf32> to vector<1x2x1xf32>
      %58 = vector.broadcast %57 : vector<1x2x1xf32> to vector<1x2x256xf32>
      %59 = arith.mulf %58, %56 : vector<1x2x256xf32>
      %60 = arith.addf %54, %59 : vector<1x2x256xf32>
      %61 = vector.extract_strided_slice %35 {offsets = [0, 4], sizes = [2, 1], strides = [1, 1]} : vector<2x7xf32> to vector<2x1xf32>
      %c0_61 = arith.constant 0 : index
      %c0_62 = arith.constant 0 : index
      %c64 = arith.constant 64 : index
      %62 = vector.load %arg9[%c0_61, %c0_62, %c64] : memref<1x2x358xf32, #tpu.memory_space<vmem>>, vector<1x2x256xf32>
      %63 = vector.shape_cast %61 : vector<2x1xf32> to vector<1x2x1xf32>
      %64 = vector.broadcast %63 : vector<1x2x1xf32> to vector<1x2x256xf32>
      %65 = arith.mulf %64, %62 : vector<1x2x256xf32>
      %66 = arith.addf %60, %65 : vector<1x2x256xf32>
      %67 = vector.extract_strided_slice %35 {offsets = [0, 5], sizes = [2, 1], strides = [1, 1]} : vector<2x7xf32> to vector<2x1xf32>
      %c0_63 = arith.constant 0 : index
      %c0_64 = arith.constant 0 : index
      %c80 = arith.constant 80 : index
      %68 = vector.load %arg9[%c0_63, %c0_64, %c80] : memref<1x2x358xf32, #tpu.memory_space<vmem>>, vector<1x2x256xf32>
      %69 = vector.shape_cast %67 : vector<2x1xf32> to vector<1x2x1xf32>
      %70 = vector.broadcast %69 : vector<1x2x1xf32> to vector<1x2x256xf32>
      %71 = arith.mulf %70, %68 : vector<1x2x256xf32>
      %72 = arith.addf %66, %71 : vector<1x2x256xf32>
      %73 = vector.extract_strided_slice %35 {offsets = [0, 6], sizes = [2, 1], strides = [1, 1]} : vector<2x7xf32> to vector<2x1xf32>
      %c0_65 = arith.constant 0 : index
      %c0_66 = arith.constant 0 : index
      %c96 = arith.constant 96 : index
      %74 = vector.load %arg9[%c0_65, %c0_66, %c96] : memref<1x2x358xf32, #tpu.memory_space<vmem>>, vector<1x2x256xf32>
      %75 = vector.shape_cast %73 : vector<2x1xf32> to vector<1x2x1xf32>
      %76 = vector.broadcast %75 : vector<1x2x1xf32> to vector<1x2x256xf32>
      %77 = arith.mulf %76, %74 : vector<1x2x256xf32>
      %78 = arith.addf %72, %77 : vector<1x2x256xf32>
      %c0_67 = arith.constant 0 : index
      %c0_68 = arith.constant 0 : index
      %79 = vector.load %arg4[%c0_67, %c0_68] : memref<7x256xf32, #tpu.memory_space<vmem>>, vector<1x256xf32>
      %80 = vector.shape_cast %79 : vector<1x256xf32> to vector<256xf32>
      %81 = vector.shape_cast %80 : vector<256xf32> to vector<1x1x256xf32>
      %82 = vector.broadcast %81 : vector<1x1x256xf32> to vector<1x2x256xf32>
      %83 = arith.mulf %82, %78 : vector<1x2x256xf32>
      %84 = arith.addf %34, %83 : vector<1x2x256xf32>
      %c0_69 = arith.constant 0 : index
      %c7 = arith.constant 7 : index
      %85 = vector.load %arg2[%c0_69, %c7] : memref<2x49xf32, #tpu.memory_space<vmem>>, vector<2x7xf32>
      %cst_70 = arith.constant 0.000000e+00 : f32
      %86 = vector.broadcast %cst_70 : f32 to vector<1x2x256xf32>
      %87 = vector.extract_strided_slice %85 {offsets = [0, 0], sizes = [2, 1], strides = [1, 1]} : vector<2x7xf32> to vector<2x1xf32>
      %c0_71 = arith.constant 0 : index
      %c0_72 = arith.constant 0 : index
      %c1_73 = arith.constant 1 : index
      %88 = vector.load %arg9[%c0_71, %c0_72, %c1_73] : memref<1x2x358xf32, #tpu.memory_space<vmem>>, vector<1x2x256xf32>
      %89 = vector.shape_cast %87 : vector<2x1xf32> to vector<1x2x1xf32>
      %90 = vector.broadcast %89 : vector<1x2x1xf32> to vector<1x2x256xf32>
      %91 = arith.mulf %90, %88 : vector<1x2x256xf32>
      %92 = arith.addf %86, %91 : vector<1x2x256xf32>
      %93 = vector.extract_strided_slice %85 {offsets = [0, 1], sizes = [2, 1], strides = [1, 1]} : vector<2x7xf32> to vector<2x1xf32>
      %c0_74 = arith.constant 0 : index
      %c0_75 = arith.constant 0 : index
      %c17 = arith.constant 17 : index
      %94 = vector.load %arg9[%c0_74, %c0_75, %c17] : memref<1x2x358xf32, #tpu.memory_space<vmem>>, vector<1x2x256xf32>
      %95 = vector.shape_cast %93 : vector<2x1xf32> to vector<1x2x1xf32>
      %96 = vector.broadcast %95 : vector<1x2x1xf32> to vector<1x2x256xf32>
      %97 = arith.mulf %96, %94 : vector<1x2x256xf32>
      %98 = arith.addf %92, %97 : vector<1x2x256xf32>
      %99 = vector.extract_strided_slice %85 {offsets = [0, 2], sizes = [2, 1], strides = [1, 1]} : vector<2x7xf32> to vector<2x1xf32>
      %c0_76 = arith.constant 0 : index
      %c0_77 = arith.constant 0 : index
      %c33 = arith.constant 33 : index
      %100 = vector.load %arg9[%c0_76, %c0_77, %c33] : memref<1x2x358xf32, #tpu.memory_space<vmem>>, vector<1x2x256xf32>
      %101 = vector.shape_cast %99 : vector<2x1xf32> to vector<1x2x1xf32>
      %102 = vector.broadcast %101 : vector<1x2x1xf32> to vector<1x2x256xf32>
      %103 = arith.mulf %102, %100 : vector<1x2x256xf32>
      %104 = arith.addf %98, %103 : vector<1x2x256xf32>
      %105 = vector.extract_strided_slice %85 {offsets = [0, 3], sizes = [2, 1], strides = [1, 1]} : vector<2x7xf32> to vector<2x1xf32>
      %c0_78 = arith.constant 0 : index
      %c0_79 = arith.constant 0 : index
      %c49 = arith.constant 49 : index
      %106 = vector.load %arg9[%c0_78, %c0_79, %c49] : memref<1x2x358xf32, #tpu.memory_space<vmem>>, vector<1x2x256xf32>
      %107 = vector.shape_cast %105 : vector<2x1xf32> to vector<1x2x1xf32>
      %108 = vector.broadcast %107 : vector<1x2x1xf32> to vector<1x2x256xf32>
      %109 = arith.mulf %108, %106 : vector<1x2x256xf32>
      %110 = arith.addf %104, %109 : vector<1x2x256xf32>
      %111 = vector.extract_strided_slice %85 {offsets = [0, 4], sizes = [2, 1], strides = [1, 1]} : vector<2x7xf32> to vector<2x1xf32>
      %c0_80 = arith.constant 0 : index
      %c0_81 = arith.constant 0 : index
      %c65 = arith.constant 65 : index
      %112 = vector.load %arg9[%c0_80, %c0_81, %c65] : memref<1x2x358xf32, #tpu.memory_space<vmem>>, vector<1x2x256xf32>
      %113 = vector.shape_cast %111 : vector<2x1xf32> to vector<1x2x1xf32>
      %114 = vector.broadcast %113 : vector<1x2x1xf32> to vector<1x2x256xf32>
      %115 = arith.mulf %114, %112 : vector<1x2x256xf32>
      %116 = arith.addf %110, %115 : vector<1x2x256xf32>
      %117 = vector.extract_strided_slice %85 {offsets = [0, 5], sizes = [2, 1], strides = [1, 1]} : vector<2x7xf32> to vector<2x1xf32>
      %c0_82 = arith.constant 0 : index
      %c0_83 = arith.constant 0 : index
      %c81 = arith.constant 81 : index
      %118 = vector.load %arg9[%c0_82, %c0_83, %c81] : memref<1x2x358xf32, #tpu.memory_space<vmem>>, vector<1x2x256xf32>
      %119 = vector.shape_cast %117 : vector<2x1xf32> to vector<1x2x1xf32>
      %120 = vector.broadcast %119 : vector<1x2x1xf32> to vector<1x2x256xf32>
      %121 = arith.mulf %120, %118 : vector<1x2x256xf32>
      %122 = arith.addf %116, %121 : vector<1x2x256xf32>
      %123 = vector.extract_strided_slice %85 {offsets = [0, 6], sizes = [2, 1], strides = [1, 1]} : vector<2x7xf32> to vector<2x1xf32>
      %c0_84 = arith.constant 0 : index
      %c0_85 = arith.constant 0 : index
      %c97 = arith.constant 97 : index
      %124 = vector.load %arg9[%c0_84, %c0_85, %c97] : memref<1x2x358xf32, #tpu.memory_space<vmem>>, vector<1x2x256xf32>
      %125 = vector.shape_cast %123 : vector<2x1xf32> to vector<1x2x1xf32>
      %126 = vector.broadcast %125 : vector<1x2x1xf32> to vector<1x2x256xf32>
      %127 = arith.mulf %126, %124 : vector<1x2x256xf32>
      %128 = arith.addf %122, %127 : vector<1x2x256xf32>
      %c1_86 = arith.constant 1 : index
      %c0_87 = arith.constant 0 : index
      %129 = vector.load %arg4[%c1_86, %c0_87] : memref<7x256xf32, #tpu.memory_space<vmem>>, vector<1x256xf32>
      %130 = vector.shape_cast %129 : vector<1x256xf32> to vector<256xf32>
      %131 = vector.shape_cast %130 : vector<256xf32> to vector<1x1x256xf32>
      %132 = vector.broadcast %131 : vector<1x1x256xf32> to vector<1x2x256xf32>
      %133 = arith.mulf %132, %128 : vector<1x2x256xf32>
      %134 = arith.addf %84, %133 : vector<1x2x256xf32>
      %c0_88 = arith.constant 0 : index
      %c14 = arith.constant 14 : index
      %135 = vector.load %arg2[%c0_88, %c14] : memref<2x49xf32, #tpu.memory_space<vmem>>, vector<2x7xf32>
      %cst_89 = arith.constant 0.000000e+00 : f32
      %136 = vector.broadcast %cst_89 : f32 to vector<1x2x256xf32>
      %137 = vector.extract_strided_slice %135 {offsets = [0, 0], sizes = [2, 1], strides = [1, 1]} : vector<2x7xf32> to vector<2x1xf32>
      %c0_90 = arith.constant 0 : index
      %c0_91 = arith.constant 0 : index
      %c2_92 = arith.constant 2 : index
      %138 = vector.load %arg9[%c0_90, %c0_91, %c2_92] : memref<1x2x358xf32, #tpu.memory_space<vmem>>, vector<1x2x256xf32>
      %139 = vector.shape_cast %137 : vector<2x1xf32> to vector<1x2x1xf32>
      %140 = vector.broadcast %139 : vector<1x2x1xf32> to vector<1x2x256xf32>
      %141 = arith.mulf %140, %138 : vector<1x2x256xf32>
      %142 = arith.addf %136, %141 : vector<1x2x256xf32>
      %143 = vector.extract_strided_slice %135 {offsets = [0, 1], sizes = [2, 1], strides = [1, 1]} : vector<2x7xf32> to vector<2x1xf32>
      %c0_93 = arith.constant 0 : index
      %c0_94 = arith.constant 0 : index
      %c18 = arith.constant 18 : index
      %144 = vector.load %arg9[%c0_93, %c0_94, %c18] : memref<1x2x358xf32, #tpu.memory_space<vmem>>, vector<1x2x256xf32>
      %145 = vector.shape_cast %143 : vector<2x1xf32> to vector<1x2x1xf32>
      %146 = vector.broadcast %145 : vector<1x2x1xf32> to vector<1x2x256xf32>
      %147 = arith.mulf %146, %144 : vector<1x2x256xf32>
      %148 = arith.addf %142, %147 : vector<1x2x256xf32>
      %149 = vector.extract_strided_slice %135 {offsets = [0, 2], sizes = [2, 1], strides = [1, 1]} : vector<2x7xf32> to vector<2x1xf32>
      %c0_95 = arith.constant 0 : index
      %c0_96 = arith.constant 0 : index
      %c34 = arith.constant 34 : index
      %150 = vector.load %arg9[%c0_95, %c0_96, %c34] : memref<1x2x358xf32, #tpu.memory_space<vmem>>, vector<1x2x256xf32>
      %151 = vector.shape_cast %149 : vector<2x1xf32> to vector<1x2x1xf32>
      %152 = vector.broadcast %151 : vector<1x2x1xf32> to vector<1x2x256xf32>
      %153 = arith.mulf %152, %150 : vector<1x2x256xf32>
      %154 = arith.addf %148, %153 : vector<1x2x256xf32>
      %155 = vector.extract_strided_slice %135 {offsets = [0, 3], sizes = [2, 1], strides = [1, 1]} : vector<2x7xf32> to vector<2x1xf32>
      %c0_97 = arith.constant 0 : index
      %c0_98 = arith.constant 0 : index
      %c50 = arith.constant 50 : index
      %156 = vector.load %arg9[%c0_97, %c0_98, %c50] : memref<1x2x358xf32, #tpu.memory_space<vmem>>, vector<1x2x256xf32>
      %157 = vector.shape_cast %155 : vector<2x1xf32> to vector<1x2x1xf32>
      %158 = vector.broadcast %157 : vector<1x2x1xf32> to vector<1x2x256xf32>
      %159 = arith.mulf %158, %156 : vector<1x2x256xf32>
      %160 = arith.addf %154, %159 : vector<1x2x256xf32>
      %161 = vector.extract_strided_slice %135 {offsets = [0, 4], sizes = [2, 1], strides = [1, 1]} : vector<2x7xf32> to vector<2x1xf32>
      %c0_99 = arith.constant 0 : index
      %c0_100 = arith.constant 0 : index
      %c66 = arith.constant 66 : index
      %162 = vector.load %arg9[%c0_99, %c0_100, %c66] : memref<1x2x358xf32, #tpu.memory_space<vmem>>, vector<1x2x256xf32>
      %163 = vector.shape_cast %161 : vector<2x1xf32> to vector<1x2x1xf32>
      %164 = vector.broadcast %163 : vector<1x2x1xf32> to vector<1x2x256xf32>
      %165 = arith.mulf %164, %162 : vector<1x2x256xf32>
      %166 = arith.addf %160, %165 : vector<1x2x256xf32>
      %167 = vector.extract_strided_slice %135 {offsets = [0, 5], sizes = [2, 1], strides = [1, 1]} : vector<2x7xf32> to vector<2x1xf32>
      %c0_101 = arith.constant 0 : index
      %c0_102 = arith.constant 0 : index
      %c82 = arith.constant 82 : index
      %168 = vector.load %arg9[%c0_101, %c0_102, %c82] : memref<1x2x358xf32, #tpu.memory_space<vmem>>, vector<1x2x256xf32>
      %169 = vector.shape_cast %167 : vector<2x1xf32> to vector<1x2x1xf32>
      %170 = vector.broadcast %169 : vector<1x2x1xf32> to vector<1x2x256xf32>
      %171 = arith.mulf %170, %168 : vector<1x2x256xf32>
      %172 = arith.addf %166, %171 : vector<1x2x256xf32>
      %173 = vector.extract_strided_slice %135 {offsets = [0, 6], sizes = [2, 1], strides = [1, 1]} : vector<2x7xf32> to vector<2x1xf32>
      %c0_103 = arith.constant 0 : index
      %c0_104 = arith.constant 0 : index
      %c98 = arith.constant 98 : index
      %174 = vector.load %arg9[%c0_103, %c0_104, %c98] : memref<1x2x358xf32, #tpu.memory_space<vmem>>, vector<1x2x256xf32>
      %175 = vector.shape_cast %173 : vector<2x1xf32> to vector<1x2x1xf32>
      %176 = vector.broadcast %175 : vector<1x2x1xf32> to vector<1x2x256xf32>
      %177 = arith.mulf %176, %174 : vector<1x2x256xf32>
      %178 = arith.addf %172, %177 : vector<1x2x256xf32>
      %c2_105 = arith.constant 2 : index
      %c0_106 = arith.constant 0 : index
      %179 = vector.load %arg4[%c2_105, %c0_106] : memref<7x256xf32, #tpu.memory_space<vmem>>, vector<1x256xf32>
      %180 = vector.shape_cast %179 : vector<1x256xf32> to vector<256xf32>
      %181 = vector.shape_cast %180 : vector<256xf32> to vector<1x1x256xf32>
      %182 = vector.broadcast %181 : vector<1x1x256xf32> to vector<1x2x256xf32>
      %183 = arith.mulf %182, %178 : vector<1x2x256xf32>
      %184 = arith.addf %134, %183 : vector<1x2x256xf32>
      %c0_107 = arith.constant 0 : index
      %c21 = arith.constant 21 : index
      %185 = vector.load %arg2[%c0_107, %c21] : memref<2x49xf32, #tpu.memory_space<vmem>>, vector<2x7xf32>
      %cst_108 = arith.constant 0.000000e+00 : f32
      %186 = vector.broadcast %cst_108 : f32 to vector<1x2x256xf32>
      %187 = vector.extract_strided_slice %185 {offsets = [0, 0], sizes = [2, 1], strides = [1, 1]} : vector<2x7xf32> to vector<2x1xf32>
      %c0_109 = arith.constant 0 : index
      %c0_110 = arith.constant 0 : index
      %c3_111 = arith.constant 3 : index
      %188 = vector.load %arg9[%c0_109, %c0_110, %c3_111] : memref<1x2x358xf32, #tpu.memory_space<vmem>>, vector<1x2x256xf32>
      %189 = vector.shape_cast %187 : vector<2x1xf32> to vector<1x2x1xf32>
      %190 = vector.broadcast %189 : vector<1x2x1xf32> to vector<1x2x256xf32>
      %191 = arith.mulf %190, %188 : vector<1x2x256xf32>
      %192 = arith.addf %186, %191 : vector<1x2x256xf32>
      %193 = vector.extract_strided_slice %185 {offsets = [0, 1], sizes = [2, 1], strides = [1, 1]} : vector<2x7xf32> to vector<2x1xf32>
      %c0_112 = arith.constant 0 : index
      %c0_113 = arith.constant 0 : index
      %c19 = arith.constant 19 : index
      %194 = vector.load %arg9[%c0_112, %c0_113, %c19] : memref<1x2x358xf32, #tpu.memory_space<vmem>>, vector<1x2x256xf32>
      %195 = vector.shape_cast %193 : vector<2x1xf32> to vector<1x2x1xf32>
      %196 = vector.broadcast %195 : vector<1x2x1xf32> to vector<1x2x256xf32>
      %197 = arith.mulf %196, %194 : vector<1x2x256xf32>
      %198 = arith.addf %192, %197 : vector<1x2x256xf32>
      %199 = vector.extract_strided_slice %185 {offsets = [0, 2], sizes = [2, 1], strides = [1, 1]} : vector<2x7xf32> to vector<2x1xf32>
      %c0_114 = arith.constant 0 : index
      %c0_115 = arith.constant 0 : index
      %c35 = arith.constant 35 : index
      %200 = vector.load %arg9[%c0_114, %c0_115, %c35] : memref<1x2x358xf32, #tpu.memory_space<vmem>>, vector<1x2x256xf32>
      %201 = vector.shape_cast %199 : vector<2x1xf32> to vector<1x2x1xf32>
      %202 = vector.broadcast %201 : vector<1x2x1xf32> to vector<1x2x256xf32>
      %203 = arith.mulf %202, %200 : vector<1x2x256xf32>
      %204 = arith.addf %198, %203 : vector<1x2x256xf32>
      %205 = vector.extract_strided_slice %185 {offsets = [0, 3], sizes = [2, 1], strides = [1, 1]} : vector<2x7xf32> to vector<2x1xf32>
      %c0_116 = arith.constant 0 : index
      %c0_117 = arith.constant 0 : index
      %c51_118 = arith.constant 51 : index
      %206 = vector.load %arg9[%c0_116, %c0_117, %c51_118] : memref<1x2x358xf32, #tpu.memory_space<vmem>>, vector<1x2x256xf32>
      %207 = vector.shape_cast %205 : vector<2x1xf32> to vector<1x2x1xf32>
      %208 = vector.broadcast %207 : vector<1x2x1xf32> to vector<1x2x256xf32>
      %209 = arith.mulf %208, %206 : vector<1x2x256xf32>
      %210 = arith.addf %204, %209 : vector<1x2x256xf32>
      %211 = vector.extract_strided_slice %185 {offsets = [0, 4], sizes = [2, 1], strides = [1, 1]} : vector<2x7xf32> to vector<2x1xf32>
      %c0_119 = arith.constant 0 : index
      %c0_120 = arith.constant 0 : index
      %c67 = arith.constant 67 : index
      %212 = vector.load %arg9[%c0_119, %c0_120, %c67] : memref<1x2x358xf32, #tpu.memory_space<vmem>>, vector<1x2x256xf32>
      %213 = vector.shape_cast %211 : vector<2x1xf32> to vector<1x2x1xf32>
      %214 = vector.broadcast %213 : vector<1x2x1xf32> to vector<1x2x256xf32>
      %215 = arith.mulf %214, %212 : vector<1x2x256xf32>
      %216 = arith.addf %210, %215 : vector<1x2x256xf32>
      %217 = vector.extract_strided_slice %185 {offsets = [0, 5], sizes = [2, 1], strides = [1, 1]} : vector<2x7xf32> to vector<2x1xf32>
      %c0_121 = arith.constant 0 : index
      %c0_122 = arith.constant 0 : index
      %c83 = arith.constant 83 : index
      %218 = vector.load %arg9[%c0_121, %c0_122, %c83] : memref<1x2x358xf32, #tpu.memory_space<vmem>>, vector<1x2x256xf32>
      %219 = vector.shape_cast %217 : vector<2x1xf32> to vector<1x2x1xf32>
      %220 = vector.broadcast %219 : vector<1x2x1xf32> to vector<1x2x256xf32>
      %221 = arith.mulf %220, %218 : vector<1x2x256xf32>
      %222 = arith.addf %216, %221 : vector<1x2x256xf32>
      %223 = vector.extract_strided_slice %185 {offsets = [0, 6], sizes = [2, 1], strides = [1, 1]} : vector<2x7xf32> to vector<2x1xf32>
      %c0_123 = arith.constant 0 : index
      %c0_124 = arith.constant 0 : index
      %c99 = arith.constant 99 : index
      %224 = vector.load %arg9[%c0_123, %c0_124, %c99] : memref<1x2x358xf32, #tpu.memory_space<vmem>>, vector<1x2x256xf32>
      %225 = vector.shape_cast %223 : vector<2x1xf32> to vector<1x2x1xf32>
      %226 = vector.broadcast %225 : vector<1x2x1xf32> to vector<1x2x256xf32>
      %227 = arith.mulf %226, %224 : vector<1x2x256xf32>
      %228 = arith.addf %222, %227 : vector<1x2x256xf32>
      %c3_125 = arith.constant 3 : index
      %c0_126 = arith.constant 0 : index
      %229 = vector.load %arg4[%c3_125, %c0_126] : memref<7x256xf32, #tpu.memory_space<vmem>>, vector<1x256xf32>
      %230 = vector.shape_cast %229 : vector<1x256xf32> to vector<256xf32>
      %231 = vector.shape_cast %230 : vector<256xf32> to vector<1x1x256xf32>
      %232 = vector.broadcast %231 : vector<1x1x256xf32> to vector<1x2x256xf32>
      %233 = arith.mulf %232, %228 : vector<1x2x256xf32>
      %234 = arith.addf %184, %233 : vector<1x2x256xf32>
      %c0_127 = arith.constant 0 : index
      %c28 = arith.constant 28 : index
      %235 = vector.load %arg2[%c0_127, %c28] : memref<2x49xf32, #tpu.memory_space<vmem>>, vector<2x7xf32>
      %cst_128 = arith.constant 0.000000e+00 : f32
      %236 = vector.broadcast %cst_128 : f32 to vector<1x2x256xf32>
      %237 = vector.extract_strided_slice %235 {offsets = [0, 0], sizes = [2, 1], strides = [1, 1]} : vector<2x7xf32> to vector<2x1xf32>
      %c0_129 = arith.constant 0 : index
      %c0_130 = arith.constant 0 : index
      %c4 = arith.constant 4 : index
      %238 = vector.load %arg9[%c0_129, %c0_130, %c4] : memref<1x2x358xf32, #tpu.memory_space<vmem>>, vector<1x2x256xf32>
      %239 = vector.shape_cast %237 : vector<2x1xf32> to vector<1x2x1xf32>
      %240 = vector.broadcast %239 : vector<1x2x1xf32> to vector<1x2x256xf32>
      %241 = arith.mulf %240, %238 : vector<1x2x256xf32>
      %242 = arith.addf %236, %241 : vector<1x2x256xf32>
      %243 = vector.extract_strided_slice %235 {offsets = [0, 1], sizes = [2, 1], strides = [1, 1]} : vector<2x7xf32> to vector<2x1xf32>
      %c0_131 = arith.constant 0 : index
      %c0_132 = arith.constant 0 : index
      %c20 = arith.constant 20 : index
      %244 = vector.load %arg9[%c0_131, %c0_132, %c20] : memref<1x2x358xf32, #tpu.memory_space<vmem>>, vector<1x2x256xf32>
      %245 = vector.shape_cast %243 : vector<2x1xf32> to vector<1x2x1xf32>
      %246 = vector.broadcast %245 : vector<1x2x1xf32> to vector<1x2x256xf32>
      %247 = arith.mulf %246, %244 : vector<1x2x256xf32>
      %248 = arith.addf %242, %247 : vector<1x2x256xf32>
      %249 = vector.extract_strided_slice %235 {offsets = [0, 2], sizes = [2, 1], strides = [1, 1]} : vector<2x7xf32> to vector<2x1xf32>
      %c0_133 = arith.constant 0 : index
      %c0_134 = arith.constant 0 : index
      %c36 = arith.constant 36 : index
      %250 = vector.load %arg9[%c0_133, %c0_134, %c36] : memref<1x2x358xf32, #tpu.memory_space<vmem>>, vector<1x2x256xf32>
      %251 = vector.shape_cast %249 : vector<2x1xf32> to vector<1x2x1xf32>
      %252 = vector.broadcast %251 : vector<1x2x1xf32> to vector<1x2x256xf32>
      %253 = arith.mulf %252, %250 : vector<1x2x256xf32>
      %254 = arith.addf %248, %253 : vector<1x2x256xf32>
      %255 = vector.extract_strided_slice %235 {offsets = [0, 3], sizes = [2, 1], strides = [1, 1]} : vector<2x7xf32> to vector<2x1xf32>
      %c0_135 = arith.constant 0 : index
      %c0_136 = arith.constant 0 : index
      %c52 = arith.constant 52 : index
      %256 = vector.load %arg9[%c0_135, %c0_136, %c52] : memref<1x2x358xf32, #tpu.memory_space<vmem>>, vector<1x2x256xf32>
      %257 = vector.shape_cast %255 : vector<2x1xf32> to vector<1x2x1xf32>
      %258 = vector.broadcast %257 : vector<1x2x1xf32> to vector<1x2x256xf32>
      %259 = arith.mulf %258, %256 : vector<1x2x256xf32>
      %260 = arith.addf %254, %259 : vector<1x2x256xf32>
      %261 = vector.extract_strided_slice %235 {offsets = [0, 4], sizes = [2, 1], strides = [1, 1]} : vector<2x7xf32> to vector<2x1xf32>
      %c0_137 = arith.constant 0 : index
      %c0_138 = arith.constant 0 : index
      %c68 = arith.constant 68 : index
      %262 = vector.load %arg9[%c0_137, %c0_138, %c68] : memref<1x2x358xf32, #tpu.memory_space<vmem>>, vector<1x2x256xf32>
      %263 = vector.shape_cast %261 : vector<2x1xf32> to vector<1x2x1xf32>
      %264 = vector.broadcast %263 : vector<1x2x1xf32> to vector<1x2x256xf32>
      %265 = arith.mulf %264, %262 : vector<1x2x256xf32>
      %266 = arith.addf %260, %265 : vector<1x2x256xf32>
      %267 = vector.extract_strided_slice %235 {offsets = [0, 5], sizes = [2, 1], strides = [1, 1]} : vector<2x7xf32> to vector<2x1xf32>
      %c0_139 = arith.constant 0 : index
      %c0_140 = arith.constant 0 : index
      %c84 = arith.constant 84 : index
      %268 = vector.load %arg9[%c0_139, %c0_140, %c84] : memref<1x2x358xf32, #tpu.memory_space<vmem>>, vector<1x2x256xf32>
      %269 = vector.shape_cast %267 : vector<2x1xf32> to vector<1x2x1xf32>
      %270 = vector.broadcast %269 : vector<1x2x1xf32> to vector<1x2x256xf32>
      %271 = arith.mulf %270, %268 : vector<1x2x256xf32>
      %272 = arith.addf %266, %271 : vector<1x2x256xf32>
      %273 = vector.extract_strided_slice %235 {offsets = [0, 6], sizes = [2, 1], strides = [1, 1]} : vector<2x7xf32> to vector<2x1xf32>
      %c0_141 = arith.constant 0 : index
      %c0_142 = arith.constant 0 : index
      %c100 = arith.constant 100 : index
      %274 = vector.load %arg9[%c0_141, %c0_142, %c100] : memref<1x2x358xf32, #tpu.memory_space<vmem>>, vector<1x2x256xf32>
      %275 = vector.shape_cast %273 : vector<2x1xf32> to vector<1x2x1xf32>
      %276 = vector.broadcast %275 : vector<1x2x1xf32> to vector<1x2x256xf32>
      %277 = arith.mulf %276, %274 : vector<1x2x256xf32>
      %278 = arith.addf %272, %277 : vector<1x2x256xf32>
      %c4_143 = arith.constant 4 : index
      %c0_144 = arith.constant 0 : index
      %279 = vector.load %arg4[%c4_143, %c0_144] : memref<7x256xf32, #tpu.memory_space<vmem>>, vector<1x256xf32>
      %280 = vector.shape_cast %279 : vector<1x256xf32> to vector<256xf32>
      %281 = vector.shape_cast %280 : vector<256xf32> to vector<1x1x256xf32>
      %282 = vector.broadcast %281 : vector<1x1x256xf32> to vector<1x2x256xf32>
      %283 = arith.mulf %282, %278 : vector<1x2x256xf32>
      %284 = arith.addf %234, %283 : vector<1x2x256xf32>
      %c0_145 = arith.constant 0 : index
      %c35_146 = arith.constant 35 : index
      %285 = vector.load %arg2[%c0_145, %c35_146] : memref<2x49xf32, #tpu.memory_space<vmem>>, vector<2x7xf32>
      %cst_147 = arith.constant 0.000000e+00 : f32
      %286 = vector.broadcast %cst_147 : f32 to vector<1x2x256xf32>
      %287 = vector.extract_strided_slice %285 {offsets = [0, 0], sizes = [2, 1], strides = [1, 1]} : vector<2x7xf32> to vector<2x1xf32>
      %c0_148 = arith.constant 0 : index
      %c0_149 = arith.constant 0 : index
      %c5 = arith.constant 5 : index
      %288 = vector.load %arg9[%c0_148, %c0_149, %c5] : memref<1x2x358xf32, #tpu.memory_space<vmem>>, vector<1x2x256xf32>
      %289 = vector.shape_cast %287 : vector<2x1xf32> to vector<1x2x1xf32>
      %290 = vector.broadcast %289 : vector<1x2x1xf32> to vector<1x2x256xf32>
      %291 = arith.mulf %290, %288 : vector<1x2x256xf32>
      %292 = arith.addf %286, %291 : vector<1x2x256xf32>
      %293 = vector.extract_strided_slice %285 {offsets = [0, 1], sizes = [2, 1], strides = [1, 1]} : vector<2x7xf32> to vector<2x1xf32>
      %c0_150 = arith.constant 0 : index
      %c0_151 = arith.constant 0 : index
      %c21_152 = arith.constant 21 : index
      %294 = vector.load %arg9[%c0_150, %c0_151, %c21_152] : memref<1x2x358xf32, #tpu.memory_space<vmem>>, vector<1x2x256xf32>
      %295 = vector.shape_cast %293 : vector<2x1xf32> to vector<1x2x1xf32>
      %296 = vector.broadcast %295 : vector<1x2x1xf32> to vector<1x2x256xf32>
      %297 = arith.mulf %296, %294 : vector<1x2x256xf32>
      %298 = arith.addf %292, %297 : vector<1x2x256xf32>
      %299 = vector.extract_strided_slice %285 {offsets = [0, 2], sizes = [2, 1], strides = [1, 1]} : vector<2x7xf32> to vector<2x1xf32>
      %c0_153 = arith.constant 0 : index
      %c0_154 = arith.constant 0 : index
      %c37 = arith.constant 37 : index
      %300 = vector.load %arg9[%c0_153, %c0_154, %c37] : memref<1x2x358xf32, #tpu.memory_space<vmem>>, vector<1x2x256xf32>
      %301 = vector.shape_cast %299 : vector<2x1xf32> to vector<1x2x1xf32>
      %302 = vector.broadcast %301 : vector<1x2x1xf32> to vector<1x2x256xf32>
      %303 = arith.mulf %302, %300 : vector<1x2x256xf32>
      %304 = arith.addf %298, %303 : vector<1x2x256xf32>
      %305 = vector.extract_strided_slice %285 {offsets = [0, 3], sizes = [2, 1], strides = [1, 1]} : vector<2x7xf32> to vector<2x1xf32>
      %c0_155 = arith.constant 0 : index
      %c0_156 = arith.constant 0 : index
      %c53 = arith.constant 53 : index
      %306 = vector.load %arg9[%c0_155, %c0_156, %c53] : memref<1x2x358xf32, #tpu.memory_space<vmem>>, vector<1x2x256xf32>
      %307 = vector.shape_cast %305 : vector<2x1xf32> to vector<1x2x1xf32>
      %308 = vector.broadcast %307 : vector<1x2x1xf32> to vector<1x2x256xf32>
      %309 = arith.mulf %308, %306 : vector<1x2x256xf32>
      %310 = arith.addf %304, %309 : vector<1x2x256xf32>
      %311 = vector.extract_strided_slice %285 {offsets = [0, 4], sizes = [2, 1], strides = [1, 1]} : vector<2x7xf32> to vector<2x1xf32>
      %c0_157 = arith.constant 0 : index
      %c0_158 = arith.constant 0 : index
      %c69 = arith.constant 69 : index
      %312 = vector.load %arg9[%c0_157, %c0_158, %c69] : memref<1x2x358xf32, #tpu.memory_space<vmem>>, vector<1x2x256xf32>
      %313 = vector.shape_cast %311 : vector<2x1xf32> to vector<1x2x1xf32>
      %314 = vector.broadcast %313 : vector<1x2x1xf32> to vector<1x2x256xf32>
      %315 = arith.mulf %314, %312 : vector<1x2x256xf32>
      %316 = arith.addf %310, %315 : vector<1x2x256xf32>
      %317 = vector.extract_strided_slice %285 {offsets = [0, 5], sizes = [2, 1], strides = [1, 1]} : vector<2x7xf32> to vector<2x1xf32>
      %c0_159 = arith.constant 0 : index
      %c0_160 = arith.constant 0 : index
      %c85 = arith.constant 85 : index
      %318 = vector.load %arg9[%c0_159, %c0_160, %c85] : memref<1x2x358xf32, #tpu.memory_space<vmem>>, vector<1x2x256xf32>
      %319 = vector.shape_cast %317 : vector<2x1xf32> to vector<1x2x1xf32>
      %320 = vector.broadcast %319 : vector<1x2x1xf32> to vector<1x2x256xf32>
      %321 = arith.mulf %320, %318 : vector<1x2x256xf32>
      %322 = arith.addf %316, %321 : vector<1x2x256xf32>
      %323 = vector.extract_strided_slice %285 {offsets = [0, 6], sizes = [2, 1], strides = [1, 1]} : vector<2x7xf32> to vector<2x1xf32>
      %c0_161 = arith.constant 0 : index
      %c0_162 = arith.constant 0 : index
      %c101 = arith.constant 101 : index
      %324 = vector.load %arg9[%c0_161, %c0_162, %c101] : memref<1x2x358xf32, #tpu.memory_space<vmem>>, vector<1x2x256xf32>
      %325 = vector.shape_cast %323 : vector<2x1xf32> to vector<1x2x1xf32>
      %326 = vector.broadcast %325 : vector<1x2x1xf32> to vector<1x2x256xf32>
      %327 = arith.mulf %326, %324 : vector<1x2x256xf32>
      %328 = arith.addf %322, %327 : vector<1x2x256xf32>
      %c5_163 = arith.constant 5 : index
      %c0_164 = arith.constant 0 : index
      %329 = vector.load %arg4[%c5_163, %c0_164] : memref<7x256xf32, #tpu.memory_space<vmem>>, vector<1x256xf32>
      %330 = vector.shape_cast %329 : vector<1x256xf32> to vector<256xf32>
      %331 = vector.shape_cast %330 : vector<256xf32> to vector<1x1x256xf32>
      %332 = vector.broadcast %331 : vector<1x1x256xf32> to vector<1x2x256xf32>
      %333 = arith.mulf %332, %328 : vector<1x2x256xf32>
      %334 = arith.addf %284, %333 : vector<1x2x256xf32>
      %c0_165 = arith.constant 0 : index
      %c42 = arith.constant 42 : index
      %335 = vector.load %arg2[%c0_165, %c42] : memref<2x49xf32, #tpu.memory_space<vmem>>, vector<2x7xf32>
      %cst_166 = arith.constant 0.000000e+00 : f32
      %336 = vector.broadcast %cst_166 : f32 to vector<1x2x256xf32>
      %337 = vector.extract_strided_slice %335 {offsets = [0, 0], sizes = [2, 1], strides = [1, 1]} : vector<2x7xf32> to vector<2x1xf32>
      %c0_167 = arith.constant 0 : index
      %c0_168 = arith.constant 0 : index
      %c6 = arith.constant 6 : index
      %338 = vector.load %arg9[%c0_167, %c0_168, %c6] : memref<1x2x358xf32, #tpu.memory_space<vmem>>, vector<1x2x256xf32>
      %339 = vector.shape_cast %337 : vector<2x1xf32> to vector<1x2x1xf32>
      %340 = vector.broadcast %339 : vector<1x2x1xf32> to vector<1x2x256xf32>
      %341 = arith.mulf %340, %338 : vector<1x2x256xf32>
      %342 = arith.addf %336, %341 : vector<1x2x256xf32>
      %343 = vector.extract_strided_slice %335 {offsets = [0, 1], sizes = [2, 1], strides = [1, 1]} : vector<2x7xf32> to vector<2x1xf32>
      %c0_169 = arith.constant 0 : index
      %c0_170 = arith.constant 0 : index
      %c22 = arith.constant 22 : index
      %344 = vector.load %arg9[%c0_169, %c0_170, %c22] : memref<1x2x358xf32, #tpu.memory_space<vmem>>, vector<1x2x256xf32>
      %345 = vector.shape_cast %343 : vector<2x1xf32> to vector<1x2x1xf32>
      %346 = vector.broadcast %345 : vector<1x2x1xf32> to vector<1x2x256xf32>
      %347 = arith.mulf %346, %344 : vector<1x2x256xf32>
      %348 = arith.addf %342, %347 : vector<1x2x256xf32>
      %349 = vector.extract_strided_slice %335 {offsets = [0, 2], sizes = [2, 1], strides = [1, 1]} : vector<2x7xf32> to vector<2x1xf32>
      %c0_171 = arith.constant 0 : index
      %c0_172 = arith.constant 0 : index
      %c38 = arith.constant 38 : index
      %350 = vector.load %arg9[%c0_171, %c0_172, %c38] : memref<1x2x358xf32, #tpu.memory_space<vmem>>, vector<1x2x256xf32>
      %351 = vector.shape_cast %349 : vector<2x1xf32> to vector<1x2x1xf32>
      %352 = vector.broadcast %351 : vector<1x2x1xf32> to vector<1x2x256xf32>
      %353 = arith.mulf %352, %350 : vector<1x2x256xf32>
      %354 = arith.addf %348, %353 : vector<1x2x256xf32>
      %355 = vector.extract_strided_slice %335 {offsets = [0, 3], sizes = [2, 1], strides = [1, 1]} : vector<2x7xf32> to vector<2x1xf32>
      %c0_173 = arith.constant 0 : index
      %c0_174 = arith.constant 0 : index
      %c54 = arith.constant 54 : index
      %356 = vector.load %arg9[%c0_173, %c0_174, %c54] : memref<1x2x358xf32, #tpu.memory_space<vmem>>, vector<1x2x256xf32>
      %357 = vector.shape_cast %355 : vector<2x1xf32> to vector<1x2x1xf32>
      %358 = vector.broadcast %357 : vector<1x2x1xf32> to vector<1x2x256xf32>
      %359 = arith.mulf %358, %356 : vector<1x2x256xf32>
      %360 = arith.addf %354, %359 : vector<1x2x256xf32>
      %361 = vector.extract_strided_slice %335 {offsets = [0, 4], sizes = [2, 1], strides = [1, 1]} : vector<2x7xf32> to vector<2x1xf32>
      %c0_175 = arith.constant 0 : index
      %c0_176 = arith.constant 0 : index
      %c70 = arith.constant 70 : index
      %362 = vector.load %arg9[%c0_175, %c0_176, %c70] : memref<1x2x358xf32, #tpu.memory_space<vmem>>, vector<1x2x256xf32>
      %363 = vector.shape_cast %361 : vector<2x1xf32> to vector<1x2x1xf32>
      %364 = vector.broadcast %363 : vector<1x2x1xf32> to vector<1x2x256xf32>
      %365 = arith.mulf %364, %362 : vector<1x2x256xf32>
      %366 = arith.addf %360, %365 : vector<1x2x256xf32>
      %367 = vector.extract_strided_slice %335 {offsets = [0, 5], sizes = [2, 1], strides = [1, 1]} : vector<2x7xf32> to vector<2x1xf32>
      %c0_177 = arith.constant 0 : index
      %c0_178 = arith.constant 0 : index
      %c86 = arith.constant 86 : index
      %368 = vector.load %arg9[%c0_177, %c0_178, %c86] : memref<1x2x358xf32, #tpu.memory_space<vmem>>, vector<1x2x256xf32>
      %369 = vector.shape_cast %367 : vector<2x1xf32> to vector<1x2x1xf32>
      %370 = vector.broadcast %369 : vector<1x2x1xf32> to vector<1x2x256xf32>
      %371 = arith.mulf %370, %368 : vector<1x2x256xf32>
      %372 = arith.addf %366, %371 : vector<1x2x256xf32>
      %373 = vector.extract_strided_slice %335 {offsets = [0, 6], sizes = [2, 1], strides = [1, 1]} : vector<2x7xf32> to vector<2x1xf32>
      %c0_179 = arith.constant 0 : index
      %c0_180 = arith.constant 0 : index
      %c102 = arith.constant 102 : index
      %374 = vector.load %arg9[%c0_179, %c0_180, %c102] : memref<1x2x358xf32, #tpu.memory_space<vmem>>, vector<1x2x256xf32>
      %375 = vector.shape_cast %373 : vector<2x1xf32> to vector<1x2x1xf32>
      %376 = vector.broadcast %375 : vector<1x2x1xf32> to vector<1x2x256xf32>
      %377 = arith.mulf %376, %374 : vector<1x2x256xf32>
      %378 = arith.addf %372, %377 : vector<1x2x256xf32>
      %c6_181 = arith.constant 6 : index
      %c0_182 = arith.constant 0 : index
      %379 = vector.load %arg4[%c6_181, %c0_182] : memref<7x256xf32, #tpu.memory_space<vmem>>, vector<1x256xf32>
      %380 = vector.shape_cast %379 : vector<1x256xf32> to vector<256xf32>
      %381 = vector.shape_cast %380 : vector<256xf32> to vector<1x1x256xf32>
      %382 = vector.broadcast %381 : vector<1x1x256xf32> to vector<1x2x256xf32>
      %383 = arith.mulf %382, %378 : vector<1x2x256xf32>
      %384 = arith.addf %334, %383 : vector<1x2x256xf32>
      %385 = vector.extract_strided_slice %384 {offsets = [0, 0, 0], sizes = [1, 1, 256], strides = [1, 1, 1]} : vector<1x2x256xf32> to vector<1x1x256xf32>
      %386 = vector.extract_strided_slice %384 {offsets = [0, 1, 0], sizes = [1, 1, 256], strides = [1, 1, 1]} : vector<1x2x256xf32> to vector<1x1x256xf32>
      %387 = arith.addf %385, %386 : vector<1x1x256xf32>
      %388 = vector.broadcast %13 : f32 to vector<1x1x256xf32>
      %389 = arith.addf %387, %388 : vector<1x1x256xf32>
      %390 = arith.negf %389 : vector<1x1x256xf32>
      %391 = math.exp %390 : vector<1x1x256xf32>
      %cst_183 = arith.constant 1.000000e+00 : f32
      %392 = vector.broadcast %cst_183 : f32 to vector<1x1x256xf32>
      %393 = arith.addf %392, %391 : vector<1x1x256xf32>
      %394 = arith.divf %392, %393 : vector<1x1x256xf32>
      %395 = arith.mulf %394, %389 : vector<1x1x256xf32>
      %c0_184 = arith.constant 0 : index
      %c0_185 = arith.constant 0 : index
      %c0_186 = arith.constant 0 : index
      %396 = vector.load %arg6[%c0_184, %c0_185, %c0_186] : memref<1x1x256xf32, #tpu.memory_space<vmem>>, vector<1x1x256xf32>
      tpu.vector_store %arg6[%c0_184, %c0_185, %c0_186], %395 {strides = array<i32>} : memref<1x1x256xf32, #tpu.memory_space<vmem>>, vector<1x1x256xf32>,
    } else {
    }
    return
  }
  func.func @transform_0(%arg0: i32, %arg1: i32) -> (i32, i32) {
    %c0_i32 = arith.constant 0 : i32
    %c0_i32_0 = arith.constant 0 : i32
    %c0_i32_1 = arith.constant 0 : i32
    return %c0_i32, %c0_i32_0 : i32, i32
  }
  func.func @transform_1(%arg0: i32, %arg1: i32) -> i32 {
    %c0_i32 = arith.constant 0 : i32
    %c0_i32_0 = arith.constant 0 : i32
    return %c0_i32 : i32
  }
  func.func @transform_2(%arg0: i32, %arg1: i32) -> (i32, i32) {
    %c0_i32 = arith.constant 0 : i32
    %c0_i32_0 = arith.constant 0 : i32
    %c0_i32_1 = arith.constant 0 : i32
    return %c0_i32, %c0_i32_0 : i32, i32
  }
  func.func @transform_3(%arg0: i32, %arg1: i32) -> (i32, i32, i32) {
    %c0_i32 = arith.constant 0 : i32
    %c0_i32_0 = arith.constant 0 : i32
    return %arg0, %arg1, %c0_i32 : i32, i32, i32
  }
  func.func @transform_4(%arg0: i32, %arg1: i32) -> (i32, i32, i32) {
    %c0_i32 = arith.constant 0 : i32
    %c0_i32_0 = arith.constant 0 : i32
    %c0_i32_1 = arith.constant 0 : i32
    return %arg0, %c0_i32, %c0_i32_0 : i32, i32, i32
  }
}

</mosaic_0001>

<bundles_post_ra>
// kernel: tpu_custom_call.1
= control target key start
LH: loop header
LB: loop body
LE: loop exit
PB: predicated region body
PF: predicated region fallthrough
CT: control target
= control target key end

     0   :  { %s4526_s0 = inlined_call_operand.vmem [shape: f32[2,49], index: 0, kind: input, shape index: {}]   ;;  %s4527_s1 = inlined_call_operand.<no memory space> [shape: f32[1], index: 1, kind: input, shape index: {}]   ;;  %s4528_s2 = inlined_call_operand.hbm [shape: f32[7,256], index: 2, kind: input, shape index: {}]   ;;  %s4529_s3 = inlined_call_operand.hbm [shape: f32[2,4,256], index: 3, kind: input, shape index: {}]   ;;  %s4530_s4 = inlined_call_operand.hbm [shape: f32[2,1,256], index: 4, kind: output, shape index: {}]  }
   0x1   :  { %9 = sst [smem:[#allocation5]] %s4527_s1 }
   0x2   :  { %10 = vsyncpa [#allocation7], 0 }
   0x3   :  { %11 = vsyncpa [#allocation10], 0 }
   0x4   :  { %13 = vsyncpa [#allocation10 + $0x1], 0 }
   0x5   :  { %14 = vsyncpa [#allocation8], 0 }
   0x6   :  { %16 = vsyncpa [#allocation8 + $0x1], 0  ;;  %s2965_s17 = smov 0   ;;  %s2967_s18 = smov 0  }
   0x7   :  { %s2969_s19 = smov 0   ;;  %s2971_s20 = smov 0  }
   0x8   :  { %s2973_s21 = smov 0   ;;  %s2975_s22 = smov 0  }
   0x9 LB: > { %s2391_s1 = sadd.s32 4294967295, %s2831_s22   ;;  %s2392_s23 = sadd.s32 4294967294, %s2831_s22   ;;  %s2831_s22 = sphi %s2975_s22, %s22_s22   ;;  %s2827_s21 = sphi %s2973_s21, %s4863_s21   ;;  %s2823_s20 = sphi %s2971_s20, %s4862_s20   ;;  %s2819_s19 = sphi %s2969_s19, %s4861_s19   ;;  %s2815_s18 = sphi %s2967_s18, %s4860_s18   ;;  %s2811_s17 = sphi %s2965_s17, %s4859_s17  }
   0xa   : > { %p119_p0 = scmp.ne.s32.totalorder %s2815_s18, %s2811_s17  ;;  %p2999_p1 = scmp.eq.s32.totalorder %s2391_s1, 0 }
   0xb   : > { %p3003_p2 = scmp.eq.s32.totalorder %s2391_s1, 1  ;;  %p149_p3 = scmp.eq.s32.totalorder %s2392_s23, 1 }
   0xc   : > { %p3009_p4 = por %p2999_p1, %p119_p0  ;;  %p2393_p5 = scmp.ge.s32.totalorder %s2831_s22, 1 }
   0xd   : > { %p3014_p6 = por %p149_p3, %p119_p0  ;;  %p156_p7 = scmp.lt.s32.totalorder %s2831_s22, 3 }
   0xe   : > { %s4611_s26 = scalar_select %p3009_p4, 1, 0 }
   0xf   : > { %s4612_s27 = scalar_select %p3014_p6, 1, 0 }
  0x10   : > { %p3019_p8 = pnand %p2393_p5, %p156_p7  ;;  %s2833_s29 = smov [#allocation6]  }
  0x11   : > { %s175_s30 = sshll.u32 %s2833_s29, 4  ;;  %s34_s6 = sadd.s32 1, %s2827_s21  ;;  %s176_s30 = int_to_ptr.vmem [resolvable:$true] %s175_s30 }
  0x12   : > { %p2421_p10 = pneg %p3019_p8  ;;  %s106_s7 = sadd.s32 1, %s2819_s19 }
  0x13   : > { %p36_p12 = scmp.ge.s32.totalorder %s34_s6, 2  ;;  %s2704_s8 = scalar_lea.vmem %s176_s30, 256 }
  0x14   : > { %p3028_p11 = pnand %p2421_p10, %p2999_p1  ;;  %p2705_p0 = scmp.ne.s32.totalorder %s176_s30, %s2704_s8 }
  0x15   : > { %p2712_p7 = scmp.lt.s32.totalorder %s176_s30, %s176_s30  ;;  %p2713_p6 = scmp.lt.s32.totalorder %s2704_s8, %s2704_s8 }
  0x16   : > { %p2695_p13 = pneg %p3028_p11 }
  0x17   : > { %p2714_p9 = por %p2713_p6, %p2712_p7 }
  0x18   : > { %p2707_p3 = pnand %p2705_p0, %p2695_p13 }
  0x1a   : > { %p2708_p5 = pneg %p2707_p3 }
  0x1c   : > { %p2715_p4 = pnand %p2714_p9, %p2708_p5 }
  0x1e   : > { %2718 = shalt.err (!%p2715_p4)
}
  0x1f   : > { %2424 = dma.hbm_to_vmem [thread:$0]  (!%p3028_p11), %s4528_s2, 256, %s176_s30, [#allocation7]  }
  0x20   : > { %s4865_s6 = smov (%p36_p12, %s34_s6), 0  ;;  %p113_p6 = scmp.ne.s32.totalorder %s2819_s19, %s2815_s18 }
  0x21   : > { %p114_p4 = scmp.eq.s32.totalorder %s2831_s22, 0  ;;  %s101_s11 = ssub.s32 %s2827_s21, %s4865_s6 }
  0x22   : > { %p2434_p9 = scmp.lt.s32.totalorder %s2831_s22, 2  ;;  %p104_p10 = scmp.eq.s32.totalorder %s101_s11, 0 }
  0x23   : > { %p115_p13 = por %p114_p4, %p113_p6  ;;  %p3051_p0 = por %p3003_p2, %p113_p6 }
  0x24   : > { %s186_s13 = sand.u32 1, %s2819_s19   ;;  %s2411_s16 = sshll.u32 %s2827_s21, 7 }
  0x25   : > { %s3057_s14 = scalar_select %p104_p10, %s2819_s19, %s106_s7  }
  0x26   : > { %s2396_s15 = sshll.u32 %s186_s13, 3  ;;  %s198_s29 = scalar_lea.hbm %s4529_s3, %s2411_s16 }
  0x27   : > { %s190_s30 = scalar_lea.vmem [#allocation9], %s2396_s15  ;;  %p3063_p11 = pnand %p2434_p9, %p115_p13 }
  0x28   : > { %s200_s5 = sshll.u32 %s190_s30, 4  ;;  %s187_s25 = scalar_lea.sflag [#allocation10], %s186_s13  ;;  %s201_s5 = int_to_ptr.vmem [resolvable:$true] %s200_s5 }
  0x29   : > { %p2721_p2 = pneg %p3063_p11  ;;  %s2732_s9 = scalar_lea.vmem %s201_s5, 128 }
  0x2a   : > { %p2733_p12 = scmp.ne.s32.totalorder %s201_s5, %s2732_s9  ;;  %s2834_s7 = smov [#allocation9]  }
  0x2b   : > { %s2737_s10 = sshll.u32 %s2834_s7, 4  ;;  %s2738_s10 = int_to_ptr.vmem [resolvable:$false] %s2737_s10 }
  0x2c   : > { %p2735_p3 = pnand %p2733_p12, %p2721_p2  ;;  %s2739_s11 = scalar_lea.vmem %s2738_s10, 256 }
  0x2d   : > { %p2740_p7 = scmp.lt.s32.totalorder %s201_s5, %s2738_s10  ;;  %p2741_p6 = scmp.lt.s32.totalorder %s2739_s11, %s2732_s9 }
  0x2e   : > { %p2736_p5 = pneg %p2735_p3 }
  0x2f   : > { %p2742_p4 = por %p2741_p6, %p2740_p7 }
  0x31   : > { %p2743_p10 = pnand %p2742_p4, %p2736_p5 }
  0x33   : > { %2746 = shalt.err (!%p2743_p10)
}
  0x34   : > { %2428 = dma.hbm_to_vmem [thread:$0]  (!%p3063_p11), %s198_s29, 128, %s201_s5, %s187_s25  }
  0x35   : > { %209 = sbr.rel (%p3019_p8) target bundleno = 774 (0x306), region = 36 }
  0x3a   : > { %2798 = dma.done.wait (%p2999_p1), [#allocation7], 256  }
  0x3b   : > { %2800 = vsyncadd (%p2999_p1), [#allocation7], 4294967040  ;;  %s3078_s13 = sand.u32 1, %s2815_s18   ;;  %p4617_p9 = scmp.ne.s32.totalorder %s4611_s26, 0 }
  0x3c   : > { %s2401_s15 = sshll.u32 %s3078_s13, 3  ;;  %s216_s16 = scalar_lea.sflag [#allocation10], %s3078_s13 }
  0x3d   : > { %s219_s1 = scalar_lea.vmem [#allocation9], %s2401_s15 }
  0x3e   : > { %2802 = dma.done.wait (%p4617_p9), %s216_s16, 128  }
  0x3f   : > { %2804 = vsyncadd (%p4617_p9), %s216_s16, 4294967168  ;;  %v2835_v0 = vmov 0   ;;  %vm261_vm0 = vcmask 1041408   ;;  %vm262_vm1 = vcmask 1043458   ;;  %vm264_vm2 = vcmask 832516   ;;  %v250_v1 = vld [vmem:[%s219_s1] sm:$0xff] }
  0x40   : > { %2588 = vset.pattern.permute.xlu1 %v2835_v0  ;;  %vm263_vm3 = vmor %vm262_vm1, %vm261_vm0  ;;  %v308_v2 = vld [vmem:[%s4526_s0] sm:$0x3]  ;;  %v2836_v3 = vmov 0.0   ;;  %256 = vst [vmem:[#allocation3] sm:$0xff] %v250_v1  ;;  %v2837_v4 = vmov 1   ;;  %v2838_v7 = vmov 2   ;;  %v4532_v42 = vlaneseq }
  0x41   : > { %312 = vperm.xlu1 %2588, %v308_v2   ;;  %vm265_vm4 = vmor %vm264_vm2, %vm263_vm3  ;;  %253 = vst [vmem:[#allocation2] sm:$0xff] %v250_v1  ;;  %v2839_v19 = vmov 3   ;;  %s2840_s26 = smov 51   ;;  %v2841_v22 = vmov 4   ;;  %v2842_v23 = vmov 5   ;;  %v2843_v24 = vmov 6  }
  0x42   : > { %266 = vst.msk [vmem:[#allocation4] sm:$0x3f] %vm265_vm4, %v2836_v3  ;;  %v568_v25 = vld [vmem:[%s4526_s0] sm:$0x3]  ;;  %v2844_v26 = vmov 7   ;;  %v2845_v27 = vmov 8  }
  0x43   : > { %v2846_v28 = vmov 9   ;;  %v2847_v29 = vmov 10   ;;  %v2848_v30 = vmov 11   ;;  %v2849_v31 = vmov 12   ;;  %v846_v33 = vld [vmem:[%s4526_s0] sm:$0x3] }
  0x44   : > { %v2850_v32 = vmov 13   ;;  %v2851_v34 = vmov 14   ;;  %v2852_v35 = vmov 15   ;;  %v2853_v36 = vmov 16   ;;  %s2860_s8 = smov 112   ;;  %s2861_s25 = smov 96  }
  0x45   : > { %2589 = vset.pattern.permute.xlu1 %v2837_v4  ;;  %v2854_v37 = vmov 17   ;;  %v2855_v38 = vmov 18   ;;  %v2856_v39 = vmov 19   ;;  %v2857_v40 = vmov 20   ;;  %s2862_s9 = smov 80   ;;  %s2863_s7 = smov 64  }
  0x46   : > { %332 = vperm.xlu1 %2589, %v308_v2   ;;  %v2858_v41 = vmov 21   ;;  %vm296_vm5 = vcmp.ge.s32.totalorder %v4532_v42, 51  ;;  %vm297_vm6 = vcmp.lt.s32.totalorder %v4532_v42, 307  ;;  %vm292_vm7 = vcmask 416768   ;;  %s2864_s10 = smov 48   ;;  %s2865_s11 = smov 32  }
  0x47   : > { %v268_v5 = vld [vmem:[#allocation3] ss:$4 sm:$0x3]  ;;  %v273_v6 = vld [vmem:[#allocation3 + $0x1] ss:$4 sm:$0x3]  ;;  %vm298_vm8 = vmand %vm296_vm5, %vm297_vm6 }
  0x48   : > { %v274_v8 = vmax.f32 %v268_v5, %v273_v6  ;;  %v279_v9 = vld [vmem:[#allocation3 + $0x2] ss:$4 sm:$0x3]  ;;  %v285_v10 = vld [vmem:[#allocation3 + $0x3] ss:$4 sm:$0x3] }
  0x49   : > { %v267_v11 = vld [vmem:[#allocation2] ss:$4 sm:$0x3]  ;;  %v270_v12 = vld [vmem:[#allocation2 + $0x1] ss:$4 sm:$0x3] }
  0x4a   : > { %2590 = vset.pattern.permute.xlu1 %v2838_v7  ;;  %v280_v13 = vmax.f32 %v274_v8, %v279_v9  ;;  %v271_v14 = vadd.f32 %v270_v12, %v267_v11  ;;  %v276_v15 = vld [vmem:[#allocation2 + $0x2] ss:$4 sm:$0x3]  ;;  %v282_v16 = vld [vmem:[#allocation2 + $0x3] ss:$4 sm:$0x3] }
  0x4b   : > { %369 = vperm.xlu1 %2590, %v308_v2   ;;  %v2859_v47 = vmov 1983009808   ;;  %v3098_v52 = vshrl.u32 %v4532_v42, 7  ;;  %s2866_s15 = smov 127   ;;  %s2867_s16 = smov 111   ;;  %vm1191_vm9 = vcmask 891904  }
  0x4c   : > { %v286_v17 = vmax.f32 %v280_v13, %v285_v10  ;;  %v277_v18 = vadd.f32 %v276_v15, %v271_v14  ;;  %v338_v48 = vunpack.c.l.s4 %v2859_v47  ;;  %s2868_s1 = smov 95   ;;  %s2869_s24 = smov 79   ;;  %vm1154_vm10 = vcmask 1022976  }
  0x4d   : > { %4618 = vst [vmem:[#allocation15_spill] sm:$0xff] %v3098_v52  ;;  %s2870_s28 = smov 63   ;;  %s4555_s23 = smov 31   ;;  %vm1228_vm11 = vcmask 760832   ;;  %vm1265_vm12 = vcmask 629760   ;;  %vm1302_vm13 = vcmask 498688  }
  0x4e   : > { %301 = vrot.lane.b32.xlu0 %v286_v17, %s2840_s26  ;;  %v283_v20 = vadd.f32 %v282_v16, %v277_v18  ;;  %v339_v51 = vunpack.c.0.s8 %v338_v48  ;;  %s4550_s29 = smov 126   ;;  %s4551_s30 = smov 110   ;;  %vm1339_vm14 = vcmask 367616   ;;  %vm1376_vm15 = vcmask 236544  }
  0x4f   : > { %2591 = vset.pattern.permute.xlu1 %v2839_v19  ;;  %s4552_s5 = smov 94   ;;  %vm4586_vm0 = vcmask 916480   ;;  %vm4585_vm1 = vcmask 785408   ;;  %vm4584_vm2 = vcmask 654336   ;;  %vm4587_vm3 = vcmask 523264  }
  0x50   : > { %406 = vperm.xlu1 %2591, %v308_v2   ;;  %v287_v21 = vmul.f32 0.25, %v283_v20  ;;  %v3103_v54 = vsub.s32 %v339_v51, %v3098_v52  ;;  %vm598_vm4 = vcmask 1039360   ;;  %vm635_vm5 = vcmask 908288  }
  0x51   : > { %vm506_vm6 = vcmask 392192  }
  0x52   : > { %289 = vrot.lane.b32.xlu0 %v287_v21, %s2840_s26  ;;  %s2871_s26 = smov 47  }
  0x54   : > { %2592 = vset.pattern.permute.xlu1 %v2841_v22 }
  0x55   : > { %443 = vperm.xlu1 %2592, %v308_v2  }
  0x59   : > { %2593 = vset.pattern.permute.xlu1 %v2842_v23 }
  0x5a   : > { %480 = vperm.xlu1 %2593, %v308_v2  }
  0x5e   : > { %2594 = vset.pattern.permute.xlu1 %v2843_v24 }
  0x5f   : > { %517 = vperm.xlu1 %2594, %v308_v2  }
  0x63   : > { %2595 = vset.pattern.permute.xlu1 %v2844_v26 }
  0x64   : > { %572 = vperm.xlu1 %2595, %v568_v25  }
  0x68   : > { %2596 = vset.pattern.permute.xlu1 %v2845_v27 }
  0x69   : > { %609 = vperm.xlu1 %2596, %v568_v25  }
  0x6d   : > { %2597 = vset.pattern.permute.xlu1 %v2846_v28 }
  0x6e   : > { %646 = vperm.xlu1 %2597, %v568_v25  }
  0x72   : > { %2598 = vset.pattern.permute.xlu1 %v2847_v29 }
  0x73   : > { %683 = vperm.xlu1 %2598, %v568_v25  }
  0x77   : > { %2599 = vset.pattern.permute.xlu1 %v2848_v30 }
  0x78   : > { %720 = vperm.xlu1 %2599, %v568_v25  }
  0x7c   : > { %2600 = vset.pattern.permute.xlu1 %v2849_v31 }
  0x7d   : > { %757 = vperm.xlu1 %2600, %v568_v25  }
  0x81   : > { %2601 = vset.pattern.permute.xlu1 %v2850_v32 }
  0x82   : > { %794 = vperm.xlu1 %2601, %v568_v25  }
  0x86   : > { %2602 = vset.pattern.permute.xlu1 %v2851_v34 }
  0x87   : > { %850 = vperm.xlu1 %2602, %v846_v33  }
  0x8b   : > { %2603 = vset.pattern.permute.xlu1 %v2852_v35 }
  0x8c   : > { %887 = vperm.xlu1 %2603, %v846_v33  }
  0x90   : > { %2604 = vset.pattern.permute.xlu1 %v2853_v36 }
  0x91   : > { %924 = vperm.xlu1 %2604, %v846_v33  }
  0x95   : > { %2605 = vset.pattern.permute.xlu1 %v2854_v37 }
  0x96   : > { %961 = vperm.xlu1 %2605, %v846_v33  }
  0x9a   : > { %2606 = vset.pattern.permute.xlu1 %v2855_v38 }
  0x9b   : > { %998 = vperm.xlu1 %2606, %v846_v33  }
  0x9f   : > { %2607 = vset.pattern.permute.xlu1 %v2856_v39 }
  0xa0   : > { %1035 = vperm.xlu1 %2607, %v846_v33  }
  0xa4   : > { %2608 = vset.pattern.permute.xlu1 %v2857_v40 }
  0xa5   : > { %1072 = vperm.xlu1 %2608, %v846_v33  }
  0xa9   : > { %2609 = vset.pattern.permute.xlu1 %v2858_v41 }
  0xbc   : > { %v3100_v53 = vpop.permute.xlu1 %312 }
  0xbd   : > { %4619 = vst [vmem:[#allocation16_spill] sm:$0xff] %v3100_v53 }
  0xc0   : > { %v302_v43 = vpop.permute.xlu0 %301 }
  0xc1   : > { %v303_v44 = vrot.slane %v302_v43, 7  ;;  %v3105_v55 = vpop.permute.xlu1 %332 }
  0xc2   : > { %4620 = vst [vmem:[#allocation17_spill] sm:$0xff] %v3105_v55 }
  0xc3   : > { %v304_v45 = vsel %vm292_vm7, %v303_v44, %v302_v43 }
  0xc4   : > { %307 = vst.msk [vmem:[#allocation4 + $0x1] ss:$2 sm:$0x7] %vm298_vm8, %v304_v45  ;;  %v290_v46 = vpop.permute.xlu0 %289 }
  0xc5   : > { %v291_v49 = vrot.slane %v290_v46, 7 }
  0xc6   : > { %v3111_v62 = vpop.permute.xlu1 %369 }
  0xc7   : > { %v293_v50 = vsel %vm292_vm7, %v291_v49, %v290_v46  ;;  %4621 = vst [vmem:[#allocation18_spill] sm:$0xff] %v3111_v62  ;;  %vm1432_vm7 = vcmask 1014784  }
  0xc8   : > { %299 = vst.msk [vmem:[#allocation4] ss:$2 sm:$0x7] %vm298_vm8, %v293_v50  ;;  %vm672_vm8 = vcmask 777216  }
  0xcb   : > { %v3121_v10 = vpop.permute.xlu1 %406 }
  0xcc   : > { %4622 = vst [vmem:[#allocation19_spill] sm:$0xff] %v3121_v10 }
  0xcf   : > { %v330_v56 = vld [vmem:[#allocation4] sm:$0x3f] }
  0xd0   : > { %v343_v57 = vrot.slane %v330_v56, %v3103_v54  ;;  %v367_v58 = vld [vmem:[#allocation4] sm:$0x3f]  ;;  %v336_v63 = vcombine.high %v330_v56, %v330_v56  ;;  %v3161_v32 = vpop.permute.xlu1 %443 }
  0xd1   : > { %v380_v60 = vrot.slane %v367_v58, %v3103_v54  ;;  %v404_v61 = vld [vmem:[#allocation4] sm:$0x3f]  ;;  %v373_v2 = vcombine.high %v367_v58, %v367_v58  ;;  %4623 = vst [vmem:[#allocation20_spill] sm:$0xff] %v3161_v32 }
  0xd2   : > { %352 = vrot.lane.b32.xlu0 %v343_v57, %s2860_s8  ;;  %v351_v59 = vcombine.high %v343_v57, %v343_v57  ;;  %v417_v1 = vrot.slane %v404_v61, %v3103_v54  ;;  %v441_v3 = vld [vmem:[#allocation4] sm:$0x3f]  ;;  %v3117_v5 = vrot.slane %v336_v63, %v3103_v54  ;;  %v410_v12 = vcombine.high %v404_v61, %v404_v61 }
  0xd3   : > { %v388_v0 = vcombine.high %v380_v60, %v380_v60  ;;  %v478_v4 = vld [vmem:[#allocation4] sm:$0x3f]  ;;  %v454_v7 = vrot.slane %v441_v3, %v3103_v54  ;;  %v3124_v11 = vrot.slane %v373_v2, %v3103_v54  ;;  %v447_v15 = vcombine.high %v441_v3, %v441_v3 }
  0xd4   : > { %354 = vrot.lane.b32.xlu1 %v351_v59, %s2860_s8  ;;  %v425_v6 = vcombine.high %v417_v1, %v417_v1  ;;  %v515_v8 = vld [vmem:[#allocation4] sm:$0x3f]  ;;  %v484_v16 = vcombine.high %v478_v4, %v478_v4  ;;  %v3134_v18 = vrot.slane %v410_v12, %v3103_v54  ;;  %v491_v22 = vrot.slane %v478_v4, %v3103_v54 }
  0xd5   : > { %v569_v9 = vld [vmem:[#allocation4] sm:$0x3f]  ;;  %v521_v19 = vcombine.high %v515_v8, %v515_v8  ;;  %v462_v21 = vcombine.high %v454_v7, %v454_v7  ;;  %v3141_v24 = vrot.slane %v447_v15, %v3103_v54  ;;  %v528_v34 = vrot.slane %v515_v8, %v3103_v54  ;;  %v3206_v58 = vpop.permute.xlu1 %480 }
  0xd6   : > { %389 = vrot.lane.b32.xlu0 %v380_v60, %s2861_s25  ;;  %v3127_v13 = vld [vmem:[#allocation4] sm:$0x3f]  ;;  %v576_v20 = vcombine.high %v569_v9, %v569_v9  ;;  %v3144_v25 = vrot.slane %v484_v16, %v3103_v54  ;;  %v499_v39 = vcombine.high %v491_v22, %v491_v22  ;;  %v583_v57 = vrot.slane %v569_v9, %v3103_v54 }
  0xd7   : > { %v3129_v14 = vld [vmem:[#allocation4] sm:$0x3f]  ;;  %v3151_v28 = vrot.slane %v521_v19, %v3103_v54  ;;  %v613_v30 = vcombine.high %v3127_v13, %v3127_v13  ;;  %v536_v56 = vcombine.high %v528_v34, %v528_v34  ;;  %4624 = vst [vmem:[#allocation21_spill] sm:$0xff] %v3206_v58  ;;  %v620_v9 = vrot.slane %v3127_v13, %v3103_v54 }
  0xd8   : > { %391 = vrot.lane.b32.xlu1 %v388_v0, %s2861_s25  ;;  %v3131_v17 = vld [vmem:[#allocation4] sm:$0x3f]  ;;  %v3154_v29 = vrot.slane %v576_v20, %v3103_v54  ;;  %v650_v31 = vcombine.high %v3129_v14, %v3129_v14  ;;  %v591_v8 = vcombine.high %v583_v57, %v583_v57 }
  0xd9   : > { %v3138_v23 = vld [vmem:[#allocation4] sm:$0x3f]  ;;  %v687_v33 = vcombine.high %v3131_v17, %v3131_v17  ;;  %v3169_v36 = vrot.slane %v613_v30, %v3103_v54 }
  0xda   : > { %426 = vrot.lane.b32.xlu0 %v417_v1, %s2862_s9  ;;  %v3146_v26 = vld [vmem:[#allocation4] sm:$0x3f]  ;;  %v3172_v37 = vrot.slane %v650_v31, %v3103_v54  ;;  %v724_v38 = vcombine.high %v3138_v23, %v3138_v23 }
  0xdb   : > { %v3148_v27 = vld [vmem:[#allocation4] sm:$0x3f]  ;;  %v3180_v41 = vrot.slane %v687_v33, %v3103_v54  ;;  %v761_v43 = vcombine.high %v3146_v26, %v3146_v26 }
  0xdc   : > { %428 = vrot.lane.b32.xlu1 %v425_v6, %s2862_s9  ;;  %v3166_v35 = vld [vmem:[#allocation4] sm:$0x3f]  ;;  %v798_v44 = vcombine.high %v3148_v27, %v3148_v27  ;;  %v3189_v46 = vrot.slane %v724_v38, %v3103_v54 }
  0xdd   : > { %v3177_v40 = vld [vmem:[#allocation4] sm:$0x3f]  ;;  %v3193_v47 = vrot.slane %v761_v43, %v3103_v54  ;;  %v854_v49 = vcombine.high %v3166_v35, %v3166_v35  ;;  %v657_v43 = vrot.slane %v3129_v14, %v3103_v54 }
  0xde   : > { %463 = vrot.lane.b32.xlu0 %v454_v7, %s2863_s7  ;;  %v3186_v45 = vld [vmem:[#allocation4] sm:$0x3f]  ;;  %v3196_v48 = vrot.slane %v798_v44, %v3103_v54  ;;  %v891_v51 = vcombine.high %v3177_v40, %v3177_v40 }
  0xdf   : > { %v3200_v50 = vld [vmem:[#allocation4] sm:$0x3f]  ;;  %v3211_v60 = vrot.slane %v854_v49, %v3103_v54  ;;  %v928_v61 = vcombine.high %v3186_v45, %v3186_v45 }
  0xe0   : > { %465 = vrot.lane.b32.xlu1 %v462_v21, %s2863_s7  ;;  %v3208_v59 = vld [vmem:[#allocation4] sm:$0x3f]  ;;  %v3218_v0 = vrot.slane %v891_v51, %v3103_v54  ;;  %v965_v3 = vcombine.high %v3200_v50, %v3200_v50  ;;  %v3250_v21 = vpop.permute.xlu1 %517 }
  0xe1   : > { %v3215_v63 = vld [vmem:[#allocation4] sm:$0x3f]  ;;  %v3224_v2 = vrot.slane %v928_v61, %v3103_v54  ;;  %v1002_v7 = vcombine.high %v3208_v59, %v3208_v59  ;;  %4625 = vst [vmem:[#allocation22_spill] sm:$0xff] %v3250_v21 }
  0xe2   : > { %500 = vrot.lane.b32.xlu0 %v491_v22, %s2864_s10  ;;  %v3221_v1 = vld [vmem:[#allocation4] sm:$0x3f]  ;;  %v3240_v15 = vrot.slane %v965_v3, %v3103_v54  ;;  %v1039_v16 = vcombine.high %v3215_v63, %v3215_v63 }
  0xe3   : > { %v3228_v4 = vld [vmem:[#allocation4] sm:$0x3f]  ;;  %v3245_v19 = vrot.slane %v1002_v7, %v3103_v54  ;;  %v1076_v20 = vcombine.high %v3221_v1, %v3221_v1 }
  0xe4   : > { %502 = vrot.lane.b32.xlu1 %v499_v39, %s2864_s10  ;;  %v3230_v6 = vld [vmem:[#allocation4] sm:$0x3f]  ;;  %v3257_v30 = vrot.slane %v1039_v16, %v3103_v54  ;;  %v1132_v31 = vcombine.high %v3228_v4, %v3228_v4  ;;  %v628_v39 = vcombine.high %v620_v9, %v620_v9 }
  0xe5   : > { %v3237_v12 = vld [vmem:[#allocation4] sm:$0x3f]  ;;  %v1243_v13 = vcombine.high %v3230_v6, %v3230_v6 }
  0xe6   : > { %537 = vrot.lane.b32.xlu0 %v528_v34, %s2865_s11  ;;  %v3252_v22 = vld [vmem:[#allocation4] sm:$0x3f]  ;;  %v3264_v34 = vrot.slane %v1076_v20, %v3103_v54  ;;  %v1169_v38 = vcombine.high %v3237_v12, %v3237_v12  ;;  %v3276_v51 = vrot.slane %v1132_v31, %v3103_v54  ;;  %v694_v31 = vrot.slane %v3131_v17, %v3103_v54 }
  0xe7   : > { %v3261_v33 = vld [vmem:[#allocation4] sm:$0x3f]  ;;  %v3287_v3 = vrot.slane %v1243_v13, %v3103_v54  ;;  %v665_v13 = vcombine.high %v657_v43, %v657_v43 }
  0xe8   : > { %539 = vrot.lane.b32.xlu1 %v536_v56, %s2865_s11  ;;  %v3271_v44 = vld [vmem:[#allocation4] sm:$0x3f]  ;;  %v3279_v56 = vrot.slane %v1169_v38, %v3103_v54  ;;  %v1280_v14 = vcombine.high %v3261_v33, %v3261_v33  ;;  %v3305_v38 = vpop.permute.xlu1 %572 }
  0xe9   : > { %v3273_v49 = vld [vmem:[#allocation4] sm:$0x3f]  ;;  %v1317_v16 = vcombine.high %v3271_v44, %v3271_v44  ;;  %4626 = vst [vmem:[#allocation23_spill] sm:$0xff] %v3305_v38 }
  0xea   : > { %592 = vrot.lane.b32.xlu0 %v583_v57, %s2866_s15  ;;  %v1206_v57 = vcombine.high %v3252_v22, %v3252_v22  ;;  %v3284_v61 = vld [vmem:[#allocation4] sm:$0x3f]  ;;  %v1354_v20 = vcombine.high %v3273_v49, %v3273_v49 }
  0xeb   : > { %v3291_v7 = vld [vmem:[#allocation4] sm:$0x3f]  ;;  %v1410_v21 = vcombine.high %v3284_v61, %v3284_v61 }
  0xec   : > { %594 = vrot.lane.b32.xlu1 %v591_v8, %s2866_s15  ;;  %v3293_v8 = vld [vmem:[#allocation4] sm:$0x3f]  ;;  %v3314_v42 = vrot.slane %v1354_v20, %v3103_v54  ;;  %v702_v20 = vcombine.high %v694_v31, %v694_v31 }
  0xed   : > { %v1484_v17 = vcombine.high %v3293_v8, %v3293_v8  ;;  %v3323_v58 = vld [vmem:[#allocation4] sm:$0x3f] }
  0xee   : > { %629 = vrot.lane.b32.xlu0 %v620_v9, %s2867_s16  ;;  %v3296_v9 = vrot.slane %v1206_v57, %v3103_v54  ;;  %v3311_v57 = vrot.slane %v1317_v16, %v3103_v54  ;;  %4628 = vst [vmem:[#allocation25_spill] sm:$0xff] %v3314_v42  ;;  %v3328_v16 = vrot.slane %v1410_v21, %v3103_v54  ;;  %v3333_v38 = vld [vmem:[#allocation4] sm:$0x3f]  ;;  %v3344_v21 = vpop.permute.xlu1 %609 }
  0xef   : > { %v3335_v32 = vld [vmem:[#allocation4] sm:$0x3f]  ;;  %v3341_v62 = vrot.slane %v1484_v17, %v3103_v54  ;;  %4632 = vst [vmem:[#allocation29_spill] sm:$0xff] %v3344_v21  ;;  %v768_v21 = vrot.slane %v3146_v26, %v3103_v54 }
  0xf0   : > { %631 = vrot.lane.b32.xlu1 %v628_v39, %s2867_s16  ;;  %v3308_v39 = vrot.slane %v1280_v14, %v3103_v54  ;;  %4627 = vst [vmem:[#allocation24_spill] sm:$0xff] %v3311_v57  ;;  %v3325_v14 = vld [vmem:[#allocation4] sm:$0x3f]  ;;  %4629 = vst [vmem:[#allocation26_spill] sm:$0xff] %v3328_v16  ;;  %v1632_v17 = vcombine.high %v3335_v32, %v3335_v32 }
  0xf1   : > { %4631 = vst [vmem:[#allocation28_spill] sm:$0xff] %v3341_v62  ;;  %v3350_v55 = vld [vmem:[#allocation4] sm:$0x3f] }
  0xf2   : > { %666 = vrot.lane.b32.xlu0 %v657_v43, %s2868_s1  ;;  %v1447_v43 = vcombine.high %v3291_v7, %v3291_v7  ;;  %v3352_v53 = vld [vmem:[#allocation4] sm:$0x3f]  ;;  %v3373_v42 = vrot.slane %v1632_v17, %v3103_v54  ;;  %v3387_v17 = vpop.permute.xlu1 %646 }
  0xf3   : > { %4633 = vst [vmem:[#allocation30_spill] sm:$0xff] %v3352_v53  ;;  %v3361_v52 = vld [vmem:[#allocation4] sm:$0x3f]  ;;  %v1725_v26 = vcombine.high %v3352_v53, %v3352_v53  ;;  %4639 = vst [vmem:[#allocation36_spill] sm:$0xff] %v3387_v17 }
  0xf4   : > { %668 = vrot.lane.b32.xlu1 %v665_v13, %s2868_s1  ;;  %v731_v13 = vrot.slane %v3138_v23, %v3103_v54  ;;  %v3338_v10 = vrot.slane %v1447_v43, %v3103_v54  ;;  %v1558_v23 = vcombine.high %v3325_v14, %v3325_v14  ;;  %v1595_v43 = vcombine.high %v3333_v38, %v3333_v38  ;;  %v3380_v57 = vld [vmem:[#allocation4] sm:$0x3f] }
  0xf5   : > { %4634 = vst [vmem:[#allocation31_spill] sm:$0xff] %v3361_v52  ;;  %4638 = vst [vmem:[#allocation35_spill] sm:$0xff] %v3373_v42  ;;  %v3391_v42 = vld [vmem:[#allocation4] sm:$0x3f] }
  0xf6   : > { %703 = vrot.lane.b32.xlu0 %v694_v31, %s2869_s24  ;;  %4630 = vst [vmem:[#allocation27_spill] sm:$0xff] %v3338_v10  ;;  %v1521_v31 = vcombine.high %v3323_v58, %v3323_v58  ;;  %v3367_v10 = vrot.slane %v1558_v23, %v3103_v54  ;;  %v3370_v16 = vrot.slane %v1595_v43, %v3103_v54  ;;  %4640 = vst [vmem:[#allocation37_spill] sm:$0xff] %v3391_v42  ;;  %v3409_v17 = vld [vmem:[#allocation4] sm:$0x3f] }
  0xf7   : > { %v776_v23 = vcombine.high %v768_v21, %v768_v21  ;;  %v805_v43 = vrot.slane %v3148_v27, %v3103_v54  ;;  %v1966_v27 = vcombine.high %v3380_v57, %v3380_v57 }
  0xf8   : > { %705 = vrot.lane.b32.xlu1 %v702_v20, %s2869_s24  ;;  %v739_v20 = vcombine.high %v731_v13, %v731_v13  ;;  %v3364_v62 = vrot.slane %v1521_v31, %v3103_v54  ;;  %4636 = vst [vmem:[#allocation33_spill] sm:$0xff] %v3367_v10  ;;  %4637 = vst [vmem:[#allocation34_spill] sm:$0xff] %v3370_v16  ;;  %v1762_v31 = vcombine.high %v3361_v52, %v3361_v52  ;;  %v3393_v16 = vld [vmem:[#allocation4] sm:$0x3f] }
  0xf9   : > { %4641 = vst [vmem:[#allocation38_spill] sm:$0xff] %v3393_v16  ;;  %v3401_v52 = vrot.slane %v1725_v26, %v3103_v54  ;;  %v1836_v26 = vcombine.high %v3393_v16, %v3393_v16 }
  0xfa   : > { %740 = vrot.lane.b32.xlu0 %v731_v13, %s2870_s28  ;;  %4635 = vst [vmem:[#allocation32_spill] sm:$0xff] %v3364_v62  ;;  %v1688_v13 = vcombine.high %v3350_v55, %v3350_v55  ;;  %v3398_v62 = vld [vmem:[#allocation4] sm:$0x3f] }
  0xfb   : > { %4643 = vst [vmem:[#allocation40_spill] sm:$0xff] %v3401_v52  ;;  %v2077_v52 = vcombine.high %v3398_v62, %v3398_v62  ;;  %v3432_v16 = vrot.slane %v1836_v26, %v3103_v54 }
  0xfc   : > { %742 = vrot.lane.b32.xlu1 %v739_v20, %s2870_s28  ;;  %v3389_v20 = vld [vmem:[#allocation4] sm:$0x3f]  ;;  %v3396_v10 = vrot.slane %v1688_v13, %v3103_v54  ;;  %v2040_v13 = vcombine.high %v3391_v42, %v3391_v42 }
  0xfd   : > { %v1799_v53 = vcombine.high %v3389_v20, %v3389_v20 }
  0xfe   : > { %777 = vrot.lane.b32.xlu0 %v768_v21, %s2871_s26  ;;  %4642 = vst [vmem:[#allocation39_spill] sm:$0xff] %v3396_v10  ;;  %v3404_v21 = vrot.slane %v1762_v31, %v3103_v54  ;;  %v813_v31 = vcombine.high %v805_v43, %v805_v43  ;;  %v3429_v42 = vrot.slane %v2040_v13, %v3103_v54 }
  0xff   : > { %v3426_v10 = vrot.slane %v1799_v53, %v3103_v54  ;;  %v898_v13 = vrot.slane %v3177_v40, %v3103_v54 }
 0x100   : > { %4644 = vst [vmem:[#allocation41_spill] sm:$0xff] %v3404_v21  ;;  %779 = vrot.lane.b32.xlu1 %v776_v23, %s2871_s26  ;;  %v861_v23 = vrot.slane %v3166_v35, %v3103_v54  ;;  %v3421_v21 = vrot.slane %v1966_v27, %v3103_v54  ;;  %v3438_v35 = vrot.slane %v2077_v52, %v3103_v54 }
 0x101   : > { %v1873_v27 = vcombine.high %v3409_v17, %v3409_v17  ;;  %v906_v52 = vcombine.high %v898_v13, %v898_v13 }
 0x102   : > { %814 = vrot.lane.b32.xlu0 %v805_v43, %s4555_s23  ;;  %v3435_v43 = vpop.permute.xlu1 %683  ;;  %v869_v53 = vcombine.high %v861_v23, %v861_v23 }
 0x103   : > { %4645 = vst [vmem:[#allocation42_spill] sm:$0xff] %v3435_v43  ;;  %v3446_v26 = vrot.slane %v1873_v27, %v3103_v54 }
 0x104   : > { %816 = vrot.lane.b32.xlu1 %v813_v31, %s4555_s23  ;;  %v935_v31 = vrot.slane %v3186_v45, %v3103_v54  ;;  %v1009_v45 = vrot.slane %v3208_v59, %v3103_v54  ;;  %v3474_v59 = vrot.slane %v3221_v1, %v3103_v54  ;;  %v3493_v1 = vrot.slane %v3228_v4, %v3103_v54  ;;  %s4664_s23 = smov 94  }
 0x105   : > { %4646 = vst [vmem:[#allocation43_spill] sm:$0xff] %v3446_v26  ;;  %v3509_v4 = vrot.slane %v3237_v12, %v3103_v54 }
 0x106   : > { %870 = vrot.lane.b32.xlu0 %v861_v23, %s4550_s29  ;;  %v3452_v43 = vpop.permute.xlu1 %720  ;;  %v943_v40 = vcombine.high %v935_v31, %v935_v31  ;;  %v972_v23 = vrot.slane %v3200_v50, %v3103_v54  ;;  %v1046_v50 = vrot.slane %v3215_v63, %v3103_v54  ;;  %v1091_v63 = vcombine.high %v3474_v59, %v3474_v59 }
 0x107   : > { %4647 = vst [vmem:[#allocation44_spill] sm:$0xff] %v3452_v43 }
 0x108   : > { %872 = vrot.lane.b32.xlu1 %v869_v53, %s4550_s29  ;;  %s4553_s29 = smov 78   ;;  %v980_v53 = vcombine.high %v972_v23, %v972_v23 }
 0x10a   : > { %907 = vrot.lane.b32.xlu0 %v898_v13, %s4551_s30  ;;  %v3459_v27 = vpop.permute.xlu1 %757  ;;  %v1017_v13 = vcombine.high %v1009_v45, %v1009_v45 }
 0x10b   : > { %4648 = vst [vmem:[#allocation45_spill] sm:$0xff] %v3459_v27  ;;  %v3698_v27 = vrot.slane %v3325_v14, %v3103_v54  ;;  %v3716_v14 = vrot.slane %v3333_v38, %v3103_v54  ;;  %v2906_v38 = vmov 34  }
 0x10c   : > { %909 = vrot.lane.b32.xlu1 %v906_v52, %s4551_s30  ;;  %s4554_s30 = smov 62  }
 0x10e   : > { %944 = vrot.lane.b32.xlu0 %v935_v31, %s4552_s5  ;;  %v3468_v52 = vpop.permute.xlu1 %794  ;;  %v1054_v31 = vcombine.high %v1046_v50, %v1046_v50 }
 0x10f   : > { %4649 = vst [vmem:[#allocation46_spill] sm:$0xff] %v3468_v52 }
 0x110   : > { %946 = vrot.lane.b32.xlu1 %v943_v40, %s4552_s5  ;;  %s2878_s5 = smov 46  }
 0x112   : > { %981 = vrot.lane.b32.xlu0 %v972_v23, %s4553_s29  ;;  %v3477_v40 = vpop.permute.xlu1 %850  ;;  %v3487_v23 = vld [vmem:[%s4526_s0] sm:$0x3] }
 0x113   : > { %4650 = vst [vmem:[#allocation47_spill] sm:$0xff] %v3477_v40 }
 0x114   : > { %983 = vrot.lane.b32.xlu1 %v980_v53, %s4553_s29  ;;  %s2879_s29 = smov 30  }
 0x116   : > { %1018 = vrot.lane.b32.xlu0 %v1009_v45, %s4554_s30  ;;  %v3495_v53 = vpop.permute.xlu1 %887 }
 0x117   : > { %4651 = vst [vmem:[#allocation48_spill] sm:$0xff] %v3495_v53 }
 0x118   : > { %1020 = vrot.lane.b32.xlu1 %v1017_v13, %s4554_s30  ;;  %s4665_s30 = smov 78  }
 0x11a   : > { %1055 = vrot.lane.b32.xlu0 %v1046_v50, %s2878_s5  ;;  %v3503_v45 = vpop.permute.xlu1 %924  ;;  %v2883_v50 = vmov 23  }
 0x11b   : > { %4652 = vst [vmem:[#allocation49_spill] sm:$0xff] %v3503_v45 }
 0x11c   : > { %1057 = vrot.lane.b32.xlu1 %v1054_v31, %s2878_s5  ;;  %v2885_v31 = vmov 24  }
 0x11e   : > { %356 = vrot.lane.b32.xlu0 %v3117_v5, %s2860_s8  ;;  %v1147_v5 = vcombine.high %v3493_v1, %v3493_v1  ;;  %s2880_s8 = smov 125   ;;  %v3516_v13 = vpop.permute.xlu1 %961 }
 0x11f   : > { %4653 = vst [vmem:[#allocation50_spill] sm:$0xff] %v3516_v13  ;;  %v3658_v13 = vrot.slane %v3293_v8, %v3103_v54  ;;  %v2900_v8 = vmov 31  }
 0x120   : > { %1094 = vrot.lane.b32.xlu1 %v1091_v63, %s2879_s29 }
 0x122   : > { %393 = vrot.lane.b32.xlu0 %v3124_v11, %s2861_s25  ;;  %v2881_v11 = vmov 22   ;;  %s2882_s25 = smov 109  }
 0x124   : > { %1128 = vperm.xlu1 %2609, %v3487_v23  }
 0x126   : > { %430 = vrot.lane.b32.xlu0 %v3134_v18, %s2862_s9  ;;  %v1184_v18 = vcombine.high %v3509_v4, %v3509_v4  ;;  %s2884_s9 = smov 93  }
 0x128   : > { %1150 = vrot.lane.b32.xlu1 %v1147_v5, %s2880_s8 }
 0x129   : > { %2610 = vset.pattern.permute.xlu1 %v2881_v11 }
 0x12a   : > { %467 = vrot.lane.b32.xlu0 %v3141_v24, %s2863_s7  ;;  %v3523_v24 = vrot.slane %v3252_v22, %v3103_v54  ;;  %v3539_v22 = vrot.slane %v3230_v6, %v3103_v54  ;;  %s2886_s7 = smov 77   ;;  %v3553_v6 = vrot.slane %v3261_v33, %v3103_v54 }
 0x12c   : > { %1165 = vperm.xlu1 %2610, %v3487_v23   ;;  %v1221_v12 = vcombine.high %v3523_v24, %v3523_v24  ;;  %v1295_v11 = vcombine.high %v3553_v6, %v3553_v6 }
 0x12e   : > { %504 = vrot.lane.b32.xlu0 %v3144_v25, %s2864_s10  ;;  %v3526_v25 = vpop.permute.xlu1 %998  ;;  %s2888_s10 = smov 61  }
 0x12f   : > { %4654 = vst [vmem:[#allocation51_spill] sm:$0xff] %v3526_v25 }
 0x130   : > { %1187 = vrot.lane.b32.xlu1 %v1184_v18, %s2882_s25 }
 0x131   : > { %2611 = vset.pattern.permute.xlu1 %v2883_v50  ;;  %v3573_v50 = vrot.slane %v3271_v44, %v3103_v54 }
 0x132   : > { %541 = vrot.lane.b32.xlu0 %v3151_v28, %s2865_s11  ;;  %v3535_v28 = vpop.permute.xlu1 %1035  ;;  %s4657_s11 = smov 31  }
 0x133   : > { %4655 = vst [vmem:[#allocation52_spill] sm:$0xff] %v3535_v28  ;;  %v3638_v28 = vrot.slane %v3291_v7, %v3103_v54 }
 0x134   : > { %1202 = vperm.xlu1 %2611, %v3487_v23  }
 0x136   : > { %596 = vrot.lane.b32.xlu0 %v3154_v29, %s2866_s15  ;;  %v1258_v29 = vcombine.high %v3539_v22, %v3539_v22  ;;  %v3547_v63 = vpop.permute.xlu1 %1072  ;;  %s2890_s15 = smov 45  }
 0x137   : > { %4656 = vst [vmem:[#allocation53_spill] sm:$0xff] %v3547_v63 }
 0x138   : > { %1224 = vrot.lane.b32.xlu1 %v1221_v12, %s2884_s9 }
 0x139   : > { %2612 = vset.pattern.permute.xlu1 %v2885_v31  ;;  %v1332_v31 = vcombine.high %v3573_v50, %v3573_v50 }
 0x13a   : > { %633 = vrot.lane.b32.xlu0 %v3169_v36, %s2867_s16  ;;  %v2887_v36 = vmov 25   ;;  %s4658_s16 = smov 126  }
 0x13c   : > { %1239 = vperm.xlu1 %2612, %v3487_v23  }
 0x13e   : > { %670 = vrot.lane.b32.xlu0 %v3172_v37, %s2868_s1  ;;  %s4661_s1 = smov 110  }
 0x140   : > { %1261 = vrot.lane.b32.xlu1 %v1258_v29, %s2886_s7 }
 0x141   : > { %2613 = vset.pattern.permute.xlu1 %v2887_v36  ;;  %v3593_v36 = vrot.slane %v3273_v49, %v3103_v54  ;;  %v3610_v49 = vld [vmem:[%s4526_s0] sm:$0x3] }
 0x142   : > { %707 = vrot.lane.b32.xlu0 %v3180_v41, %s2869_s24  ;;  %v2889_v41 = vmov 26   ;;  %s2892_s24 = smov 29  }
 0x144   : > { %v3555_v5 = vpop.permute.xlu0 %352  ;;  %1276 = vperm.xlu1 %2613, %v3487_v23  }
 0x146   : > { %v3558_v37 = vpop.permute.xlu1 %354  ;;  %744 = vrot.lane.b32.xlu0 %v3189_v46, %s2870_s28  ;;  %s2932_s28 = smov 42  }
 0x148   : > { %v3564_v18 = vpop.permute.xlu0 %389  ;;  %1298 = vrot.lane.b32.xlu1 %v1295_v11, %s2888_s10 }
 0x149   : > { %2614 = vset.pattern.permute.xlu1 %v2889_v41  ;;  %v1369_v41 = vcombine.high %v3593_v36, %v3593_v36 }
 0x14a   : > { %v3567_v33 = vpop.permute.xlu1 %391  ;;  %781 = vrot.lane.b32.xlu0 %v3193_v47, %s2871_s26  ;;  %v2891_v47 = vmov 27   ;;  %s2933_s26 = smov 26  }
 0x14c   : > { %v3575_v46 = vpop.permute.xlu0 %426  ;;  %1313 = vperm.xlu1 %2614, %v3487_v23  }
 0x14e   : > { %v3578_v12 = vpop.permute.xlu1 %428  ;;  %818 = vrot.lane.b32.xlu0 %v3196_v48, %s4657_s11  ;;  %s2894_s11 = smov 124  }
 0x150   : > { %v3584_v29 = vpop.permute.xlu0 %463  ;;  %1335 = vrot.lane.b32.xlu1 %v1332_v31, %s2890_s15 }
 0x151   : > { %2615 = vset.pattern.permute.xlu1 %v2891_v47 }
 0x152   : > { %v3587_v44 = vpop.permute.xlu1 %465  ;;  %874 = vrot.lane.b32.xlu0 %v3211_v60, %s4658_s16  ;;  %v2893_v60 = vmov 28   ;;  %s4666_s16 = smov 62  }
 0x154   : > { %v3595_v48 = vpop.permute.xlu0 %500  ;;  %1350 = vperm.xlu1 %2615, %v3487_v23  }
 0x155   : > { %4659 = vst [vmem:[#allocation54_spill] sm:$0xff] %v3595_v48 }
 0x156   : > { %v3598_v11 = vpop.permute.xlu1 %502  ;;  %911 = vrot.lane.b32.xlu0 %v3218_v0, %s4661_s1  ;;  %v3618_v0 = vrot.slane %v3284_v61, %v3103_v54  ;;  %s2896_s1 = smov 108  }
 0x157   : > { %4660 = vst [vmem:[#allocation55_spill] sm:$0xff] %v3598_v11 }
 0x158   : > { %v3604_v31 = vpop.permute.xlu0 %537  ;;  %1372 = vrot.lane.b32.xlu1 %v1369_v41, %s2892_s24 }
 0x159   : > { %4662 = vst [vmem:[#allocation56_spill] sm:$0xff] %v3604_v31  ;;  %2616 = vset.pattern.permute.xlu1 %v2893_v60  ;;  %v1425_v60 = vcombine.high %v3618_v0, %v3618_v0 }
 0x15a   : > { %v3612_v23 = vpop.permute.xlu1 %539  ;;  %948 = vrot.lane.b32.xlu0 %v3224_v2, %s4664_s23  ;;  %v2895_v2 = vmov 29   ;;  %s2412_s23 = sshll.u32 %s2823_s20, 5 }
 0x15b   : > { %4663 = vst [vmem:[#allocation57_spill] sm:$0xff] %v3612_v23  ;;  %v3843_v23 = vrot.slane %v3380_v57, %v3103_v54 }
 0x15c   : > { %v3620_v47 = vpop.permute.xlu0 %592  ;;  %1406 = vperm.xlu1 %2616, %v3610_v49  }
 0x15e   : > { %v3623_v41 = vpop.permute.xlu1 %594  ;;  %985 = vrot.lane.b32.xlu0 %v3240_v15, %s4665_s30  ;;  %s2917_s30 = smov 122  }
 0x160   : > { %v3629_v63 = vpop.permute.xlu0 %629  ;;  %1428 = vrot.lane.b32.xlu1 %v1425_v60, %s2894_s11  ;;  %v1462_v60 = vcombine.high %v3638_v28, %v3638_v28 }
 0x161   : > { %2617 = vset.pattern.permute.xlu1 %v2895_v2 }
 0x162   : > { %v3632_v61 = vpop.permute.xlu1 %631  ;;  %1022 = vrot.lane.b32.xlu0 %v3245_v19, %s4666_s16  ;;  %v2897_v19 = vmov 30   ;;  %s2920_s16 = smov 75  }
 0x164   : > { %v3640_v15 = vpop.permute.xlu0 %666  ;;  %1443 = vperm.xlu1 %2617, %v3610_v49  }
 0x166   : > { %v3643_v25 = vpop.permute.xlu1 %668  ;;  %1059 = vrot.lane.b32.xlu0 %v3257_v30, %s2878_s5  ;;  %v2898_v30 = vmov 37   ;;  %s2899_s5 = smov 92  }
 0x167   : > { %2625 = vset.pattern.permute.xlu0 %v2898_v30  ;;  %v3678_v30 = vrot.slane %v3323_v58, %v3103_v54 }
 0x168   : > { %v3649_v2 = vpop.permute.xlu0 %703  ;;  %1465 = vrot.lane.b32.xlu1 %v1462_v60, %s2896_s1  ;;  %v1499_v60 = vcombine.high %v3658_v13, %v3658_v13 }
 0x169   : > { %4667 = vst [vmem:[#allocation58_spill] sm:$0xff] %v3649_v2  ;;  %2618 = vset.pattern.permute.xlu1 %v2897_v19 }
 0x16a   : > { %v3652_v7 = vpop.permute.xlu1 %705  ;;  %1092 = vrot.lane.b32.xlu0 %v3474_v59, %s2879_s29 }
 0x16c   : > { %v3660_v52 = vpop.permute.xlu0 %740  ;;  %1480 = vperm.xlu1 %2618, %v3610_v49  }
 0x16d   : > { %4668 = vst [vmem:[#allocation59_spill] sm:$0xff] %v3660_v52 }
 0x16e   : > { %v3663_v45 = vpop.permute.xlu1 %742  ;;  %1096 = vrot.lane.b32.xlu0 %v3264_v34, %s2879_s29  ;;  %s2901_s29 = smov 76  }
 0x16f   : > { %4669 = vst [vmem:[#allocation60_spill] sm:$0xff] %v3663_v45 }
 0x170   : > { %v3669_v19 = vpop.permute.xlu0 %777  ;;  %1502 = vrot.lane.b32.xlu1 %v1499_v60, %s2899_s5  ;;  %v1536_v60 = vcombine.high %v3678_v30, %v3678_v30 }
 0x171   : > { %4670 = vst [vmem:[#allocation61_spill] sm:$0xff] %v3669_v19  ;;  %2619 = vset.pattern.permute.xlu1 %v2900_v8 }
 0x172   : > { %v3672_v59 = vpop.permute.xlu1 %779  ;;  %1148 = vrot.lane.b32.xlu0 %v3493_v1, %s2880_s8  ;;  %v2902_v1 = vmov 32  }
 0x173   : > { %4671 = vst [vmem:[#allocation62_spill] sm:$0xff] %v3672_v59 }
 0x174   : > { %v3680_v34 = vpop.permute.xlu0 %814  ;;  %1517 = vperm.xlu1 %2619, %v3610_v49  }
 0x175   : > { %4672 = vst [vmem:[#allocation63_spill] sm:$0xff] %v3680_v34 }
 0x176   : > { %v3683_v40 = vpop.permute.xlu1 %816  ;;  %1152 = vrot.lane.b32.xlu0 %v3276_v51, %s2880_s8  ;;  %s2903_s8 = smov 60  }
 0x177   : > { %4673 = vst [vmem:[#allocation64_spill] sm:$0xff] %v3683_v40 }
 0x178   : > { %v3689_v8 = vpop.permute.xlu0 %870  ;;  %1539 = vrot.lane.b32.xlu1 %v1536_v60, %s2901_s29  ;;  %v1573_v60 = vcombine.high %v3698_v27, %v3698_v27 }
 0x179   : > { %4674 = vst [vmem:[#allocation65_spill] sm:$0xff] %v3689_v8  ;;  %2620 = vset.pattern.permute.xlu1 %v2902_v1 }
 0x17a   : > { %v3692_v58 = vpop.permute.xlu1 %872  ;;  %1185 = vrot.lane.b32.xlu0 %v3509_v4, %s2882_s25  ;;  %v2904_v4 = vmov 33  }
 0x17b   : > { %4675 = vst [vmem:[#allocation66_spill] sm:$0xff] %v3692_v58 }
 0x17c   : > { %v3700_v51 = vpop.permute.xlu0 %907  ;;  %1554 = vperm.xlu1 %2620, %v3610_v49  }
 0x17d   : > { %4676 = vst [vmem:[#allocation67_spill] sm:$0xff] %v3700_v51  ;;  %v4726_v51 = vld [vmem:[#allocation40_spill] sm:$0xff] }
 0x17e   : > { %v3703_v53 = vpop.permute.xlu1 %909  ;;  %1189 = vrot.lane.b32.xlu0 %v3279_v56, %s2882_s25  ;;  %s2905_s25 = smov 44  }
 0x17f   : > { %4677 = vst [vmem:[#allocation68_spill] sm:$0xff] %v3703_v53 }
 0x180   : > { %v3709_v1 = vpop.permute.xlu0 %944  ;;  %1576 = vrot.lane.b32.xlu1 %v1573_v60, %s2903_s8  ;;  %v1610_v60 = vcombine.high %v3716_v14, %v3716_v14 }
 0x181   : > { %4678 = vst [vmem:[#allocation69_spill] sm:$0xff] %v3709_v1  ;;  %2621 = vset.pattern.permute.xlu1 %v2904_v4  ;;  %v1806_v1 = vrot.slane %v3389_v20, %v3103_v54  ;;  %v4713_v20 = vld [vmem:[#allocation37_spill] sm:$0xff] }
 0x182   : > { %1222 = vrot.lane.b32.xlu0 %v3523_v24, %s2884_s9  ;;  %v3718_v34 = vpop.permute.xlu1 %946 }
 0x183   : > { %4679 = vst [vmem:[#allocation70_spill] sm:$0xff] %v3718_v34  ;;  %v3898_v34 = vrot.slane %v4713_v20, %v3103_v54 }
 0x184   : > { %v3720_v56 = vpop.permute.xlu0 %981  ;;  %1591 = vperm.xlu1 %2621, %v3610_v49  }
 0x185   : > { %4680 = vst [vmem:[#allocation71_spill] sm:$0xff] %v3720_v56  ;;  %v3736_v56 = vrot.slane %v3335_v32, %v3103_v54  ;;  %v3753_v32 = vld [vmem:[%s4526_s0] sm:$0x3] }
 0x186   : > { %1226 = vrot.lane.b32.xlu0 %v3296_v9, %s2884_s9  ;;  %v3730_v24 = vpop.permute.xlu1 %983  ;;  %s2907_s9 = smov 28  }
 0x187   : > { %4682 = vst [vmem:[#allocation73_spill] sm:$0xff] %v3730_v24 }
 0x188   : > { %v3727_v4 = vpop.permute.xlu0 %1018  ;;  %1613 = vrot.lane.b32.xlu1 %v1610_v60, %s2905_s25  ;;  %v1647_v60 = vcombine.high %v3736_v56, %v3736_v56 }
 0x189   : > { %4681 = vst [vmem:[#allocation72_spill] sm:$0xff] %v3727_v4  ;;  %2622 = vset.pattern.permute.xlu1 %v2906_v38  ;;  %v2908_v38 = vmov 35  }
 0x18a   : > { %1259 = vrot.lane.b32.xlu0 %v3539_v22, %s2886_s7  ;;  %v3745_v4 = vpop.permute.xlu1 %1020 }
 0x18b   : > { %4684 = vst [vmem:[#allocation75_spill] sm:$0xff] %v3745_v4  ;;  %v2912_v4 = vmov 43  }
 0x18c   : > { %v3738_v9 = vpop.permute.xlu0 %1055  ;;  %1628 = vperm.xlu1 %2622, %v3610_v49  }
 0x18d   : > { %4683 = vst [vmem:[#allocation74_spill] sm:$0xff] %v3738_v9  ;;  %v2910_v9 = vmov 36  }
 0x18e   : > { %1263 = vrot.lane.b32.xlu0 %v3287_v3, %s2886_s7  ;;  %v3759_v3 = vrot.slane %v3350_v55, %v3103_v54  ;;  %s2909_s7 = smov 123  }
 0x190   : > { %1650 = vrot.lane.b32.xlu1 %v1647_v60, %s2907_s9  ;;  %v3748_v22 = vpop.permute.xlu0 %356  ;;  %v3764_v60 = vpop.permute.xlu1 %1057 }
 0x191   : > { %4685 = vst [vmem:[#allocation76_spill] sm:$0xff] %v3748_v22  ;;  %2623 = vset.pattern.permute.xlu1 %v2908_v38  ;;  %4687 = vst [vmem:[#allocation78_spill] sm:$0xff] %v3764_v60  ;;  %v1703_v38 = vcombine.high %v3759_v3, %v3759_v3 }
 0x192   : > { %1296 = vrot.lane.b32.xlu0 %v3553_v6, %s2888_s10 }
 0x194   : > { %1684 = vperm.xlu1 %2623, %v3753_v32   ;;  %v3762_v49 = vpop.permute.xlu0 %393  ;;  %v3775_v55 = vpop.permute.xlu1 %1094 }
 0x195   : > { %4686 = vst [vmem:[#allocation77_spill] sm:$0xff] %v3762_v49  ;;  %4689 = vst [vmem:[#allocation80_spill] sm:$0xff] %v3775_v55 }
 0x196   : > { %1300 = vrot.lane.b32.xlu0 %v3308_v39, %s2888_s10  ;;  %v4691_v39 = vld [vmem:[#allocation24_spill] sm:$0xff]  ;;  %s2402_s10 = sshll.u32 %s3078_s13, 1 }
 0x198   : > { %1706 = vrot.lane.b32.xlu1 %v1703_v38, %s2909_s7  ;;  %v3771_v6 = vpop.permute.xlu0 %430  ;;  %v3785_v38 = vld [vmem:[%s4526_s0] sm:$0x3] }
 0x199   : > { %4688 = vst [vmem:[#allocation79_spill] sm:$0xff] %v3771_v6  ;;  %2624 = vset.pattern.permute.xlu1 %v2910_v9  ;;  %v2911_v9 = vmov 42  }
 0x19a   : > { %1333 = vrot.lane.b32.xlu0 %v3573_v50, %s2890_s15 }
 0x19c   : > { %1721 = vperm.xlu1 %2624, %v3753_v32   ;;  %v3778_v60 = vpop.permute.xlu0 %467 }
 0x19d   : > { %4690 = vst [vmem:[#allocation81_spill] sm:$0xff] %v3778_v60 }
 0x19e   : > { %1337 = vrot.lane.b32.xlu0 %v4691_v39, %s2890_s15  ;;  %v4694_v39 = vld [vmem:[#allocation30_spill] sm:$0xff]  ;;  %s2913_s15 = smov 107  }
 0x19f   : > { %v3787_v6 = vpop.permute.xlu1 %1128  ;;  %v3800_v60 = vrot.slane %v4694_v39, %v3103_v54 }
 0x1a0   : > { %2626 = vset.pattern.permute.xlu1 %v2911_v9  ;;  %v3789_v49 = vpop.permute.xlu0 %504  ;;  %v4695_v9 = vld [vmem:[#allocation25_spill] sm:$0xff] }
 0x1a1   : > { %4692 = vst [vmem:[#allocation24_spill] sm:$0xff] %v3789_v49  ;;  %1962 = vperm.xlu1 %2626, %v3785_v38  }
 0x1a2   : > { %1370 = vrot.lane.b32.xlu0 %v3593_v36, %s2892_s24  ;;  %v1740_v36 = vcombine.high %v3800_v60, %v3800_v60 }
 0x1a3   : > { %v3794_v50 = vpop.permute.xlu1 %1150 }
 0x1a4   : > { %v3796_v55 = vpop.permute.xlu0 %541 }
 0x1a5   : > { %4693 = vst [vmem:[#allocation82_spill] sm:$0xff] %v3796_v55  ;;  %2627 = vset.pattern.permute.xlu1 %v2912_v4  ;;  %v2914_v4 = vmov 38  }
 0x1a6   : > { %1999 = vperm.xlu1 %2627, %v3785_v38   ;;  %1374 = vrot.lane.b32.xlu0 %v4695_v9, %s2892_s24  ;;  %v4698_v9 = vld [vmem:[#allocation26_spill] sm:$0xff]  ;;  %s2915_s24 = smov 91  }
 0x1a7   : > { %v3805_v49 = vpop.permute.xlu1 %1165 }
 0x1a8   : > { %v3807_v22 = vpop.permute.xlu0 %596 }
 0x1a9   : > { %4696 = vst [vmem:[#allocation30_spill] sm:$0xff] %v3807_v22 }
 0x1aa   : > { %1743 = vrot.lane.b32.xlu1 %v1740_v36, %s2913_s15  ;;  %1426 = vrot.lane.b32.xlu0 %v3618_v0, %s2894_s11  ;;  %v4700_v36 = vld [vmem:[#allocation31_spill] sm:$0xff] }
 0x1ab   : > { %v3814_v39 = vpop.permute.xlu1 %1187  ;;  %2628 = vset.pattern.permute.xlu1 %v2914_v4  ;;  %v1769_v40 = vrot.slane %v4700_v36, %v3103_v54  ;;  %v2916_v4 = vmov 39  }
 0x1ac   : > { %v3816_v55 = vpop.permute.xlu0 %633 }
 0x1ad   : > { %4697 = vst [vmem:[#allocation25_spill] sm:$0xff] %v3816_v55 }
 0x1ae   : > { %1795 = vperm.xlu1 %2628, %v3753_v32   ;;  %1430 = vrot.lane.b32.xlu0 %v4698_v9, %s2894_s11  ;;  %v1777_v9 = vcombine.high %v1769_v40, %v1769_v40  ;;  %s2919_s11 = smov 106  }
 0x1af   : > { %v3821_v22 = vpop.permute.xlu1 %1202 }
 0x1b0   : > { %v3823_v24 = vpop.permute.xlu0 %670 }
 0x1b1   : > { %4699 = vst [vmem:[#allocation26_spill] sm:$0xff] %v3823_v24  ;;  %v4702_v24 = vld [vmem:[#allocation27_spill] sm:$0xff] }
 0x1b2   : > { %1778 = vrot.lane.b32.xlu1 %v1769_v40, %s2915_s24  ;;  %1463 = vrot.lane.b32.xlu0 %v3638_v28, %s2896_s1 }
 0x1b3   : > { %v3830_v0 = vpop.permute.xlu1 %1224  ;;  %2630 = vset.pattern.permute.xlu1 %v2916_v4  ;;  %v1997_v4 = vld [vmem:[#allocation4] sm:$0x3f] }
 0x1b4   : > { %v3832_v55 = vpop.permute.xlu0 %707 }
 0x1b5   : > { %4701 = vst [vmem:[#allocation31_spill] sm:$0xff] %v3832_v55 }
 0x1b6   : > { %1780 = vrot.lane.b32.xlu1 %v1777_v9, %s2915_s24  ;;  %1467 = vrot.lane.b32.xlu0 %v4702_v24, %s2896_s1  ;;  %v1981_v24 = vcombine.high %v3843_v23, %v3843_v23  ;;  %v4705_v9 = vld [vmem:[#allocation28_spill] sm:$0xff]  ;;  %s2921_s1 = smov 90  }
 0x1b7   : > { %v3837_v31 = vpop.permute.xlu1 %1239 }
 0x1b8   : > { %v3839_v36 = vpop.permute.xlu0 %744 }
 0x1b9   : > { %4703 = vst [vmem:[#allocation27_spill] sm:$0xff] %v3839_v36  ;;  %v2918_v36 = vmov 40  }
 0x1ba   : > { %1832 = vperm.xlu1 %2630, %v3753_v32   ;;  %1500 = vrot.lane.b32.xlu0 %v3658_v13, %s2899_s5  ;;  %v3862_v13 = vrot.slane %v1997_v4, %v3103_v54 }
 0x1bb   : > { %v3848_v28 = vpop.permute.xlu1 %1261 }
 0x1bc   : > { %v3850_v40 = vpop.permute.xlu0 %781 }
 0x1bd   : > { %4704 = vst [vmem:[#allocation83_spill] sm:$0xff] %v3850_v40  ;;  %v2003_v40 = vcombine.high %v1997_v4, %v1997_v4 }
 0x1be   : > { %1984 = vrot.lane.b32.xlu1 %v1981_v24, %s2917_s30  ;;  %1504 = vrot.lane.b32.xlu0 %v4705_v9, %s2899_s5  ;;  %s2923_s5 = smov 59  }
 0x1bf   : > { %v3857_v57 = vpop.permute.xlu1 %1276  ;;  %2632 = vset.pattern.permute.xlu1 %v2918_v36  ;;  %v2017_v26 = vrot.slane %v2003_v40, %v3103_v54  ;;  %v4708_v36 = vld [vmem:[#allocation32_spill] sm:$0xff] }
 0x1c0   : > { %v3859_v55 = vpop.permute.xlu0 %818 }
 0x1c1   : > { %4706 = vst [vmem:[#allocation28_spill] sm:$0xff] %v3859_v55 }
 0x1c2   : > { %2019 = vrot.lane.b32.xlu1 %v3862_v13, %s2919_s11  ;;  %1537 = vrot.lane.b32.xlu0 %v3678_v30, %s2901_s29 }
 0x1c3   : > { %v3868_v24 = vpop.permute.xlu1 %1298 }
 0x1c4   : > { %v3870_v9 = vpop.permute.xlu0 %874 }
 0x1c5   : > { %4707 = vst [vmem:[#allocation84_spill] sm:$0xff] %v3870_v9 }
 0x1c6   : > { %2023 = vrot.lane.b32.xlu1 %v2017_v26, %s2919_s11  ;;  %1541 = vrot.lane.b32.xlu0 %v4708_v36, %s2901_s29  ;;  %v1814_v26 = vcombine.high %v1806_v1, %v1806_v1  ;;  %v4711_v36 = vld [vmem:[#allocation33_spill] sm:$0xff]  ;;  %s2925_s29 = smov 74  }
 0x1c7   : > { %v3876_v55 = vpop.permute.xlu1 %1313 }
 0x1c8   : > { %v3878_v4 = vpop.permute.xlu0 %911 }
 0x1c9   : > { %4709 = vst [vmem:[#allocation32_spill] sm:$0xff] %v3878_v4 }
 0x1ca   : > { %1815 = vrot.lane.b32.xlu1 %v1806_v1, %s2920_s16  ;;  %1574 = vrot.lane.b32.xlu0 %v3698_v27, %s2903_s8 }
 0x1cb   : > { %v3885_v30 = vpop.permute.xlu1 %1335 }
 0x1cc   : > { %v3887_v40 = vpop.permute.xlu0 %948 }
 0x1cd   : > { %4710 = vst [vmem:[#allocation85_spill] sm:$0xff] %v3887_v40 }
 0x1ce   : > { %1817 = vrot.lane.b32.xlu1 %v1814_v26, %s2920_s16  ;;  %1578 = vrot.lane.b32.xlu0 %v4711_v36, %s2903_s8  ;;  %v2055_v26 = vcombine.high %v3898_v34, %v3898_v34  ;;  %v4715_v36 = vld [vmem:[#allocation34_spill] sm:$0xff]  ;;  %s2927_s8 = smov 43  }
 0x1cf   : > { %v3892_v9 = vpop.permute.xlu1 %1350 }
 0x1d0   : > { %v3894_v4 = vpop.permute.xlu0 %985 }
 0x1d1   : > { %4712 = vst [vmem:[#allocation33_spill] sm:$0xff] %v3894_v4  ;;  %v2922_v4 = vmov 46  }
 0x1d2   : > { %1869 = vperm.xlu1 %2632, %v3753_v32   ;;  %1611 = vrot.lane.b32.xlu0 %v3716_v14, %s2905_s25  ;;  %v4717_v14 = vld [vmem:[#allocation38_spill] sm:$0xff] }
 0x1d3   : > { %v3903_v27 = vpop.permute.xlu1 %1372  ;;  %v3918_v8 = vrot.slane %v4717_v14, %v3103_v54 }
 0x1d4   : > { %v3905_v1 = vpop.permute.xlu0 %1022 }
 0x1d5   : > { %4714 = vst [vmem:[#allocation37_spill] sm:$0xff] %v3905_v1 }
 0x1d6   : > { %2058 = vrot.lane.b32.xlu1 %v2055_v26, %s2921_s1  ;;  %1615 = vrot.lane.b32.xlu0 %v4715_v36, %s2905_s25  ;;  %v1851_v36 = vcombine.high %v3918_v8, %v3918_v8  ;;  %s2929_s25 = smov 58  }
 0x1d7   : > { %v3912_v20 = vpop.permute.xlu1 %1406  ;;  %2633 = vset.pattern.permute.xlu1 %v2922_v4  ;;  %v4719_v4 = vld [vmem:[#allocation35_spill] sm:$0xff] }
 0x1d8   : > { %v3914_v40 = vpop.permute.xlu0 %1059 }
 0x1d9   : > { %4716 = vst [vmem:[#allocation34_spill] sm:$0xff] %v3914_v40  ;;  %v2924_v40 = vmov 41  }
 0x1da   : > { %2110 = vperm.xlu1 %2633, %v3785_v38   ;;  %1648 = vrot.lane.b32.xlu0 %v3736_v56, %s2907_s9  ;;  %v3938_v56 = vrot.slane %v3398_v62, %v3103_v54  ;;  %v2926_v62 = vmov 47  }
 0x1db   : > { %v3923_v1 = vpop.permute.xlu1 %1428 }
 0x1dc   : > { %v3925_v26 = vpop.permute.xlu0 %1092 }
 0x1dd   : > { %4718 = vst [vmem:[#allocation38_spill] sm:$0xff] %v3925_v26 }
 0x1de   : > { %1854 = vrot.lane.b32.xlu1 %v1851_v36, %s2923_s5  ;;  %1652 = vrot.lane.b32.xlu0 %v4719_v4, %s2907_s9  ;;  %v2092_v4 = vcombine.high %v3938_v56, %v3938_v56  ;;  %s2930_s9 = smov 27  }
 0x1df   : > { %v3932_v14 = vpop.permute.xlu1 %1443  ;;  %2634 = vset.pattern.permute.xlu1 %v2924_v40  ;;  %v4721_v40 = vld [vmem:[#allocation39_spill] sm:$0xff] }
 0x1e0   : > { %v3934_v58 = vpop.permute.xlu0 %1096 }
 0x1e1   : > { %4720 = vst [vmem:[#allocation35_spill] sm:$0xff] %v3934_v58 }
 0x1e2   : > { %1906 = vperm.xlu1 %2634, %v3753_v32   ;;  %1704 = vrot.lane.b32.xlu0 %v3759_v3, %s2909_s7  ;;  %v3954_v3 = vrot.slane %v3409_v17, %v3103_v54  ;;  %v2928_v17 = vmov 44  }
 0x1e3   : > { %v3943_v26 = vpop.permute.xlu1 %1465 }
 0x1e4   : > { %v1149_v36 = vpop.permute.xlu0 %1148  ;;  %4723 = vst [vmem:[#allocation86_spill] sm:$0xff] %v3954_v3 }
 0x1e5   : > { %v1155_v52 = vsel %vm1154_vm10, %v1149_v36, %v3794_v50 }
 0x1e6   : > { %2095 = vrot.lane.b32.xlu1 %v2092_v4, %s2925_s29  ;;  %1708 = vrot.lane.b32.xlu0 %v4721_v40, %s2909_s7  ;;  %v1888_v4 = vcombine.high %v3954_v3, %v3954_v3  ;;  %v2108_v40 = vld [vmem:[#allocation4] sm:$0x3f]  ;;  %v2931_v3 = vmov 45   ;;  %s260_s7 = sld [smem:[#allocation5]] }
 0x1e7   : > { %v3950_v58 = vpop.permute.xlu1 %1480  ;;  %2635 = vset.pattern.permute.xlu1 %v2926_v62 }
 0x1e8   : > { %4722 = vst [vmem:[#allocation39_spill] sm:$0xff] %v3950_v58  ;;  %v1153_v19 = vpop.permute.xlu0 %1152 }
 0x1ea   : > { %2147 = vperm.xlu1 %2635, %v3785_v38   ;;  %1758 = vperm.xlu0 %2625, %v3753_v32   ;;  %v3968_v32 = vrot.slane %v2108_v40, %v3103_v54 }
 0x1eb   : > { %v3958_v59 = vpop.permute.xlu1 %1502 }
 0x1ec   : > { %4724 = vst [vmem:[#allocation87_spill] sm:$0xff] %v3958_v59  ;;  %v1186_v43 = vpop.permute.xlu0 %1185  ;;  %v2114_v59 = vcombine.high %v2108_v40, %v2108_v40 }
 0x1ee   : > { %1891 = vrot.lane.b32.xlu1 %v1888_v4, %s2927_s8  ;;  %1741 = vrot.lane.b32.xlu0 %v3800_v60, %s2913_s15  ;;  %v2128_v60 = vrot.slane %v2114_v59, %v3103_v54  ;;  %v4729_v59 = vld [vmem:[#allocation41_spill] sm:$0xff] }
 0x1ef   : > { %v3965_v62 = vpop.permute.xlu1 %1517  ;;  %2629 = vset.pattern.permute.xlu0 %v2928_v17 }
 0x1f0   : > { %4725 = vst [vmem:[#allocation88_spill] sm:$0xff] %v3965_v62  ;;  %v1190_v58 = vpop.permute.xlu0 %1189  ;;  %v3977_v62 = vld [vmem:[#allocation4] sm:$0x3f] }
 0x1f1   : > { %v1917_v48 = vrot.slane %v3977_v62, %v3103_v54 }
 0x1f2   : > { %2130 = vrot.lane.b32.xlu1 %v3968_v32, %s2929_s25  ;;  %1745 = vrot.lane.b32.xlu0 %v4726_v51, %s2913_s15  ;;  %v1193_v51 = vsel %vm1191_vm9, %v3814_v39, %v1190_v58  ;;  %s243_s15 = scalar_lea.vmem [#allocation11], %s2402_s10 }
 0x1f3   : > { %v3974_v4 = vpop.permute.xlu1 %1539  ;;  %v1197_v58 = vmul.f32 %v1193_v51, %v3805_v49 }
 0x1f4   : > { %4727 = vst [vmem:[#allocation40_spill] sm:$0xff] %v3974_v4  ;;  %v1223_v53 = vpop.permute.xlu0 %1222  ;;  %v1192_v4 = vsel %vm1191_vm9, %v1186_v43, %v3814_v39  ;;  %v1925_v39 = vcombine.high %v1917_v48, %v1917_v48  ;;  %vm709_vm9 = vcmask 646144  }
 0x1f5   : > { %v1196_v45 = vmul.f32 %v1192_v4, %v3805_v49  ;;  %v1229_v2 = vsel %vm1228_vm11, %v1223_v53, %v3830_v0 }
 0x1f6   : > { %2134 = vrot.lane.b32.xlu1 %v2128_v60, %s2929_s25  ;;  %2036 = vperm.xlu0 %2629, %v3785_v38   ;;  %v1156_v60 = vsel %vm1154_vm10, %v3794_v50, %v1153_v19  ;;  %v1159_v50 = vmul.f32 %v1155_v52, %v3787_v6  ;;  %v1233_v53 = vmul.f32 %v1229_v2, %v3821_v22  ;;  %vm746_vm10 = vcmask 515072  }
 0x1f7   : > { %v3981_v40 = vpop.permute.xlu1 %1554  ;;  %v1160_v19 = vmul.f32 %v1156_v60, %v3787_v6 }
 0x1f8   : > { %4728 = vst [vmem:[#allocation89_spill] sm:$0xff] %v3981_v40  ;;  %v1227_v17 = vpop.permute.xlu0 %1226 }
 0x1f9   : > { %v1230_v40 = vsel %vm1228_vm11, %v3830_v0, %v1227_v17  ;;  %v1199_v49 = vadd.f32 %v1197_v58, %v1160_v19  ;;  %vm4604_vm11 = vcmask 384000  }
 0x1fa   : > { %1926 = vrot.lane.b32.xlu1 %v1917_v48, %s2930_s9  ;;  %1782 = vrot.lane.b32.xlu0 %v4729_v59, %s2915_s24  ;;  %v2145_v59 = vld [vmem:[#allocation4] sm:$0x3f]  ;;  %v1234_v17 = vmul.f32 %v1230_v40, %v3821_v22  ;;  %v1198_v40 = vadd.f32 %v1196_v45, %v1159_v50  ;;  %v2018_v45 = vcombine.high %v3862_v13, %v3862_v13  ;;  %s2298_s24 = sshll.u32 %s243_s15, 4  ;;  %s2299_s24 = int_to_ptr.vmem [resolvable:$true] %s2298_s24 }
 0x1fb   : > { %v3992_v11 = vpop.permute.xlu1 %1576  ;;  %2631 = vset.pattern.permute.xlu0 %v2931_v3  ;;  %v4010_v3 = vrot.slane %v2145_v59, %v3103_v54  ;;  %v2151_v4 = vcombine.high %v2145_v59, %v2145_v59 }
 0x1fc   : > { %v1260_v43 = vpop.permute.xlu0 %1259  ;;  %v1236_v52 = vadd.f32 %v1234_v17, %v1199_v49  ;;  %v1235_v22 = vadd.f32 %v1233_v53, %v1198_v40 }
 0x1fd   : > { %v1266_v36 = vsel %vm1265_vm12, %v1260_v43, %v3848_v28  ;;  %v2165_v43 = vrot.slane %v2151_v4, %v3103_v54 }
 0x1fe   : > { %1928 = vrot.lane.b32.xlu1 %v1925_v39, %s2930_s9  ;;  %1982 = vrot.lane.b32.xlu0 %v3843_v23, %s2917_s30  ;;  %v4014_v23 = vld [vmem:[#allocation4] sm:$0x3f]  ;;  %v1270_v6 = vmul.f32 %v1266_v36, %v3837_v31 }
 0x1ff   : > { %v4006_v48 = vpop.permute.xlu1 %1591 }
 0x200   : > { %4730 = vst [vmem:[#allocation41_spill] sm:$0xff] %v4006_v48  ;;  %v1264_v0 = vpop.permute.xlu0 %1263  ;;  %v1272_v59 = vadd.f32 %v1270_v6, %v1235_v22 }
 0x201   : > { %v1267_v51 = vsel %vm1265_vm12, %v3848_v28, %v1264_v0  ;;  %vm913_vm12 = vcmask 900096  }
 0x202   : > { %v1271_v60 = vmul.f32 %v1267_v51, %v3837_v31  ;;  %2167 = vrot.lane.b32.xlu1 %v4010_v3, %s2932_s28  ;;  %1986 = vrot.lane.b32.xlu0 %v3421_v21, %s2917_s30  ;;  %v4029_v31 = vrot.slane %v4014_v23, %v3103_v54 }
 0x203   : > { %v4022_v2 = vpop.permute.xlu1 %1613 }
 0x204   : > { %4731 = vst [vmem:[#allocation90_spill] sm:$0xff] %v4022_v2  ;;  %v1273_v28 = vadd.f32 %v1271_v60, %v1236_v52  ;;  %v1297_v58 = vpop.permute.xlu0 %1296  ;;  %4732 = vst [vmem:[#allocation91_spill] sm:$0xff] %v4029_v31  ;;  %v2203_v50 = vcombine.high %v4029_v31, %v4029_v31 }
 0x205   : > { %v1303_v39 = vsel %vm1302_vm13, %v1297_v58, %v3868_v24 }
 0x206   : > { %v1307_v21 = vmul.f32 %v1303_v39, %v3857_v57  ;;  %2171 = vrot.lane.b32.xlu1 %v2165_v43, %s2932_s28  ;;  %2021 = vrot.lane.b32.xlu0 %v2018_v45, %s2919_s11  ;;  %v2403_v39 = vld.sshfl [vmem:[#allocation4] sm:$0x33 pattern:$0x76325410] }
 0x207   : > { %v4036_v13 = vpop.permute.xlu1 %1628 }
 0x208   : > { %4733 = vst [vmem:[#allocation92_spill] sm:$0xff] %v4036_v13  ;;  %v1309_v19 = vadd.f32 %v1307_v21, %v1272_v59  ;;  %v1301_v17 = vpop.permute.xlu0 %1300  ;;  %v323_v21 = vcombine.high %v2403_v39, %v2403_v39  ;;  %v4779_v13 = vld [vmem:[#allocation64_spill] sm:$0xff] }
 0x209   : > { %v1304_v36 = vsel %vm1302_vm13, %v3868_v24, %v1301_v17  ;;  %v4739_v17 = vld [vmem:[#allocation15_spill] sm:$0xff]  ;;  %vm1469_vm13 = vcmask 883712  }
 0x20a   : > { %v1308_v49 = vmul.f32 %v1304_v36, %v3857_v57  ;;  %2206 = vrot.lane.b32.xlu1 %v2203_v50, %s2933_s26  ;;  %2073 = vperm.xlu0 %2631, %v3785_v38   ;;  %v2934_v57 = vmov 48   ;;  %v4072_v50 = vsub.s32 0, %v4739_v17  ;;  %v4074_v36 = vld [vmem:[#allocation6] ss:$8 sm:$0x3] }
 0x20b   : > { %v4045_v53 = vpop.permute.xlu1 %1650  ;;  %4740 = vst [vmem:[#allocation98_spill] sm:$0xff] %v4074_v36 }
 0x20c   : > { %4734 = vst [vmem:[#allocation93_spill] sm:$0xff] %v4045_v53  ;;  %v1310_v0 = vadd.f32 %v1308_v49, %v1273_v28  ;;  %v1334_v4 = vpop.permute.xlu0 %1333  ;;  %v4781_v53 = vld [vmem:[#allocation48_spill] sm:$0xff] }
 0x20d   : > { %v1340_v40 = vsel %vm1339_vm14, %v1334_v4, %v3885_v30  ;;  %v4743_v4 = vld [vmem:[#allocation16_spill] sm:$0xff] }
 0x20e   : > { %v1344_v51 = vmul.f32 %v1340_v40, %v3876_v55  ;;  %1819 = vrot.lane.b32.xlu0 %v3426_v10, %s2920_s16  ;;  %v4082_v40 = vmul.f32 %v323_v21, %v4743_v4  ;;  %v4749_v21 = vld [vmem:[#allocation19_spill] sm:$0xff]  ;;  %s2296_s16 = scalar_lea.hbm %s4530_s4, %s2412_s23 }
 0x20f   : > { %v4051_v24 = vpop.permute.xlu1 %1684  ;;  %2636 = vset.pattern.permute.xlu0 %v2934_v57  ;;  %v396_v57 = vsel %vm4585_vm1, %v3564_v18, %v3567_v33  ;;  %v433_v18 = vsel %vm4584_vm2, %v3575_v46, %v3578_v12  ;;  %vm4608_vm2 = vcmask 261120   ;;  %v636_v46 = vsel %vm635_vm5, %v3629_v63, %v3632_v61 }
 0x210   : > { %4735 = vst [vmem:[#allocation94_spill] sm:$0xff] %v4051_v24  ;;  %v1346_v52 = vadd.f32 %v1344_v51, %v1309_v19  ;;  %v1338_v6 = vpop.permute.xlu0 %1337  ;;  %v4091_v51 = vld [vmem:[#allocation6 + $0x1] ss:$8 sm:$0x3]  ;;  %vm820_vm1 = vcmask 252928  }
 0x211   : > { %v1341_v60 = vsel %vm1339_vm14, %v3885_v30, %v1338_v6  ;;  %4744 = vst [vmem:[#allocation16_spill] sm:$0xff] %v4091_v51  ;;  %v4745_v6 = vld [vmem:[#allocation17_spill] sm:$0xff]  ;;  %vm876_vm14 = vcmask 1031168   ;;  %v4771_v24 = vld [vmem:[#allocation66_spill] sm:$0xff] }
 0x212   : > { %v1345_v45 = vmul.f32 %v1341_v60, %v3876_v55  ;;  %2056 = vrot.lane.b32.xlu0 %v3898_v34, %s2921_s1  ;;  %v4783_v51 = vld [vmem:[#allocation73_spill] sm:$0xff] }
 0x213   : > { %v4057_v22 = vpop.permute.xlu1 %1706 }
 0x214   : > { %4736 = vst [vmem:[#allocation95_spill] sm:$0xff] %v4057_v22  ;;  %v1347_v28 = vadd.f32 %v1345_v45, %v1310_v0  ;;  %v1371_v58 = vpop.permute.xlu0 %1370  ;;  %v4773_v22 = vld [vmem:[#allocation70_spill] sm:$0xff] }
 0x215   : > { %v1377_v10 = vsel %vm1376_vm15, %v1371_v58, %v3903_v27 }
 0x216   : > { %v1381_v43 = vmul.f32 %v1377_v10, %v3892_v9  ;;  %2060 = vrot.lane.b32.xlu0 %v3429_v42, %s2921_s1  ;;  %s2284_s1 = scalar_lea.sflag [#allocation8], %s3078_s13 }
 0x217   : > { %v4063_v59 = vpop.permute.xlu1 %1721 }
 0x218   : > { %4737 = vst [vmem:[#allocation96_spill] sm:$0xff] %v4063_v59  ;;  %v4065_v30 = vadd.f32 %v1381_v43, %v1346_v52  ;;  %v1375_v55 = vpop.permute.xlu0 %1374 }
 0x219   : > { %v1378_v34 = vsel %vm1376_vm15, %v3903_v27, %v1375_v55  ;;  %v326_v27 = vmul.f32 %v2403_v39, %v4743_v4  ;;  %vm950_vm15 = vcmask 769024  }
 0x21a   : > { %4738 = vst [vmem:[#allocation97_spill] sm:$0xff] %v4065_v30  ;;  %v1382_v19 = vmul.f32 %v1378_v34, %v3892_v9  ;;  %1852 = vrot.lane.b32.xlu0 %v3918_v8, %s2923_s5  ;;  %v359_v8 = vsel %vm4586_vm0, %v3555_v5, %v3558_v37  ;;  %v1910_v5 = vcombine.high %v3977_v62, %v3977_v62  ;;  %v4747_v62 = vld [vmem:[#allocation18_spill] sm:$0xff]  ;;  %vm987_vm0 = vcmask 637952  }
 0x21b   : > { %v363_v60 = vmul.f32 %v359_v8, %v4745_v6  ;;  %v599_v8 = vsel %vm598_vm4, %v3620_v47, %v3623_v41 }
 0x21c   : > { %v4076_v42 = vadd.f32 %v1382_v19, %v1347_v28  ;;  %v1427_v49 = vpop.permute.xlu0 %1426  ;;  %v4078_v0 = vpop.permute.xlu1 %1962  ;;  %v437_v19 = vmul.f32 %v433_v18, %v4749_v21  ;;  %v4752_v18 = vld [vmem:[#allocation20_spill] sm:$0xff] }
 0x21d   : > { %4742 = vst [vmem:[#allocation100_spill] sm:$0xff] %v4078_v0  ;;  %v1433_v58 = vsel %vm1432_vm7, %v1427_v49, %v3923_v1  ;;  %v365_v34 = vadd.f32 %v363_v60, %v326_v27  ;;  %v470_v49 = vsel %vm4587_vm3, %v3584_v29, %v3587_v44  ;;  %vm1024_vm3 = vcmask 506880   ;;  %v4765_v0 = vld [vmem:[#allocation67_spill] sm:$0xff] }
 0x21e   : > { %4741 = vst [vmem:[#allocation99_spill] sm:$0xff] %v4076_v42  ;;  %1856 = vrot.lane.b32.xlu0 %v3432_v16, %s2923_s5  ;;  %v2188_v16 = vcombine.high %v4014_v23, %v4014_v23  ;;  %v400_v23 = vmul.f32 %v396_v57, %v4747_v62  ;;  %v1437_v27 = vmul.f32 %v1433_v58, %v3912_v20  ;;  %v4152_v58 = vsub.s32 1, %v4739_v17  ;;  %v4759_v17 = vld [vmem:[#allocation86_spill] sm:$0xff]  ;;  %s2747_s5 = scalar_lea.vmem %s2299_s24, 32 }
 0x21f   : > { %v474_v47 = vmul.f32 %v470_v49, %v4752_v18  ;;  %p2748_p1 = scmp.ne.s32.totalorder %s2299_s24, %s2747_s5 }
 0x220   : > { %v1431_v52 = vpop.permute.xlu0 %1430  ;;  %v4124_v55 = vrot.slane %v2188_v16, %v3103_v54  ;;  %v402_v29 = vadd.f32 %v400_v23, %v365_v34  ;;  %v4756_v34 = vld [vmem:[#allocation36_spill] sm:$0xff] }
 0x221   : > { %v4101_v45 = vpop.permute.xlu1 %1999  ;;  %v1434_v60 = vsel %vm1432_vm7, %v3923_v1, %v1431_v52  ;;  %v4757_v1 = vld [vmem:[#allocation60_spill] sm:$0xff]  ;;  %v4758_v52 = vld [vmem:[#allocation59_spill] sm:$0xff]  ;;  %vm1506_vm7 = vcmask 752640   ;;  %p2749_p8 = pnand %p2748_p1, %p3051_p0 }
 0x222   : > { %4746 = vst [vmem:[#allocation17_spill] sm:$0xff] %v4101_v45  ;;  %2093 = vrot.lane.b32.xlu0 %v3938_v56, %s2925_s29  ;;  %v4119_v56 = vrot.slane %v1910_v5, %v3103_v54  ;;  %4748 = vst [vmem:[#allocation18_spill] sm:$0xff] %v4124_v55  ;;  %v673_v54 = vsel %vm672_vm8, %v3640_v15, %v3643_v25  ;;  %v4751_v5 = vld [vmem:[#allocation29_spill] sm:$0xff]  ;;  %v439_v28 = vadd.f32 %v437_v19, %v402_v29  ;;  %v4760_v19 = vld [vmem:[#allocation55_spill] sm:$0xff] }
 0x223   : > { %v640_v16 = vmul.f32 %v636_v46, %v4751_v5  ;;  %4754 = vst [vmem:[#allocation29_spill] sm:$0xff] %v4152_v58  ;;  %v677_v46 = vmul.f32 %v673_v54, %v4756_v34  ;;  %v747_v49 = vsel %vm746_vm10, %v4758_v52, %v4757_v1  ;;  %v1438_v10 = vmul.f32 %v1434_v60, %v3912_v20  ;;  %v4764_v52 = vld [vmem:[#allocation68_spill] sm:$0xff]  ;;  %v4782_v58 = vld [vmem:[#allocation45_spill] sm:$0xff]  ;;  %p2750_p13 = pneg %p2749_p8 }
 0x224   : > { %v1464_v43 = vpop.permute.xlu0 %1463  ;;  %v914_v20 = vsel %vm913_vm12, %v4765_v0, %v4764_v52  ;;  %v4766_v45 = vld [vmem:[#allocation44_spill] sm:$0xff] }
 0x225   : > { %v1470_v63 = vsel %vm1469_vm13, %v1464_v43, %v3943_v26  ;;  %v4132_v4 = vpop.permute.xlu1 %1743  ;;  %v4753_v43 = vld [vmem:[#allocation58_spill] sm:$0xff]  ;;  %v751_v59 = vmul.f32 %v747_v49, %v4766_v45  ;;  %v4776_v49 = vld [vmem:[#allocation43_spill] sm:$0xff]  ;;  %v4785_v55 = vld [vmem:[#allocation76_spill] sm:$0xff] }
 0x226   : > { %4750 = vst [vmem:[#allocation19_spill] sm:$0xff] %v4132_v4  ;;  %v1474_v57 = vmul.f32 %v1470_v63, %v3932_v14  ;;  %2097 = vrot.lane.b32.xlu0 %v3438_v35, %s2925_s29  ;;  %v710_v15 = vsel %vm709_vm9, %v4753_v43, %v3652_v7  ;;  %v4755_v35 = vld [vmem:[#allocation23_spill] sm:$0xff]  ;;  %v4772_v4 = vld [vmem:[#allocation65_spill] sm:$0xff]  ;;  %s2936_s29 = smov [#allocation11]  }
 0x227   : > { %v603_v23 = vmul.f32 %v599_v8, %v4755_v35  ;;  %v877_v0 = vsel %vm876_vm14, %v4772_v4, %v4771_v24  ;;  %v918_v4 = vmul.f32 %v914_v20, %v4781_v53  ;;  %s2751_s20 = sshll.u32 %s2936_s29, 4  ;;  %s2752_s20 = int_to_ptr.vmem [resolvable:$false] %s2751_s20 }
 0x228   : > { %v1476_v63 = vadd.f32 %v1474_v57, %v1437_v27  ;;  %v1468_v9 = vpop.permute.xlu0 %1467  ;;  %v4761_v27 = vld [vmem:[#allocation54_spill] sm:$0xff]  ;;  %p2754_p11 = scmp.lt.s32.totalorder %s2299_s24, %s2752_s20 }
 0x229   : > { %v1471_v39 = vsel %vm1469_vm13, %v3943_v26, %v1468_v9  ;;  %v507_v8 = vsel %vm506_vm6, %v4761_v27, %v4760_v19  ;;  %v642_v54 = vadd.f32 %v640_v16, %v603_v23  ;;  %v4762_v57 = vld [vmem:[#allocation42_spill] sm:$0xff]  ;;  %vm1061_vm13 = vcmask 375808   ;;  %v4169_v26 = vpop.permute.xlu1 %1795  ;;  %v4768_v16 = vld [vmem:[#allocation61_spill] sm:$0xff]  ;;  %v4769_v23 = vld [vmem:[#allocation87_spill] sm:$0xff] }
 0x22a   : > { %v1475_v43 = vmul.f32 %v1471_v39, %v3932_v14  ;;  %1889 = vrot.lane.b32.xlu0 %v4759_v17, %s2927_s8  ;;  %v714_v29 = vmul.f32 %v710_v15, %v4762_v57  ;;  %4763 = vst [vmem:[#allocation20_spill] sm:$0xff] %v4169_v26  ;;  %v476_v9 = vadd.f32 %v474_v47, %v439_v28  ;;  %v4767_v27 = vld [vmem:[#allocation62_spill] sm:$0xff]  ;;  %v4770_v28 = vld [vmem:[#allocation21_spill] sm:$0xff] }
 0x22b   : > { %v679_v60 = vadd.f32 %v677_v46, %v642_v54  ;;  %v784_v15 = vsel %vm4604_vm11, %v4768_v16, %v4767_v27  ;;  %v511_v47 = vmul.f32 %v507_v8, %v4770_v28  ;;  %v4774_v14 = vld [vmem:[#allocation69_spill] sm:$0xff]  ;;  %v4775_v46 = vld [vmem:[#allocation39_spill] sm:$0xff]  ;;  %v4778_v16 = vld [vmem:[#allocation56_spill] sm:$0xff]  ;;  %vm4786_vm11 = vcmask 916480  }
 0x22c   : > { %v1477_v17 = vadd.f32 %v1475_v43, %v1438_v10  ;;  %v1501_v39 = vpop.permute.xlu0 %1500  ;;  %v951_v10 = vsel %vm950_vm15, %v4774_v14, %v4773_v22  ;;  %v4777_v54 = vld [vmem:[#allocation57_spill] sm:$0xff]  ;;  %v4780_v8 = vld [vmem:[#allocation63_spill] sm:$0xff]  ;;  %v788_v36 = vmul.f32 %v784_v15, %v4782_v58  ;;  %v4789_v15 = vld [vmem:[#allocation46_spill] sm:$0xff] }
 0x22d   : > { %v1507_v26 = vsel %vm1506_vm7, %v1501_v39, %v4769_v23  ;;  %v544_v42 = vsel %vm4608_vm2, %v4778_v16, %v4777_v54  ;;  %v716_v39 = vadd.f32 %v714_v29, %v679_v60  ;;  %v821_v30 = vsel %vm820_vm1, %v4780_v8, %v4779_v13  ;;  %v4784_v14 = vld [vmem:[#allocation71_spill] sm:$0xff]  ;;  %v4788_v54 = vld [vmem:[#allocation49_spill] sm:$0xff]  ;;  %v4208_v8 = vpop.permute.xlu1 %1778 }
 0x22e   : > { %v1511_v43 = vmul.f32 %v1507_v26, %v4775_v46  ;;  %1893 = vrot.lane.b32.xlu0 %v4776_v49, %s2927_s8  ;;  %v988_v26 = vsel %vm987_vm0, %v4784_v14, %v4783_v51  ;;  %v360_v49 = vsel %vm4786_vm11, %v3558_v37, %v4785_v55  ;;  %v4787_v29 = vld [vmem:[#allocation47_spill] sm:$0xff]  ;;  %v955_v31 = vmul.f32 %v951_v10, %v4788_v54  ;;  %v4791_v14 = vld [vmem:[#allocation72_spill] sm:$0xff]  ;;  %s2753_s8 = scalar_lea.vmem %s2752_s20, 64 }
 0x22f   : > { %v753_v16 = vadd.f32 %v751_v59, %v716_v39  ;;  %v881_v60 = vmul.f32 %v877_v0, %v4787_v29  ;;  %v825_v58 = vmul.f32 %v821_v30, %v4789_v15  ;;  %v4790_v13 = vld [vmem:[#allocation75_spill] sm:$0xff]  ;;  %v4792_v59 = vcombine.high %v3968_v32, %v3968_v32  ;;  %p2755_p2 = scmp.lt.s32.totalorder %s2753_s8, %s2747_s5 }
 0x230   : > { %v1513_v48 = vadd.f32 %v1511_v43, %v1476_v63  ;;  %v1505_v2 = vpop.permute.xlu0 %1504  ;;  %v1025_v27 = vsel %vm1024_vm3, %v4791_v14, %v4790_v13  ;;  %vm1543_vm11 = vcmask 621568   ;;  %v4793_v63 = vld [vmem:[#allocation50_spill] sm:$0xff]  ;;  %v364_v10 = vmul.f32 %v360_v49, %v4745_v6  ;;  %v4800_v49 = vld [vmem:[#allocation40_spill] sm:$0xff] }
 0x231   : > { %v1508_v20 = vsel %vm1506_vm7, %v4769_v23, %v1505_v2  ;;  %v920_v55 = vadd.f32 %v918_v4, %v881_v60  ;;  %v992_v0 = vmul.f32 %v988_v26, %v4793_v63  ;;  %v4794_v2 = vld [vmem:[#allocation77_spill] sm:$0xff]  ;;  %vm4795_vm7 = vcmask 785408   ;;  %v4796_v43 = vld [vmem:[#allocation22_spill] sm:$0xff]  ;;  %v4797_v4 = vld [vmem:[#allocation51_spill] sm:$0xff]  ;;  %p2756_p12 = por %p2755_p2, %p2754_p11 }
 0x232   : > { %v1512_v37 = vmul.f32 %v1508_v20, %v4775_v46  ;;  %2132 = vrot.lane.b32.xlu0 %v4792_v59, %s2929_s25  ;;  %v397_v30 = vsel %vm4795_vm7, %v3567_v33, %v4794_v2  ;;  %v4226_v23 = vadd.f32 %v511_v47, %v476_v9  ;;  %v4229_v39 = vmul.f32 %v544_v42, %v4796_v43  ;;  %v4231_v20 = vld [vmem:[#allocation6 + $0x2] ss:$8 sm:$0x3] }
 0x233   : > { %v790_v46 = vadd.f32 %v788_v36, %v753_v16  ;;  %v957_v59 = vadd.f32 %v955_v31, %v920_v55  ;;  %v1029_v60 = vmul.f32 %v1025_v27, %v4797_v4  ;;  %v4798_v26 = vld [vmem:[#allocation79_spill] sm:$0xff]  ;;  %vm4799_vm2 = vcmask 654336   ;;  %v4801_v9 = vld [vmem:[#allocation78_spill] sm:$0xff]  ;;  %v4803_v16 = vld [vmem:[#allocation25_spill] sm:$0xff]  ;;  %p2757_p3 = pnand %p2756_p12, %p2750_p13 }
 0x234   : > { %v1514_v32 = vadd.f32 %v1512_v37, %v1477_v17  ;;  %v1538_v14 = vpop.permute.xlu0 %1537  ;;  %v434_v6 = vsel %vm4799_vm2, %v3578_v12, %v4798_v26  ;;  %v4802_v47 = vld [vmem:[#allocation74_spill] sm:$0xff]  ;;  %v401_v36 = vmul.f32 %v397_v30, %v4747_v62  ;;  %v637_v17 = vsel %vm635_vm5, %v3632_v61, %v4803_v16  ;;  %v4804_v31 = vld [vmem:[#allocation88_spill] sm:$0xff] }
 0x235   : > { %v1544_v33 = vsel %vm1543_vm11, %v1538_v14, %v4800_v49  ;;  %v1062_v42 = vsel %vm1061_vm13, %v4802_v47, %v4801_v9  ;;  %vm1098_vm7 = vcmask 244736   ;;  %v4248_v37 = vadd.f32 %v825_v58, %v790_v46  ;;  %v4253_v14 = vpop.permute.xlu1 %1780  ;;  %v4805_v30 = vld [vmem:[#allocation30_spill] sm:$0xff] }
 0x236   : > { %v1548_v27 = vmul.f32 %v1544_v33, %v4804_v31  ;;  %2184 = vperm.xlu0 %2636, %v3785_v38   ;;  %v994_v12 = vadd.f32 %v992_v0, %v957_v59  ;;  %v366_v55 = vadd.f32 %v364_v10, %v4082_v40  ;;  %v1113_v2 = vrot.slane %v4231_v20, %v4072_v50  ;;  %v4806_v26 = vld [vmem:[#allocation26_spill] sm:$0xff]  ;;  %v4807_v59 = vld [vmem:[#allocation52_spill] sm:$0xff] }
 0x237   : > { %v438_v62 = vmul.f32 %v434_v6, %v4749_v21  ;;  %v600_v61 = vsel %vm598_vm4, %v3623_v41, %v4805_v30  ;;  %v674_v38 = vsel %vm672_vm8, %v3643_v25, %v4806_v26  ;;  %v1066_v40 = vmul.f32 %v1062_v42, %v4807_v59  ;;  %v4808_v21 = vld [vmem:[#allocation81_spill] sm:$0xff]  ;;  %v4810_v25 = vld [vmem:[#allocation24_spill] sm:$0xff] }
 0x238   : > { %v1550_v58 = vadd.f32 %v1548_v27, %v1513_v48  ;;  %v1542_v46 = vpop.permute.xlu0 %1541  ;;  %v1031_v0 = vadd.f32 %v1029_v60, %v994_v12  ;;  %v641_v10 = vmul.f32 %v637_v17, %v4751_v5  ;;  %v403_v47 = vadd.f32 %v401_v36, %v366_v55  ;;  %v4813_v17 = vld [vmem:[#allocation27_spill] sm:$0xff]  ;;  %v4814_v12 = vld [vmem:[#allocation84_spill] sm:$0xff]  ;;  %v4816_v30 = vld [vmem:[#allocation89_spill] sm:$0xff] }
 0x239   : > { %v1545_v33 = vsel %vm1543_vm11, %v4800_v49, %v1542_v46  ;;  %vm4809_vm2 = vcmask 523264   ;;  %vm1580_vm4 = vcmask 490496   ;;  %v508_v48 = vsel %vm506_vm6, %v4760_v19, %v4810_v25  ;;  %v4811_v49 = vld [vmem:[#allocation32_spill] sm:$0xff]  ;;  %v4292_v55 = vpop.permute.xlu1 %1832  ;;  %v4818_v46 = vld [vmem:[#allocation33_spill] sm:$0xff] }
 0x23a   : > { %v471_v6 = vsel %vm4809_vm2, %v3587_v44, %v4808_v21  ;;  %v1549_v41 = vmul.f32 %v1545_v33, %v4804_v31  ;;  %1930 = vrot.lane.b32.xlu0 %v4119_v56, %s2930_s9  ;;  %v604_v5 = vmul.f32 %v600_v61, %v4755_v35  ;;  %v678_v60 = vmul.f32 %v674_v38, %v4756_v34  ;;  %v4812_v44 = vld [vmem:[#allocation31_spill] sm:$0xff]  ;;  %v4815_v34 = vld [vmem:[#allocation85_spill] sm:$0xff] }
 0x23b   : > { %v915_v42 = vsel %vm913_vm12, %v4764_v52, %v4811_v49  ;;  %v440_v36 = vadd.f32 %v438_v62, %v403_v47  ;;  %v711_v16 = vsel %vm709_vm9, %v3652_v7, %v4812_v44  ;;  %v748_v56 = vsel %vm746_vm10, %v4757_v1, %v4813_v17  ;;  %v4824_v25 = vld [vmem:[#allocation37_spill] sm:$0xff]  ;;  %v4827_v49 = vld [vmem:[#allocation91_spill] sm:$0xff] }
 0x23c   : > { %v1551_v31 = vadd.f32 %v1549_v41, %v1514_v32  ;;  %v1575_v27 = vpop.permute.xlu0 %1574  ;;  %v643_v19 = vadd.f32 %v641_v10, %v604_v5  ;;  %v878_v35 = vsel %vm876_vm14, %v4771_v24, %v4814_v12  ;;  %v952_v52 = vsel %vm950_vm15, %v4773_v22, %v4815_v34  ;;  %v4819_v10 = vld [vmem:[#allocation83_spill] sm:$0xff]  ;;  %v4823_v41 = vld [vmem:[#allocation64_spill] sm:$0xff]  ;;  %v4829_v44 = vld [vmem:[#allocation57_spill] sm:$0xff] }
 0x23d   : > { %v1581_v7 = vsel %vm1580_vm4, %v1575_v27, %v3992_v11  ;;  %v475_v62 = vmul.f32 %v471_v6, %v4752_v18  ;;  %v512_v1 = vmul.f32 %v508_v48, %v4770_v28  ;;  %v919_v32 = vmul.f32 %v915_v42, %v4781_v53  ;;  %v4820_v28 = vld [vmem:[#allocation62_spill] sm:$0xff]  ;;  %v4822_v6 = vld [vmem:[#allocation28_spill] sm:$0xff]  ;;  %v4831_v17 = vld [vmem:[#allocation45_spill] sm:$0xff] }
 0x23e   : > { %v1585_v61 = vmul.f32 %v1581_v7, %v4816_v30  ;;  %v4817_v24 = vcombine.high %v4010_v3, %v4010_v3  ;;  %v680_v26 = vadd.f32 %v678_v60, %v643_v19  ;;  %v715_v22 = vmul.f32 %v711_v16, %v4762_v57  ;;  %v4825_v48 = vld [vmem:[#allocation80_spill] sm:$0xff]  ;;  %v4828_v42 = vld [vmem:[#allocation82_spill] sm:$0xff]  ;;  %v4336_v19 = vpop.permute.xlu1 %1984 }
 0x23f   : > { %v752_v38 = vmul.f32 %v748_v56, %v4766_v45  ;;  %v989_v18 = vsel %vm987_vm0, %v4783_v51, %v4818_v46  ;;  %vm4821_vm5 = vcmask 384000   ;;  %v882_v33 = vmul.f32 %v878_v35, %v4787_v29  ;;  %v4826_v51 = vld [vmem:[#allocation38_spill] sm:$0xff]  ;;  %v4833_v35 = vld [vmem:[#allocation53_spill] sm:$0xff] }
 0x240   : > { %2169 = vrot.lane.b32.xlu0 %v4817_v24, %s2932_s28  ;;  %v785_v53 = vsel %vm4821_vm5, %v4820_v28, %v4819_v10  ;;  %v956_v47 = vmul.f32 %v952_v52, %v4788_v54  ;;  %v1587_v21 = vadd.f32 %v1585_v61, %v1550_v58  ;;  %v1579_v3 = vpop.permute.xlu0 %1578  ;;  %v822_v57 = vsel %vm820_vm1, %v4823_v41, %v4822_v6  ;;  %v4832_v27 = vld [vmem:[#allocation34_spill] sm:$0xff]  ;;  %v4834_v61 = vld [vmem:[#allocation35_spill] sm:$0xff]  ;;  %v4836_v10 = vld [vmem:[#allocation41_spill] sm:$0xff] }
 0x241   : > { %v1026_v45 = vsel %vm1024_vm3, %v4790_v13, %v4824_v25  ;;  %v1099_v5 = vsel %vm1098_vm7, %v4826_v51, %v4825_v48  ;;  %v1582_v60 = vsel %vm1580_vm4, %v3992_v11, %v1579_v3  ;;  %v921_v29 = vadd.f32 %v919_v32, %v882_v33  ;;  %v4837_v28 = vld [vmem:[#allocation18_spill] sm:$0xff] }
 0x242   : > { %v993_v54 = vmul.f32 %v989_v18, %v4793_v63  ;;  %v1586_v58 = vmul.f32 %v1582_v60, %v4816_v30  ;;  %vm1617_vm0 = vcmask 359424   ;;  %vm4830_vm1 = vcmask 261120   ;;  %v1386_v33 = vld [vmem:[#allocation6 + $0x3] ss:$8 sm:$0x3] }
 0x243   : > { %v545_v13 = vsel %vm4830_vm1, %v4829_v44, %v4828_v42  ;;  %v717_v16 = vadd.f32 %v715_v22, %v680_v26  ;;  %v789_v56 = vmul.f32 %v785_v53, %v4831_v17  ;;  %v1063_v11 = vsel %vm1061_vm13, %v4801_v9, %v4832_v27  ;;  %v4835_v26 = vld [vmem:[#allocation90_spill] sm:$0xff]  ;;  %v1664_v60 = vld [vmem:[#allocation6 + $0x4] ss:$8 sm:$0x3]  ;;  %v4844_v17 = vld [vmem:[#allocation93_spill] sm:$0xff] }
 0x244   : > { %2204 = vrot.lane.b32.xlu0 %v4827_v49, %s2933_s26  ;;  %v958_v63 = vadd.f32 %v956_v47, %v921_v29  ;;  %v1030_v12 = vmul.f32 %v1026_v45, %v4797_v4  ;;  %v1103_v34 = vmul.f32 %v1099_v5, %v4833_v35  ;;  %v1588_v52 = vadd.f32 %v1586_v58, %v1551_v31  ;;  %v1612_v7 = vpop.permute.xlu0 %1611  ;;  %v4842_v5 = vld [vmem:[#allocation29_spill] sm:$0xff] }
 0x245   : > { %v754_v32 = vadd.f32 %v752_v38, %v717_v16  ;;  %v826_v30 = vmul.f32 %v822_v57, %v4789_v15  ;;  %v1100_v24 = vsel %vm1098_vm7, %v4825_v48, %v4834_v61  ;;  %v1618_v22 = vsel %vm1617_vm0, %v1612_v7, %v4835_v26  ;;  %v4358_v48 = vpop.permute.xlu1 %2019  ;;  %v4845_v27 = vld [vmem:[#allocation97_spill] sm:$0xff] }
 0x246   : > { %v1068_v9 = vadd.f32 %v1066_v40, %v1031_v0  ;;  %v995_v46 = vadd.f32 %v993_v54, %v958_v63  ;;  %v1067_v18 = vmul.f32 %v1063_v11, %v4807_v59  ;;  %v1622_v4 = vmul.f32 %v1618_v22, %v4836_v10  ;;  %v4838_v59 = vld [vmem:[#allocation16_spill] sm:$0xff] }
 0x247   : > { %v550_v31 = vadd.f32 %v4229_v39, %v4226_v23  ;;  %v477_v15 = vadd.f32 %v475_v62, %v440_v36  ;;  %v549_v38 = vmul.f32 %v545_v13, %v4796_v43  ;;  %v791_v53 = vadd.f32 %v789_v56, %v754_v32  ;;  %v4840_v62 = vld [vmem:[#allocation98_spill] sm:$0xff] }
 0x248   : > { %2208 = vrot.lane.b32.xlu0 %v4837_v28, %s2933_s26  ;;  %v1032_v47 = vadd.f32 %v1030_v12, %v995_v46  ;;  %v1105_v3 = vadd.f32 %v1103_v34, %v1068_v9  ;;  %v1104_v0 = vmul.f32 %v1100_v24, %v4833_v35  ;;  %v1624_v40 = vadd.f32 %v1622_v4, %v1587_v21  ;;  %v1616_v6 = vpop.permute.xlu0 %1615  ;;  %v4846_v12 = vld [vmem:[#allocation92_spill] sm:$0xff]  ;;  %v4847_v9 = vld [vmem:[#allocation99_spill] sm:$0xff] }
 0x249   : > { %v4839_v41 = vrot.slane %v4838_v59, %v4072_v50  ;;  %v514_v25 = vadd.f32 %v512_v1, %v477_v15  ;;  %v828_v45 = vadd.f32 %v826_v30, %v791_v53  ;;  %v1619_v23 = vsel %vm1617_vm0, %v4835_v26, %v1616_v6  ;;  %v4383_v34 = vpop.permute.xlu1 %2023 }
 0x24a   : > { %v1069_v43 = vadd.f32 %v1067_v18, %v1032_v47  ;;  %v1391_v39 = vrot.slane %v1386_v33, %v4072_v50  ;;  %v1623_v36 = vmul.f32 %v1619_v23, %v4836_v10  ;;  %vm1654_vm3 = vcmask 228352  }
 0x24b   : > { %v842_v57 = vmul.f32 %v4839_v41, %v4248_v37  ;;  %v4841_v21 = vrot.slane %v4840_v62, %v4072_v50  ;;  %v561_v37 = vrot.slane %v4840_v62, %v4842_v5  ;;  %v551_v1 = vadd.f32 %v549_v38, %v514_v25  ;;  %v4848_v25 = vld [vmem:[#allocation95_spill] sm:$0xff] }
 0x24c   : > { %v1120_v29 = vmul.f32 %v1113_v2, %v1105_v3  ;;  %v1117_v54 = vrot.slane %v4231_v20, %v4842_v5  ;;  %v1106_v58 = vadd.f32 %v1104_v0, %v1069_v43  ;;  %v1625_v49 = vadd.f32 %v1623_v36, %v1588_v52  ;;  %v1649_v42 = vpop.permute.xlu0 %1648  ;;  %v4849_v43 = vld [vmem:[#allocation19_spill] sm:$0xff]  ;;  %v4850_v36 = vld [vmem:[#allocation94_spill] sm:$0xff] }
 0x24d   : > { %v564_v51 = vmul.f32 %v4841_v21, %v550_v31  ;;  %v4843_v13 = vrot.slane %v4838_v59, %v4842_v5  ;;  %v1655_v56 = vsel %vm1654_vm3, %v1649_v42, %v4844_v17  ;;  %v1398_v11 = vmul.f32 %v1391_v39, %v4845_v27  ;;  %v4392_v15 = vpop.permute.xlu1 %1815  ;;  %v4851_v21 = vld [vmem:[#allocation96_spill] sm:$0xff] }
 0x24e   : > { %v1395_v63 = vrot.slane %v1386_v33, %v4842_v5  ;;  %v1669_v2 = vrot.slane %v1664_v60, %v4072_v50  ;;  %v1659_v35 = vmul.f32 %v1655_v56, %v4846_v12  ;;  %v565_v20 = vmul.f32 %v561_v37, %v551_v1 }
 0x24f   : > { %v844_v44 = vadd.f32 %v842_v57, %v564_v51  ;;  %v843_v16 = vmul.f32 %v4843_v13, %v828_v45  ;;  %v1121_v7 = vmul.f32 %v1117_v54, %v1106_v58  ;;  %v1673_v24 = vrot.slane %v1664_v60, %v4842_v5 }
 0x250   : > { %v1661_v32 = vadd.f32 %v1659_v35, %v1624_v40  ;;  %v1653_v30 = vpop.permute.xlu0 %1652  ;;  %v1399_v46 = vmul.f32 %v1395_v63, %v4847_v9  ;;  %vm1784_vm6 = vcmask 744448   ;;  %vm1710_vm8 = vcmask 1006592  }
 0x251   : > { %v1122_v52 = vadd.f32 %v1120_v29, %v844_v44  ;;  %v845_v61 = vadd.f32 %v843_v16, %v565_v20  ;;  %v1656_v26 = vsel %vm1654_vm3, %v4844_v17, %v1653_v30  ;;  %v4396_v47 = vpop.permute.xlu1 %1817  ;;  %v1785_v6 = vsel %vm1784_vm6, %v4208_v8, %v4253_v14 }
 0x252   : > { %v1676_v18 = vmul.f32 %v1669_v2, %v1661_v32  ;;  %v1660_v10 = vmul.f32 %v1656_v26, %v4846_v12  ;;  %vm1747_vm9 = vcmask 875520   ;;  %vm2025_vm10 = vcmask 867328  }
 0x253   : > { %v1400_v22 = vadd.f32 %v1398_v11, %v1122_v52  ;;  %v1123_v4 = vadd.f32 %v1121_v7, %v845_v61  ;;  %vm1988_vm12 = vcmask 998400   ;;  %v4852_v61 = vld [vmem:[#allocation17_spill] sm:$0xff]  ;;  %vm2062_vm14 = vcmask 736256  }
 0x254   : > { %v1662_v31 = vadd.f32 %v1660_v10, %v1625_v49  ;;  %v1705_v3 = vpop.permute.xlu0 %1704  ;;  %vm1821_vm15 = vcmask 613376   ;;  %vm1858_vm13 = vcmask 482304   ;;  %vm1932_vm11 = vcmask 220160  }
 0x255   : > { %v4390_v28 = vadd.f32 %v1676_v18, %v1400_v22  ;;  %v1401_v38 = vadd.f32 %v1399_v46, %v1123_v4  ;;  %v4398_v0 = vpop.permute.xlu1 %1869  ;;  %v1711_v45 = vsel %vm1710_vm8, %v1705_v3, %v4848_v25  ;;  %v4853_v22 = vld [vmem:[#allocation100_spill] sm:$0xff]  ;;  %vm1895_vm7 = vcmask 351232  }
 0x256   : > { %v1677_v53 = vmul.f32 %v1673_v24, %v1662_v31  ;;  %v1715_v62 = vmul.f32 %v1711_v45, %v4850_v36  ;;  %vm2099_vm2 = vcmask 605184   ;;  %vm2136_vm4 = vcmask 474112  }
 0x257   : > { %vm2173_vm5 = vcmask 343040   ;;  %vm2210_vm0 = vcmask 211968  }
 0x258   : > { %v4394_v33 = vadd.f32 %v1677_v53, %v1401_v38  ;;  %v1709_v40 = vpop.permute.xlu0 %1708 }
 0x259   : > { %v2059_v57 = vpop.permute.xlu1 %2058  ;;  %v1712_v37 = vsel %vm1710_vm8, %v4848_v25, %v1709_v40 }
 0x25a   : > { %v1716_v54 = vmul.f32 %v1712_v37, %v4850_v36 }
 0x25d   : > { %v4408_v1 = vpop.permute.xlu1 %2110 }
 0x261   : > { %v4413_v13 = vpop.permute.xlu1 %1854 }
 0x265   : > { %v1759_v59 = vpop.permute.xlu0 %1758  ;;  %v4417_v27 = vpop.permute.xlu1 %1906 }
 0x266   : > { %v1789_v41 = vmul.f32 %v1785_v6, %v1759_v59 }
 0x269   : > { %v1742_v23 = vpop.permute.xlu0 %1741  ;;  %v4421_v12 = vpop.permute.xlu1 %2095 }
 0x26a   : > { %v1748_v39 = vsel %vm1747_vm9, %v1742_v23, %v4849_v43 }
 0x26b   : > { %v1752_v51 = vmul.f32 %v1748_v39, %v4851_v21  ;;  %v1822_v39 = vsel %vm1821_vm15, %v4392_v15, %v4396_v47 }
 0x26d   : > { %v1754_v60 = vadd.f32 %v1752_v51, %v1715_v62  ;;  %v1746_v8 = vpop.permute.xlu0 %1745  ;;  %v4423_v20 = vpop.permute.xlu1 %2147 }
 0x26e   : > { %v1749_v29 = vsel %vm1747_vm9, %v4849_v43, %v1746_v8 }
 0x26f   : > { %v1791_v58 = vadd.f32 %v1789_v41, %v1754_v60  ;;  %v1753_v49 = vmul.f32 %v1749_v29, %v4851_v21 }
 0x271   : > { %v1755_v42 = vadd.f32 %v1753_v49, %v1716_v54  ;;  %v2037_v44 = vpop.permute.xlu0 %2036  ;;  %v1892_v30 = vpop.permute.xlu1 %1891  ;;  %v1942_v54 = vld [vmem:[#allocation6 + $0x5] ss:$8 sm:$0x3] }
 0x275   : > { %v1783_v16 = vpop.permute.xlu0 %1782 }
 0x276   : > { %v1786_v17 = vsel %vm1784_vm6, %v4253_v14, %v1783_v16  ;;  %v1947_v16 = vrot.slane %v1942_v54, %v4072_v50 }
 0x277   : > { %v1790_v56 = vmul.f32 %v1786_v17, %v1759_v59 }
 0x279   : > { %v4419_v11 = vadd.f32 %v1790_v56, %v1755_v42  ;;  %v1983_v63 = vpop.permute.xlu0 %1982 }
 0x27a   : > { %v1989_v14 = vsel %vm1988_vm12, %v1983_v63, %v4336_v19 }
 0x27b   : > { %v1993_v9 = vmul.f32 %v1989_v14, %v4853_v22 }
 0x27d   : > { %v1987_v2 = vpop.permute.xlu0 %1986 }
 0x27e   : > { %v1990_v18 = vsel %vm1988_vm12, %v4336_v19, %v1987_v2 }
 0x27f   : > { %v1994_v53 = vmul.f32 %v1990_v18, %v4853_v22 }
 0x281   : > { %v2022_v35 = vpop.permute.xlu0 %2021 }
 0x282   : > { %v2026_v7 = vsel %vm2025_vm10, %v4358_v48, %v2022_v35  ;;  %v2027_v26 = vsel %vm2025_vm10, %v2022_v35, %v4383_v34  ;;  %v2131_v48 = vpop.permute.xlu1 %2130 }
 0x283   : > { %v2030_v24 = vmul.f32 %v2026_v7, %v4852_v61  ;;  %v2031_v4 = vmul.f32 %v2027_v26, %v4852_v61 }
 0x285   : > { %v4425_v52 = vpop.permute.xlu0 %2073  ;;  %v2032_v31 = vadd.f32 %v2030_v24, %v1993_v9  ;;  %v2033_v59 = vadd.f32 %v2031_v4, %v1994_v53 }
 0x286   : > { %v2135_v45 = vpop.permute.xlu1 %2134 }
 0x289   : > { %v1820_v32 = vpop.permute.xlu0 %1819 }
 0x28a   : > { %v1927_v19 = vpop.permute.xlu1 %1926  ;;  %v1823_v2 = vsel %vm1821_vm15, %v4396_v47, %v1820_v32 }
 0x28d   : > { %v2057_v46 = vpop.permute.xlu0 %2056 }
 0x28e   : > { %v2063_v10 = vsel %vm2062_vm14, %v2057_v46, %v2059_v57  ;;  %v1929_v51 = vpop.permute.xlu1 %1928 }
 0x28f   : > { %v2067_v38 = vmul.f32 %v2063_v10, %v2037_v44  ;;  %v1933_v29 = vsel %vm1932_vm11, %v1927_v19, %v1929_v51 }
 0x291   : > { %v4435_v3 = vadd.f32 %v2067_v38, %v2032_v31  ;;  %v2061_v40 = vpop.permute.xlu0 %2060 }
 0x292   : > { %v2064_v6 = vsel %vm2062_vm14, %v2059_v57, %v2061_v40  ;;  %v4854_v57 = vld [vmem:[#allocation20_spill] sm:$0xff]  ;;  %v2168_v26 = vpop.permute.xlu1 %2167 }
 0x293   : > { %v2068_v41 = vmul.f32 %v2064_v6, %v2037_v44  ;;  %v1826_v21 = vmul.f32 %v1822_v39, %v4854_v57  ;;  %v1937_v44 = vmul.f32 %v1933_v29, %v4417_v27  ;;  %v1827_v14 = vmul.f32 %v1823_v2, %v4854_v57 }
 0x295   : > { %v4437_v34 = vadd.f32 %v2068_v41, %v2033_v59  ;;  %v1853_v25 = vpop.permute.xlu0 %1852  ;;  %v1828_v60 = vadd.f32 %v1826_v21, %v1791_v58  ;;  %v1829_v46 = vadd.f32 %v1827_v14, %v4419_v11 }
 0x296   : > { %v1859_v36 = vsel %vm1858_vm13, %v1853_v25, %v4413_v13  ;;  %v2172_v4 = vpop.permute.xlu1 %2171 }
 0x297   : > { %v1863_v37 = vmul.f32 %v1859_v36, %v4292_v55 }
 0x299   : > { %v1857_v23 = vpop.permute.xlu0 %1856  ;;  %v1865_v42 = vadd.f32 %v1863_v37, %v1828_v60 }
 0x29a   : > { %v1860_v7 = vsel %vm1858_vm13, %v4413_v13, %v1857_v23 }
 0x29b   : > { %v1864_v22 = vmul.f32 %v1860_v7, %v4292_v55 }
 0x29d   : > { %v2094_v43 = vpop.permute.xlu0 %2093  ;;  %v1866_v13 = vadd.f32 %v1864_v22, %v1829_v46 }
 0x29e   : > { %v2100_v32 = vsel %vm2099_vm2, %v2094_v43, %v4421_v12  ;;  %v2207_v43 = vpop.permute.xlu1 %2206 }
 0x29f   : > { %v2104_v55 = vmul.f32 %v2100_v32, %v4425_v52 }
 0x2a1   : > { %v2098_v62 = vpop.permute.xlu0 %2097  ;;  %v2106_v59 = vadd.f32 %v2104_v55, %v4435_v3 }
 0x2a5   : > { %v1890_v8 = vpop.permute.xlu0 %1889 }
 0x2a6   : > { %v1896_v49 = vsel %vm1895_vm7, %v1890_v8, %v1892_v30 }
 0x2a7   : > { %v1900_v15 = vmul.f32 %v1896_v49, %v4398_v0 }
 0x2a9   : > { %v1902_v17 = vadd.f32 %v1900_v15, %v1865_v42  ;;  %v1894_v56 = vpop.permute.xlu0 %1893 }
 0x2aa   : > { %v1897_v24 = vsel %vm1895_vm7, %v1892_v30, %v1894_v56 }
 0x2ab   : > { %v1939_v63 = vadd.f32 %v1937_v44, %v1902_v17  ;;  %v1901_v47 = vmul.f32 %v1897_v24, %v4398_v0  ;;  %v2101_v0 = vsel %vm2099_vm2, %v4421_v12, %v2098_v62  ;;  %v2935_v24 = vmov 1966171168  }
 0x2ac   : > { %v2105_v41 = vmul.f32 %v2101_v0, %v4425_v52 }
 0x2ad   : > { %v1954_v58 = vmul.f32 %v1947_v16, %v1939_v63  ;;  %v2133_v35 = vpop.permute.xlu0 %2132  ;;  %v1903_v31 = vadd.f32 %v1901_v47, %v1866_v13  ;;  %v4855_v13 = vld [vmem:[#allocation15_spill] sm:$0xff] }
 0x2ae   : > { %v2137_v10 = vsel %vm2136_vm4, %v2131_v48, %v2133_v35  ;;  %v2138_v48 = vsel %vm2136_vm4, %v2133_v35, %v2135_v45  ;;  %v2107_v3 = vadd.f32 %v2105_v41, %v4437_v34  ;;  %v2244_v34 = vstv %s260_s7 }
 0x2af   : > { %v1956_v61 = vadd.f32 %v1954_v58, %v4390_v28  ;;  %v1951_v28 = vrot.slane %v1942_v54, %v4842_v5  ;;  %v2141_v38 = vmul.f32 %v2137_v10, %v4408_v1  ;;  %v2142_v12 = vmul.f32 %v2138_v48, %v4408_v1 }
 0x2b1   : > { %v2185_v9 = vpop.permute.xlu0 %2184  ;;  %v2143_v39 = vadd.f32 %v2141_v38, %v2106_v59  ;;  %v2144_v37 = vadd.f32 %v2142_v12, %v2107_v3 }
 0x2b5   : > { %v1931_v18 = vpop.permute.xlu0 %1930 }
 0x2b6   : > { %v1934_v30 = vsel %vm1932_vm11, %v1929_v51, %v1931_v18 }
 0x2b7   : > { %v1938_v11 = vmul.f32 %v1934_v30, %v4417_v27  ;;  %v2220_v27 = vld [vmem:[#allocation6 + $0x6] ss:$8 sm:$0x3]  ;;  %v4856_v30 = vlaneseq }
 0x2b8   : > { %v2225_v45 = vrot.slane %v2220_v27, %v4072_v50 }
 0x2b9   : > { %v1940_v53 = vadd.f32 %v1938_v11, %v1903_v31  ;;  %v2170_v40 = vpop.permute.xlu0 %2169  ;;  %vm2280_vm1 = vcmp.lt.s32.totalorder %v4856_v30, 256 }
 0x2ba   : > { %v2174_v6 = vsel %vm2173_vm5, %v2168_v26, %v2170_v40  ;;  %v2175_v19 = vsel %vm2173_vm5, %v2170_v40, %v2172_v4  ;;  %v2265_v26 = vunpack.c.l.s4 %v2935_v24 }
 0x2bb   : > { %v1955_v25 = vmul.f32 %v1951_v28, %v1940_v53  ;;  %v2178_v23 = vmul.f32 %v2174_v6, %v4423_v20  ;;  %v2179_v52 = vmul.f32 %v2175_v19, %v4423_v20 }
 0x2bc   : > { %v2266_v22 = vunpack.c.0.s8 %v2265_v26 }
 0x2bd   : > { %v1957_v36 = vadd.f32 %v1955_v25, %v4394_v33  ;;  %v2205_v62 = vpop.permute.xlu0 %2204  ;;  %v2180_v21 = vadd.f32 %v2178_v23, %v2143_v39  ;;  %v2181_v29 = vadd.f32 %v2179_v52, %v2144_v37  ;;  %v2229_v33 = vrot.slane %v2220_v27, %v4842_v5 }
 0x2be   : > { %v2211_v57 = vsel %vm2210_vm0, %v2205_v62, %v2207_v43  ;;  %v2269_v18 = vsub.s32 %v2266_v22, %v4855_v13 }
 0x2bf   : > { %v2215_v51 = vmul.f32 %v2211_v57, %v2185_v9 }
 0x2c1   : > { %v2217_v60 = vadd.f32 %v2215_v51, %v2180_v21  ;;  %v2209_v8 = vpop.permute.xlu0 %2208 }
 0x2c2   : > { %v2212_v1 = vsel %vm2210_vm0, %v2207_v43, %v2209_v8 }
 0x2c3   : > { %v2232_v54 = vmul.f32 %v2225_v45, %v2217_v60  ;;  %v2216_v49 = vmul.f32 %v2212_v1, %v2185_v9 }
 0x2c5   : > { %v2234_v50 = vadd.f32 %v2232_v54, %v1956_v61  ;;  %v2218_v42 = vadd.f32 %v2216_v49, %v2181_v29 }
 0x2c7   : > { %v2238_v15 = vrot.slane %v2234_v50, 1  ;;  %v2233_v44 = vmul.f32 %v2229_v33, %v2218_v42 }
 0x2c9   : > { %v2242_v16 = vadd.f32 %v2238_v15, %v2234_v50  ;;  %v2235_v20 = vadd.f32 %v2233_v44, %v1957_v36 }
 0x2cb   : > { %v2245_v17 = vadd.f32 %v2244_v34, %v2242_v16  ;;  %v2239_v56 = vrot.slane %v2235_v20, 1 }
 0x2cd   : > { %v2404_v63 = vmul.f32 -1.442695, %v2245_v17  ;;  %v2243_v2 = vadd.f32 %v2239_v56, %v2235_v20 }
 0x2cf   : > { %2685 = vpow2.f32 %v2404_v63  ;;  %v2246_v58 = vadd.f32 %v2244_v34, %v2243_v2 }
 0x2d1   : > { %v2405_v35 = vmul.f32 -1.442695, %v2246_v58 }
 0x2d3   : > { %2687 = vpow2.f32 %v2405_v35 }
 0x2dc   : > { %v2686_v7 = vpop.eup %2685 }
 0x2dd   : > { %v2253_v5 = vadd.f32 1.0, %v2686_v7 }
 0x2df   : > { %2689 = vrcp.f32 %v2253_v5 }
 0x2e0   : > { %v2688_v14 = vpop.eup %2687 }
 0x2e1   : > { %v2254_v61 = vadd.f32 1.0, %v2688_v14 }
 0x2e3   : > { %2691 = vrcp.f32 %v2254_v61 }
 0x2ec   : > { %v2690_v9 = vpop.eup %2689 }
 0x2ed   : > { %v2259_v47 = vmul.f32 %v2690_v9, %v2245_v17 }
 0x2f0   : > { %v2692_v46 = vpop.eup %2691 }
 0x2f1   : > { %v2260_v32 = vmul.f32 %v2692_v46, %v2246_v58 }
 0x2f3   : > { %v2263_v10 = vcombine.low %v2259_v47, %v2260_v32 }
 0x2f5   : > { %v2270_v28 = vrot.slane %v2263_v10, %v2269_v18 }
 0x2f7   : > { %v2277_v4 = vrot.slane %v2270_v28, %v2269_v18 }
 0x2f9   : > { %2282 = vst.msk [vmem:[%s243_s15] sm:$0x3] %vm2280_vm1, %v2277_v4 }
 0x2fa   : > { %2760 = shalt.err (!%p2757_p3)
}
 0x2fb   : > { %s2761_s25 = scalar_lea.hbm %s2296_s16, 32  ;;  %s2765_s28 = scalar_lea.hbm %s4530_s4, 64 }
 0x2fc   : > { %p2762_p5 = scmp.ne.s32.totalorder %s2296_s16, %s2761_s25  ;;  %p2766_p4 = scmp.lt.s32.totalorder %s2296_s16, %s4530_s4 }
 0x2fd   : > { %p2767_p10 = scmp.lt.s32.totalorder %s2765_s28, %s2761_s25 }
 0x2fe   : > { %p2763_p7 = pnand %p2762_p5, %p3051_p0 }
 0x2ff   : > { %p2768_p9 = por %p2767_p10, %p2766_p4 }
 0x300   : > { %p2764_p6 = pneg %p2763_p7 }
 0x302   : > { %p2769_p1 = pnand %p2768_p9, %p2764_p6 }
 0x304   : > { %2772 = shalt.err (!%p2769_p1)
}
 0x305   : > { %2419 = dma.vmem_to_hbm [thread:$0]  (%p3051_p0), %s2299_s24, 32, %s2296_s16, %s2284_s1  }
 0x306 PF: > { %s2310_s10 = sand.u32 1, %s2811_s17   ;;  %p4857_p8 = scmp.ne.s32.totalorder %s4612_s27, 0 }
 0x307   : > { %p4858_p13 = scmp.ge.s32.totalorder %s2831_s22, 2  ;;  %s2311_s23 = scalar_lea.sflag [#allocation8], %s2310_s10 }
 0x309   : > { %p2430_p11 = pnand %p4858_p13, %p4857_p8 }
 0x30b   : > { %p2431_p2 = pneg %p2430_p11 }
 0x30d   : > { %2806 = dma.done.wait (%p2431_p2), %s2311_s23, 32  }
 0x30e   : > { %2808 = vsyncadd (%p2431_p2), %s2311_s23, 4294967264  ;;  %s22_s22 = sadd.s32 1, %s2831_s22   ;;  %s4859_s17 = smov %s2815_s18 }
 0x30f   : > { %p19_p12 = scmp.ge.s32.totalorder %s22_s22, 4   ;;  %s4860_s18 = smov %s2819_s19 }
 0x310   : > { %s4861_s19 = smov %s3057_s14  ;;  %s4862_s20 = smov %s2827_s21 }
 0x311   : > { %s4863_s21 = smov %s4865_s6  ;;  %21 = sbr.rel (!%p19_p12) target bundleno = 9 (0x9), region = 107 }
 0x316   :  { %2316 = vsyncpa [#allocation7], 1 }
 0x317   :  { %2318 = vsyncpa [#allocation7 + $0x1], 1 }
 0x318   :  { %2319 = vsyncpa [#allocation10], 1 }
 0x319   :  { %2321 = vsyncpa [#allocation10 + $0x1], 1 }
 0x31a   :  { %2322 = vsyncpa [#allocation8], 1 }
 0x31b   :  { %2324 = vsyncpa [#allocation8 + $0x1], 1 }

</bundles_post_ra>
